<compile_context>
chip_gen: v7x
topology: tpu7x:2x2x1
jax: 0.10.0
libtpu: 0.0.40
codegen_flags: <defaults>
</compile_context>

<pallas_src>
import math
from functools import partial

import jax
import jax.numpy as jnp
from jax.experimental import pallas as pl
from jax.experimental.pallas import tpu as pltpu

# ----------------------------- config ---------------------------------------
B_EX = 2
CIN = 3
T_IN, S_IN = 4, 16
PATCH_KERNEL = (3, 7, 7)
PATCH_STRIDE = (2, 4, 4)
PATCH_PAD = (1, 3, 3)
EMBED = 64
NUM_HEADS = 2
HEAD_DIM = EMBED // NUM_HEADS
DEPTH = 2
MLP_RATIO = 4
HIDDEN = MLP_RATIO * EMBED
NUM_CLASSES = 7
LN_EPS = 1e-6

T_P = T_IN // PATCH_STRIDE[0]
H_P = S_IN // PATCH_STRIDE[1]
W_P = S_IN // PATCH_STRIDE[2]
NUM_PATCHES = T_P * H_P * W_P          # 32
SEQ = NUM_PATCHES + 1                  # 33 (+cls token)

# per-block (kernel, stride, padding) or None — derived exactly as MViT.__init__
# does from POOL_Q_STRIDE / POOL_KV_STRIDE_ADAPTIVE / POOL_KVQ_KERNEL.
BLOCK_CFGS = [
    dict(pool_q=None,
         pool_kv=((3, 3, 3), (1, 2, 2), (1, 1, 1)),
         pool_skip=None),
    dict(pool_q=((3, 3, 3), (1, 2, 2), (1, 1, 1)),
         pool_kv=((3, 3, 3), (1, 1, 1), (1, 1, 1)),
         pool_skip=((1, 3, 3), (1, 2, 2), (0, 1, 1))),
]

VMEM_LIMIT = 32 * 1024 * 1024
_PARALLEL_1D = pltpu.CompilerParams(dimension_semantics=("parallel",),
                                    vmem_limit_bytes=VMEM_LIMIT)


def _bcast_spec(shape):
    n = len(shape)
    return pl.BlockSpec(shape, lambda i, n=n: (0,) * n)


# --------------------------- in-kernel helpers --------------------------------
def _ln_f32(x, g, b, eps=LN_EPS):
    # x: (M, C) f32; g, b: (1, C)
    mean = jnp.mean(x, axis=-1, keepdims=True)
    xc = x - mean
    var = jnp.mean(xc * xc, axis=-1, keepdims=True)
    return xc * jax.lax.rsqrt(var + eps) * g + b


def _gelu_tanh(x):
    # TODO(synk): PyTorch nn.GELU default is exact erf-based; tanh approx used
    # here for guaranteed Mosaic lowering (~1e-3 level divergence).
    c = math.sqrt(2.0 / math.pi)
    return 0.5 * x * (1.0 + jnp.tanh(c * (x + 0.044715 * x * x * x)))


def _pool_out(n, k, s, p):
    return (n + 2 * p - k) // s + 1


def _pooled_thw(thw, cfg):
    if cfg is None:
        return tuple(int(d) for d in thw)
    kernel, stride, pad = cfg
    return tuple(_pool_out(int(thw[d]), kernel[d], stride[d], pad[d])
                 for d in range(3))


def _pool_tokens(tok, cfg, thw):
    """Max-pool the spatial tokens of `tok` ((1 + T*H*W, C), cls row first).

    Statically unrolled: only contiguous row slices, elementwise maxima and
    tiny sublane reductions (no strided slices, no reshapes), so it lowers
    cleanly in Mosaic.  Semantics match PyTorch MaxPool3d (-inf padding,
    floor output size); pooling is per channel so the (L, C) layout gives the
    same result as the per-head layout in the reference model.
    """
    if cfg is None:
        return tok
    kernel, stride, pad = cfg
    T, H, W = thw
    HW = H * W

    def win(n, k, s, p, i):
        lo = max(i * s - p, 0)
        hi = min(i * s - p + k, n)
        return lo, hi

    To = _pool_out(T, kernel[0], stride[0], pad[0])
    Ho = _pool_out(H, kernel[1], stride[1], pad[1])
    Wo = _pool_out(W, kernel[2], stride[2], pad[2])

    rows = [tok[:1, :]]                                       # cls row
    for to in range(To):
        t_lo, t_hi = win(T, kernel[0], stride[0], pad[0], to)
        slab = tok[1 + t_lo * HW:1 + (t_lo + 1) * HW, :]      # (H*W, C)
        for t in range(t_lo + 1, t_hi):
            slab = jnp.maximum(slab, tok[1 + t * HW:1 + (t + 1) * HW, :])
        for ho in range(Ho):
            h_lo, h_hi = win(H, kernel[1], stride[1], pad[1], ho)
            hrow = slab[h_lo * W:(h_lo + 1) * W, :]           # (W, C)
            for h in range(h_lo + 1, h_hi):
                hrow = jnp.maximum(hrow, slab[h * W:(h + 1) * W, :])
            for wo in range(Wo):
                w_lo, w_hi = win(W, kernel[2], stride[2], pad[2], wo)
                rows.append(jnp.max(hrow[w_lo:w_hi, :], axis=0, keepdims=True))
    return jnp.concatenate(rows, axis=0)


# --------------------------- Pallas kernels ----------------------------------
def _patch_embed_kernel(p_ref, w_ref, b_ref, cls_ref, pos_ref, o_ref):
    # Patches come in as (CK, N); contract dim 0 directly (transposed LHS is
    # native on the MXU) so no XLA transpose is needed upstream.
    pm = jax.lax.dot_general(p_ref[0].astype(jnp.bfloat16), w_ref[...],
                             (((0,), (0,)), ((), ())),
                             preferred_element_type=jnp.float32)       # (N, E)
    pos = pos_ref[...]
    cls_row = cls_ref[...] + pos[:1, :]
    body = pm + b_ref[...] + pos[1:, :]
    o_ref[0] = jnp.concatenate([cls_row, body], axis=0).astype(o_ref.dtype)


def patch_embed_tokens(x, params):
    # x: (B, Cin, T, H, W) -> tokens (B, SEQ, C) with cls token and pos embed.
    B = x.shape[0]
    patches = jax.lax.conv_general_dilated_patches(
        x, filter_shape=PATCH_KERNEL, window_strides=PATCH_STRIDE,
        padding=[(pp, pp) for pp in PATCH_PAD])
    CK = patches.shape[1]                                   # Cin * prod(kernel)
    patches = patches.reshape(B, CK, NUM_PATCHES)           # no relayout transpose
    # TODO(synk): if real Conv3d weights are loaded, verify the (Cin, kt, kh, kw)
    # flatten order of conv_general_dilated_patches matches patch_w's layout.
    cost = pl.CostEstimate(
        flops=int(2 * B * NUM_PATCHES * CK * EMBED),
        transcendentals=0,
        bytes_accessed=int(4 * B * CK * NUM_PATCHES + 2 * CK * EMBED
                           + 4 * B * SEQ * EMBED))
    return pl.pallas_call(
        _patch_embed_kernel,
        grid=(B,),
        in_specs=[pl.BlockSpec((1, CK, NUM_PATCHES), lambda i: (i, 0, 0)),
                  _bcast_spec((CK, EMBED)),
                  _bcast_spec((1, EMBED)),
                  _bcast_spec((1, EMBED)),
                  _bcast_spec((SEQ, EMBED))],
        out_specs=pl.BlockSpec((1, SEQ, EMBED), lambda i: (i, 0, 0)),
        out_shape=jax.ShapeDtypeStruct((B, SEQ, EMBED), x.dtype),
        compiler_params=_PARALLEL_1D,
        cost_estimate=cost,
    )(patches, params["patch_w"], params["patch_b"],
      params["cls_token"], params["pos_embed"])


def _block_kernel(x_ref, g1_ref, be1_ref, qkvw_ref, qkvb_ref,
                  pw_ref, pb_ref, g2_ref, be2_ref,
                  w1_ref, b1_ref, w2_ref, b2_ref, o_ref,
                  *, thw, pool_q, pool_kv, pool_skip, nh, hd, scale):
    # One full MultiScaleBlock (eval: dropout / drop-path identity, dim==dim_out)
    C = nh * hd
    x = x_ref[0].astype(jnp.float32)                                   # (L, C)
    xn = _ln_f32(x, g1_ref[...], be1_ref[...])
    y = jnp.dot(xn.astype(jnp.bfloat16), qkvw_ref[...],
                preferred_element_type=jnp.float32) + qkvb_ref[...]    # (L, 3C)

    # lane-dense (L, C) q/k/v + in-kernel max pooling (cls row excluded).
    q = _pool_tokens(y[:, 0 * C:1 * C], pool_q, thw)                   # (Lq, C)
    k = _pool_tokens(y[:, 1 * C:2 * C], pool_kv, thw)                  # (Lk, C)
    v = _pool_tokens(y[:, 2 * C:3 * C], pool_kv, thw)                  # (Lk, C)
    x_res = _pool_tokens(x, pool_skip, thw)                            # (Lq, C)

    # Attention; the output projection is folded in per head:
    #   concat_h(o_h) @ Wp == sum_h o_h @ Wp[h*hd:(h+1)*hd, :]
    pw = pw_ref[...]                                                   # (C, C) bf16
    x1 = x_res + pb_ref[...]
    for h in range(nh):
        qh = q[:, h * hd:(h + 1) * hd] * scale
        kh = k[:, h * hd:(h + 1) * hd]
        vh = v[:, h * hd:(h + 1) * hd]
        s = jax.lax.dot_general(qh.astype(jnp.bfloat16), kh.astype(jnp.bfloat16),
                                (((1,), (1,)), ((), ())),
                                preferred_element_type=jnp.float32)    # (Lq, Lk)
        s = s - jnp.max(s, axis=-1, keepdims=True)
        pr = jnp.exp(s)
        pr = pr * pl.reciprocal(jnp.sum(pr, axis=-1, keepdims=True), approx=True)
        oh = jnp.dot(pr.astype(jnp.bfloat16), vh.astype(jnp.bfloat16),
                     preferred_element_type=jnp.float32)               # (Lq, hd)
        x1 = x1 + jnp.dot(oh.astype(jnp.bfloat16), pw[h * hd:(h + 1) * hd, :],
                          preferred_element_type=jnp.float32)

    # LN2 + MLP + residual.
    xn2 = _ln_f32(x1, g2_ref[...], be2_ref[...])
    hmid = jnp.dot(xn2.astype(jnp.bfloat16), w1_ref[...],
                   preferred_element_type=jnp.float32) + b1_ref[...]   # (Lq, H)
    hmid = _gelu_tanh(hmid)
    out = x1 + jnp.dot(hmid.astype(jnp.bfloat16), w2_ref[...],
                       preferred_element_type=jnp.float32) + b2_ref[...]
    o_ref[0] = out.astype(o_ref.dtype)


def fused_block(x, p, thw, cfg):
    B, L, C = x.shape
    hid = HIDDEN
    q_thw = _pooled_thw(thw, cfg["pool_q"])
    kv_thw = _pooled_thw(thw, cfg["pool_kv"])
    Lq = math.prod(q_thw) + 1
    Lk = math.prod(kv_thw) + 1

    kern = partial(_block_kernel, thw=tuple(int(d) for d in thw),
                   pool_q=cfg["pool_q"], pool_kv=cfg["pool_kv"],
                   pool_skip=cfg["pool_skip"], nh=NUM_HEADS, hd=HEAD_DIM,
                   scale=HEAD_DIM ** -0.5)

    flops = 2 * B * (L * 3 * C * C + 2 * NUM_HEADS * Lq * Lk * HEAD_DIM
                     + Lq * C * C + 2 * Lq * C * hid)
    trans = B * (NUM_HEADS * Lq * Lk + Lq * hid)
    w_bytes = 2 * (3 * C * C + C * C + 2 * C * hid)
    act_bytes = 4 * B * (L + Lq) * C
    cost = pl.CostEstimate(flops=int(flops), transcendentals=int(trans),
                           bytes_accessed=int(w_bytes + act_bytes))

    out = pl.pallas_call(
        kern,
        grid=(B,),
        in_specs=[pl.BlockSpec((1, L, C), lambda i: (i, 0, 0)),
                  _bcast_spec((1, C)), _bcast_spec((1, C)),         # ln1 g/b
                  _bcast_spec((C, 3 * C)), _bcast_spec((1, 3 * C)), # qkv
                  _bcast_spec((C, C)), _bcast_spec((1, C)),         # proj
                  _bcast_spec((1, C)), _bcast_spec((1, C)),         # ln2 g/b
                  _bcast_spec((C, hid)), _bcast_spec((1, hid)),     # fc1
                  _bcast_spec((hid, C)), _bcast_spec((1, C))],      # fc2
        out_specs=pl.BlockSpec((1, Lq, C), lambda i: (i, 0, 0)),
        out_shape=jax.ShapeDtypeStruct((B, Lq, C), x.dtype),
        compiler_params=_PARALLEL_1D,
        cost_estimate=cost,
    )(x, p["ln1_g"], p["ln1_b"], p["qkv_w"], p["qkv_b"],
      p["proj_w"], p["proj_b"], p["ln2_g"], p["ln2_b"],
      p["fc1_w"], p["fc1_b"], p["fc2_w"], p["fc2_b"])
    return out, list(q_thw)


def _cls_head_kernel(t_ref, g_ref, be_ref, w_ref, hb_ref, o_ref):
    # LayerNorm(cls) -> head GEMM -> softmax (exact divide so rows sum to 1).
    xn = _ln_f32(t_ref[...].astype(jnp.float32), g_ref[...], be_ref[...])
    y = jnp.dot(xn, w_ref[...].astype(jnp.float32),
                preferred_element_type=jnp.float32) + hb_ref[...]
    y = y - jnp.max(y, axis=-1, keepdims=True)
    e = jnp.exp(y)
    o_ref[...] = (e / jnp.sum(e, axis=-1, keepdims=True)).astype(o_ref.dtype)


def fused_cls_head(t, g, b, w, hb):
    B, C = t.shape
    N = w.shape[1]
    return pl.pallas_call(
        _cls_head_kernel,
        grid=(1,),
        in_specs=[_bcast_spec((B, C)), _bcast_spec((1, C)), _bcast_spec((1, C)),
                  _bcast_spec((C, N)), _bcast_spec((1, N))],
        out_specs=pl.BlockSpec((B, N), lambda i: (0, 0)),
        out_shape=jax.ShapeDtypeStruct((B, N), t.dtype),
        compiler_params=pltpu.CompilerParams(vmem_limit_bytes=VMEM_LIMIT),
    )(t, g, b, w, hb)


# ------------------------------ forward ---------------------------------------
def mvit_forward(params, x):
    # x: (B, Cin, T, H, W)  (== x[0] of the PyTorch forward's input list)
    h = patch_embed_tokens(x, params)                        # (B, SEQ, C)
    thw = [T_P, H_P, W_P]
    for i in range(DEPTH):
        h, thw = fused_block(h, params["blocks"][i], thw, BLOCK_CFGS[i])
    # LayerNorm is row-wise, so normalizing only the cls token == norm(x)[:, 0].
    t = h[:, 0]                                              # (B, C)
    probs = fused_cls_head(t, params["norm_g"], params["norm_b"],
                           params["head_w"], params["head_b"])
    # TODO(synk): TransformerRoIHead ('tools'/'actions' tasks) is not configured here.
    return {"phase": [probs]}


# --------------------------- param init --------------------------------------
def init_params(key):
    keys = iter(jax.random.split(key, 64))

    def tn(shape, dtype=jnp.float32):  # trunc_normal std=0.02 (synthetic)
        w = 0.02 * jax.random.truncated_normal(next(keys), -2.0, 2.0, shape)
        return w.astype(dtype)

    K = math.prod(PATCH_KERNEL)
    params = dict(
        patch_w=tn((CIN * K, EMBED), jnp.bfloat16),
        patch_b=jnp.zeros((1, EMBED), jnp.float32),
        cls_token=tn((1, EMBED)),
        pos_embed=tn((SEQ, EMBED)),
        norm_g=jnp.ones((1, EMBED), jnp.float32),
        norm_b=jnp.zeros((1, EMBED), jnp.float32),
        head_w=tn((EMBED, NUM_CLASSES)),
        head_b=jnp.zeros((1, NUM_CLASSES), jnp.float32),
        blocks=[],
    )
    for _ in range(DEPTH):
        params["blocks"].append(dict(
            ln1_g=jnp.ones((1, EMBED), jnp.float32),
            ln1_b=jnp.zeros((1, EMBED), jnp.float32),
            qkv_w=tn((EMBED, 3 * EMBED), jnp.bfloat16),
            qkv_b=jnp.zeros((1, 3 * EMBED), jnp.float32),
            proj_w=tn((EMBED, EMBED), jnp.bfloat16),
            proj_b=jnp.zeros((1, EMBED), jnp.float32),
            ln2_g=jnp.ones((1, EMBED), jnp.float32),
            ln2_b=jnp.zeros((1, EMBED), jnp.float32),
            fc1_w=tn((EMBED, HIDDEN), jnp.bfloat16),
            fc1_b=jnp.zeros((1, HIDDEN), jnp.float32),
            fc2_w=tn((HIDDEN, EMBED), jnp.bfloat16),
            fc2_b=jnp.zeros((1, EMBED), jnp.float32),
        ))
    return params


# ------------------------------ main ------------------------------------------
if __name__ == "__main__":
    key = jax.random.PRNGKey(0)
    pkey, xkey = jax.random.split(key)
    params = init_params(pkey)
    x = jax.random.normal(xkey, (B_EX, CIN, T_IN, S_IN, S_IN), dtype=jnp.float32)

    fwd = jax.jit(mvit_forward)
    out = fwd(params, x)
    probs = jax.block_until_ready(out["phase"][0])

    assert probs.shape == (B_EX, NUM_CLASSES), probs.shape
    assert bool(jnp.all(jnp.isfinite(probs)))
    assert bool(jnp.allclose(jnp.sum(probs, axis=-1), 1.0, atol=1e-4))
    print("KERNEL_OK")
</pallas_src>

<mosaic_0001>
module attributes {stable_mosaic.version = 11 : i64} {
  func.func @_patch_embed_kernel(%arg0: i32, %arg1: memref<1x441x32xf32, #tpu.memory_space<vmem>>, %arg2: memref<441x64xbf16, #tpu.memory_space<vmem>>, %arg3: memref<1x64xf32, #tpu.memory_space<vmem>>, %arg4: memref<1x64xf32, #tpu.memory_space<vmem>>, %arg5: memref<33x64xf32, #tpu.memory_space<vmem>>, %arg6: memref<1x33x64xf32, #tpu.memory_space<vmem>>) attributes {dimension_semantics = [#tpu.dimension_semantics<parallel>], iteration_bounds = array<i64: 2>, scalar_prefetch = 0 : i64, scratch_operands = 0 : i64, tpu.core_type = #tpu.core_type<tc>, window_params = [{transform_indices = @transform_0, window_bounds = array<i64: 1, 441, 32>}, {pipeline_mode = #tpu.pipeline_mode<synchronous>, transform_indices = @transform_1, window_bounds = array<i64: 441, 64>}, {pipeline_mode = #tpu.pipeline_mode<synchronous>, transform_indices = @transform_2, window_bounds = array<i64: 1, 64>}, {pipeline_mode = #tpu.pipeline_mode<synchronous>, transform_indices = @transform_3, window_bounds = array<i64: 1, 64>}, {pipeline_mode = #tpu.pipeline_mode<synchronous>, transform_indices = @transform_4, window_bounds = array<i64: 33, 64>}, {transform_indices = @transform_5, window_bounds = array<i64: 1, 33, 64>}]} {
    %c0 = arith.constant 0 : index
    %c0_0 = arith.constant 0 : index
    %c0_1 = arith.constant 0 : index
    %0 = vector.load %arg1[%c0, %c0_0, %c0_1] : memref<1x441x32xf32, #tpu.memory_space<vmem>>, vector<1x441x32xf32>
    %1 = vector.shape_cast %0 : vector<1x441x32xf32> to vector<441x32xf32>
    %2 = arith.truncf %1 : vector<441x32xf32> to vector<441x32xbf16>
    %c0_2 = arith.constant 0 : index
    %c0_3 = arith.constant 0 : index
    %3 = vector.load %arg2[%c0_2, %c0_3] : memref<441x64xbf16, #tpu.memory_space<vmem>>, vector<441x64xbf16>
    %cst = arith.constant dense<0.000000e+00> : vector<32x64xf32>
    %4 = tpu.matmul %2, %3, %cst {dimension_numbers = #tpu.dot_dimension_numbers<[0], [0], [1], [1], [0, 1, 1, 1], [], []>} : vector<441x32xbf16>, vector<441x64xbf16>, vector<32x64xf32> -> vector<32x64xf32>
    %c0_4 = arith.constant 0 : index
    %c0_5 = arith.constant 0 : index
    %5 = vector.load %arg5[%c0_4, %c0_5] : memref<33x64xf32, #tpu.memory_space<vmem>>, vector<33x64xf32>
    %c0_6 = arith.constant 0 : index
    %c0_7 = arith.constant 0 : index
    %6 = vector.load %arg4[%c0_6, %c0_7] : memref<1x64xf32, #tpu.memory_space<vmem>>, vector<1x64xf32>
    %7 = vector.extract_strided_slice %5 {offsets = [0, 0], sizes = [1, 64], strides = [1, 1]} : vector<33x64xf32> to vector<1x64xf32>
    %8 = arith.addf %6, %7 : vector<1x64xf32>
    %c0_8 = arith.constant 0 : index
    %c0_9 = arith.constant 0 : index
    %9 = vector.load %arg3[%c0_8, %c0_9] : memref<1x64xf32, #tpu.memory_space<vmem>>, vector<1x64xf32>
    %10 = vector.broadcast %9 : vector<1x64xf32> to vector<32x64xf32>
    %11 = arith.addf %4, %10 : vector<32x64xf32>
    %12 = vector.extract_strided_slice %5 {offsets = [1, 0], sizes = [32, 64], strides = [1, 1]} : vector<33x64xf32> to vector<32x64xf32>
    %13 = arith.addf %11, %12 : vector<32x64xf32>
    %14 = tpu.concatenate %8, %13 in 0 : vector<1x64xf32>, vector<32x64xf32> -> vector<33x64xf32>
    %c0_10 = arith.constant 0 : index
    %c0_11 = arith.constant 0 : index
    %c0_12 = arith.constant 0 : index
    %15 = vector.load %arg6[%c0_10, %c0_11, %c0_12] : memref<1x33x64xf32, #tpu.memory_space<vmem>>, vector<1x33x64xf32>
    %16 = vector.shape_cast %15 : vector<1x33x64xf32> to vector<33x64xf32>
    %17 = vector.shape_cast %14 : vector<33x64xf32> to vector<1x33x64xf32>
    tpu.vector_store %arg6[%c0_10, %c0_11, %c0_12], %17 {strides = array<i32>} : memref<1x33x64xf32, #tpu.memory_space<vmem>>, vector<1x33x64xf32>,
    return
  }
  func.func @transform_0(%arg0: i32) -> (i32, i32, i32) {
    %c0_i32 = arith.constant 0 : i32
    %c0_i32_0 = arith.constant 0 : i32
    %c0_i32_1 = arith.constant 0 : i32
    return %arg0, %c0_i32, %c0_i32_0 : i32, i32, i32
  }
  func.func @transform_1(%arg0: i32) -> (i32, i32) {
    %c0_i32 = arith.constant 0 : i32
    %c0_i32_0 = arith.constant 0 : i32
    %c0_i32_1 = arith.constant 0 : i32
    return %c0_i32, %c0_i32_0 : i32, i32
  }
  func.func @transform_2(%arg0: i32) -> (i32, i32) {
    %c0_i32 = arith.constant 0 : i32
    %c0_i32_0 = arith.constant 0 : i32
    %c0_i32_1 = arith.constant 0 : i32
    return %c0_i32, %c0_i32_0 : i32, i32
  }
  func.func @transform_3(%arg0: i32) -> (i32, i32) {
    %c0_i32 = arith.constant 0 : i32
    %c0_i32_0 = arith.constant 0 : i32
    %c0_i32_1 = arith.constant 0 : i32
    return %c0_i32, %c0_i32_0 : i32, i32
  }
  func.func @transform_4(%arg0: i32) -> (i32, i32) {
    %c0_i32 = arith.constant 0 : i32
    %c0_i32_0 = arith.constant 0 : i32
    %c0_i32_1 = arith.constant 0 : i32
    return %c0_i32, %c0_i32_0 : i32, i32
  }
  func.func @transform_5(%arg0: i32) -> (i32, i32, i32) {
    %c0_i32 = arith.constant 0 : i32
    %c0_i32_0 = arith.constant 0 : i32
    %c0_i32_1 = arith.constant 0 : i32
    return %arg0, %c0_i32, %c0_i32_0 : i32, i32, i32
  }
}

module attributes {stable_mosaic.version = 11 : i64} {
  func.func @_block_kernel(%arg0: i32, %arg1: memref<1x33x64xf32, #tpu.memory_space<vmem>>, %arg2: memref<1x64xf32, #tpu.memory_space<vmem>>, %arg3: memref<1x64xf32, #tpu.memory_space<vmem>>, %arg4: memref<64x192xbf16, #tpu.memory_space<vmem>>, %arg5: memref<1x192xf32, #tpu.memory_space<vmem>>, %arg6: memref<64x64xbf16, #tpu.memory_space<vmem>>, %arg7: memref<1x64xf32, #tpu.memory_space<vmem>>, %arg8: memref<1x64xf32, #tpu.memory_space<vmem>>, %arg9: memref<1x64xf32, #tpu.memory_space<vmem>>, %arg10: memref<64x256xbf16, #tpu.memory_space<vmem>>, %arg11: memref<1x256xf32, #tpu.memory_space<vmem>>, %arg12: memref<256x64xbf16, #tpu.memory_space<vmem>>, %arg13: memref<1x64xf32, #tpu.memory_space<vmem>>, %arg14: memref<1x33x64xf32, #tpu.memory_space<vmem>>) attributes {dimension_semantics = [#tpu.dimension_semantics<parallel>], iteration_bounds = array<i64: 2>, scalar_prefetch = 0 : i64, scratch_operands = 0 : i64, tpu.core_type = #tpu.core_type<tc>, window_params = [{transform_indices = @transform_0, window_bounds = array<i64: 1, 33, 64>}, {pipeline_mode = #tpu.pipeline_mode<synchronous>, transform_indices = @transform_1, window_bounds = array<i64: 1, 64>}, {pipeline_mode = #tpu.pipeline_mode<synchronous>, transform_indices = @transform_2, window_bounds = array<i64: 1, 64>}, {pipeline_mode = #tpu.pipeline_mode<synchronous>, transform_indices = @transform_3, window_bounds = array<i64: 64, 192>}, {pipeline_mode = #tpu.pipeline_mode<synchronous>, transform_indices = @transform_4, window_bounds = array<i64: 1, 192>}, {pipeline_mode = #tpu.pipeline_mode<synchronous>, transform_indices = @transform_5, window_bounds = array<i64: 64, 64>}, {pipeline_mode = #tpu.pipeline_mode<synchronous>, transform_indices = @transform_6, window_bounds = array<i64: 1, 64>}, {pipeline_mode = #tpu.pipeline_mode<synchronous>, transform_indices = @transform_7, window_bounds = array<i64: 1, 64>}, {pipeline_mode = #tpu.pipeline_mode<synchronous>, transform_indices = @transform_8, window_bounds = array<i64: 1, 64>}, {pipeline_mode = #tpu.pipeline_mode<synchronous>, transform_indices = @transform_9, window_bounds = array<i64: 64, 256>}, {pipeline_mode = #tpu.pipeline_mode<synchronous>, transform_indices = @transform_10, window_bounds = array<i64: 1, 256>}, {pipeline_mode = #tpu.pipeline_mode<synchronous>, transform_indices = @transform_11, window_bounds = array<i64: 256, 64>}, {pipeline_mode = #tpu.pipeline_mode<synchronous>, transform_indices = @transform_12, window_bounds = array<i64: 1, 64>}, {transform_indices = @transform_13, window_bounds = array<i64: 1, 33, 64>}]} {
    %c0 = arith.constant 0 : index
    %c0_0 = arith.constant 0 : index
    %c0_1 = arith.constant 0 : index
    %0 = vector.load %arg1[%c0, %c0_0, %c0_1] : memref<1x33x64xf32, #tpu.memory_space<vmem>>, vector<1x33x64xf32>
    %1 = vector.shape_cast %0 : vector<1x33x64xf32> to vector<33x64xf32>
    %c0_2 = arith.constant 0 : index
    %c0_3 = arith.constant 0 : index
    %2 = vector.load %arg2[%c0_2, %c0_3] : memref<1x64xf32, #tpu.memory_space<vmem>>, vector<1x64xf32>
    %c0_4 = arith.constant 0 : index
    %c0_5 = arith.constant 0 : index
    %3 = vector.load %arg3[%c0_4, %c0_5] : memref<1x64xf32, #tpu.memory_space<vmem>>, vector<1x64xf32>
    %cst = arith.constant dense<0.000000e+00> : vector<33xf32>
    %4 = vector.multi_reduction <add>, %1, %cst [1] : vector<33x64xf32> to vector<33xf32>
    %5 = vector.shape_cast %4 : vector<33xf32> to vector<33x1xf32>
    %cst_6 = arith.constant 6.400000e+01 : f32
    %6 = vector.broadcast %cst_6 : f32 to vector<33x1xf32>
    %7 = arith.divf %5, %6 : vector<33x1xf32>
    %8 = vector.broadcast %7 : vector<33x1xf32> to vector<33x64xf32>
    %9 = arith.subf %1, %8 : vector<33x64xf32>
    %10 = arith.mulf %9, %9 : vector<33x64xf32>
    %cst_7 = arith.constant dense<0.000000e+00> : vector<33xf32>
    %11 = vector.multi_reduction <add>, %10, %cst_7 [1] : vector<33x64xf32> to vector<33xf32>
    %12 = vector.shape_cast %11 : vector<33xf32> to vector<33x1xf32>
    %cst_8 = arith.constant 6.400000e+01 : f32
    %13 = vector.broadcast %cst_8 : f32 to vector<33x1xf32>
    %14 = arith.divf %12, %13 : vector<33x1xf32>
    %cst_9 = arith.constant 9.99999997E-7 : f32
    %15 = vector.broadcast %cst_9 : f32 to vector<33x1xf32>
    %16 = arith.addf %14, %15 : vector<33x1xf32>
    %17 = math.rsqrt %16 : vector<33x1xf32>
    %18 = vector.broadcast %17 : vector<33x1xf32> to vector<33x64xf32>
    %19 = arith.mulf %9, %18 : vector<33x64xf32>
    %20 = vector.broadcast %2 : vector<1x64xf32> to vector<33x64xf32>
    %21 = arith.mulf %19, %20 : vector<33x64xf32>
    %22 = vector.broadcast %3 : vector<1x64xf32> to vector<33x64xf32>
    %23 = arith.addf %21, %22 : vector<33x64xf32>
    %24 = arith.truncf %23 : vector<33x64xf32> to vector<33x64xbf16>
    %c0_10 = arith.constant 0 : index
    %c0_11 = arith.constant 0 : index
    %25 = vector.load %arg4[%c0_10, %c0_11] : memref<64x192xbf16, #tpu.memory_space<vmem>>, vector<64x192xbf16>
    %cst_12 = arith.constant dense<0.000000e+00> : vector<33x192xf32>
    %26 = tpu.matmul %24, %25, %cst_12 {dimension_numbers = #tpu.dot_dimension_numbers<[1], [0], [0], [1], [0, 0, 1, 1], [], []>} : vector<33x64xbf16>, vector<64x192xbf16>, vector<33x192xf32> -> vector<33x192xf32>
    %c0_13 = arith.constant 0 : index
    %c0_14 = arith.constant 0 : index
    %27 = vector.load %arg5[%c0_13, %c0_14] : memref<1x192xf32, #tpu.memory_space<vmem>>, vector<1x192xf32>
    %28 = vector.broadcast %27 : vector<1x192xf32> to vector<33x192xf32>
    %29 = arith.addf %26, %28 : vector<33x192xf32>
    %30 = vector.extract_strided_slice %29 {offsets = [0, 0], sizes = [33, 64], strides = [1, 1]} : vector<33x192xf32> to vector<33x64xf32>
    %31 = vector.extract_strided_slice %29 {offsets = [0, 64], sizes = [33, 64], strides = [1, 1]} : vector<33x192xf32> to vector<33x64xf32>
    %32 = vector.extract_strided_slice %31 {offsets = [0, 0], sizes = [1, 64], strides = [1, 1]} : vector<33x64xf32> to vector<1x64xf32>
    %33 = vector.extract_strided_slice %31 {offsets = [1, 0], sizes = [16, 64], strides = [1, 1]} : vector<33x64xf32> to vector<16x64xf32>
    %34 = vector.extract_strided_slice %31 {offsets = [17, 0], sizes = [16, 64], strides = [1, 1]} : vector<33x64xf32> to vector<16x64xf32>
    %35 = arith.maximumf %33, %34 : vector<16x64xf32>
    %36 = vector.extract_strided_slice %35 {offsets = [0, 0], sizes = [4, 64], strides = [1, 1]} : vector<16x64xf32> to vector<4x64xf32>
    %37 = vector.extract_strided_slice %35 {offsets = [4, 0], sizes = [4, 64], strides = [1, 1]} : vector<16x64xf32> to vector<4x64xf32>
    %38 = arith.maximumf %36, %37 : vector<4x64xf32>
    %39 = vector.extract_strided_slice %38 {offsets = [0, 0], sizes = [2, 64], strides = [1, 1]} : vector<4x64xf32> to vector<2x64xf32>
    %cst_15 = arith.constant dense<0xFF800000> : vector<64xf32>
    %40 = vector.multi_reduction <maximumf>, %39, %cst_15 [0] : vector<2x64xf32> to vector<64xf32>
    %41 = vector.shape_cast %40 : vector<64xf32> to vector<1x64xf32>
    %42 = vector.extract_strided_slice %38 {offsets = [1, 0], sizes = [3, 64], strides = [1, 1]} : vector<4x64xf32> to vector<3x64xf32>
    %cst_16 = arith.constant dense<0xFF800000> : vector<64xf32>
    %43 = vector.multi_reduction <maximumf>, %42, %cst_16 [0] : vector<3x64xf32> to vector<64xf32>
    %44 = vector.shape_cast %43 : vector<64xf32> to vector<1x64xf32>
    %45 = vector.extract_strided_slice %35 {offsets = [4, 0], sizes = [4, 64], strides = [1, 1]} : vector<16x64xf32> to vector<4x64xf32>
    %46 = vector.extract_strided_slice %35 {offsets = [8, 0], sizes = [4, 64], strides = [1, 1]} : vector<16x64xf32> to vector<4x64xf32>
    %47 = arith.maximumf %45, %46 : vector<4x64xf32>
    %48 = vector.extract_strided_slice %35 {offsets = [12, 0], sizes = [4, 64], strides = [1, 1]} : vector<16x64xf32> to vector<4x64xf32>
    %49 = arith.maximumf %47, %48 : vector<4x64xf32>
    %50 = vector.extract_strided_slice %49 {offsets = [0, 0], sizes = [2, 64], strides = [1, 1]} : vector<4x64xf32> to vector<2x64xf32>
    %cst_17 = arith.constant dense<0xFF800000> : vector<64xf32>
    %51 = vector.multi_reduction <maximumf>, %50, %cst_17 [0] : vector<2x64xf32> to vector<64xf32>
    %52 = vector.shape_cast %51 : vector<64xf32> to vector<1x64xf32>
    %53 = vector.extract_strided_slice %49 {offsets = [1, 0], sizes = [3, 64], strides = [1, 1]} : vector<4x64xf32> to vector<3x64xf32>
    %cst_18 = arith.constant dense<0xFF800000> : vector<64xf32>
    %54 = vector.multi_reduction <maximumf>, %53, %cst_18 [0] : vector<3x64xf32> to vector<64xf32>
    %55 = vector.shape_cast %54 : vector<64xf32> to vector<1x64xf32>
    %56 = vector.extract_strided_slice %31 {offsets = [1, 0], sizes = [16, 64], strides = [1, 1]} : vector<33x64xf32> to vector<16x64xf32>
    %57 = vector.extract_strided_slice %31 {offsets = [17, 0], sizes = [16, 64], strides = [1, 1]} : vector<33x64xf32> to vector<16x64xf32>
    %58 = arith.maximumf %56, %57 : vector<16x64xf32>
    %59 = vector.extract_strided_slice %58 {offsets = [0, 0], sizes = [4, 64], strides = [1, 1]} : vector<16x64xf32> to vector<4x64xf32>
    %60 = vector.extract_strided_slice %58 {offsets = [4, 0], sizes = [4, 64], strides = [1, 1]} : vector<16x64xf32> to vector<4x64xf32>
    %61 = arith.maximumf %59, %60 : vector<4x64xf32>
    %62 = vector.extract_strided_slice %61 {offsets = [0, 0], sizes = [2, 64], strides = [1, 1]} : vector<4x64xf32> to vector<2x64xf32>
    %cst_19 = arith.constant dense<0xFF800000> : vector<64xf32>
    %63 = vector.multi_reduction <maximumf>, %62, %cst_19 [0] : vector<2x64xf32> to vector<64xf32>
    %64 = vector.shape_cast %63 : vector<64xf32> to vector<1x64xf32>
    %65 = vector.extract_strided_slice %61 {offsets = [1, 0], sizes = [3, 64], strides = [1, 1]} : vector<4x64xf32> to vector<3x64xf32>
    %cst_20 = arith.constant dense<0xFF800000> : vector<64xf32>
    %66 = vector.multi_reduction <maximumf>, %65, %cst_20 [0] : vector<3x64xf32> to vector<64xf32>
    %67 = vector.shape_cast %66 : vector<64xf32> to vector<1x64xf32>
    %68 = vector.extract_strided_slice %58 {offsets = [4, 0], sizes = [4, 64], strides = [1, 1]} : vector<16x64xf32> to vector<4x64xf32>
    %69 = vector.extract_strided_slice %58 {offsets = [8, 0], sizes = [4, 64], strides = [1, 1]} : vector<16x64xf32> to vector<4x64xf32>
    %70 = arith.maximumf %68, %69 : vector<4x64xf32>
    %71 = vector.extract_strided_slice %58 {offsets = [12, 0], sizes = [4, 64], strides = [1, 1]} : vector<16x64xf32> to vector<4x64xf32>
    %72 = arith.maximumf %70, %71 : vector<4x64xf32>
    %73 = vector.extract_strided_slice %72 {offsets = [0, 0], sizes = [2, 64], strides = [1, 1]} : vector<4x64xf32> to vector<2x64xf32>
    %cst_21 = arith.constant dense<0xFF800000> : vector<64xf32>
    %74 = vector.multi_reduction <maximumf>, %73, %cst_21 [0] : vector<2x64xf32> to vector<64xf32>
    %75 = vector.shape_cast %74 : vector<64xf32> to vector<1x64xf32>
    %76 = vector.extract_strided_slice %72 {offsets = [1, 0], sizes = [3, 64], strides = [1, 1]} : vector<4x64xf32> to vector<3x64xf32>
    %cst_22 = arith.constant dense<0xFF800000> : vector<64xf32>
    %77 = vector.multi_reduction <maximumf>, %76, %cst_22 [0] : vector<3x64xf32> to vector<64xf32>
    %78 = vector.shape_cast %77 : vector<64xf32> to vector<1x64xf32>
    %79 = tpu.concatenate %32, %41, %44, %52, %55, %64, %67, %75, %78 in 0 : vector<1x64xf32>, vector<1x64xf32>, vector<1x64xf32>, vector<1x64xf32>, vector<1x64xf32>, vector<1x64xf32>, vector<1x64xf32>, vector<1x64xf32>, vector<1x64xf32> -> vector<9x64xf32>
    %80 = vector.extract_strided_slice %29 {offsets = [0, 128], sizes = [33, 64], strides = [1, 1]} : vector<33x192xf32> to vector<33x64xf32>
    %81 = vector.extract_strided_slice %80 {offsets = [0, 0], sizes = [1, 64], strides = [1, 1]} : vector<33x64xf32> to vector<1x64xf32>
    %82 = vector.extract_strided_slice %80 {offsets = [1, 0], sizes = [16, 64], strides = [1, 1]} : vector<33x64xf32> to vector<16x64xf32>
    %83 = vector.extract_strided_slice %80 {offsets = [17, 0], sizes = [16, 64], strides = [1, 1]} : vector<33x64xf32> to vector<16x64xf32>
    %84 = arith.maximumf %82, %83 : vector<16x64xf32>
    %85 = vector.extract_strided_slice %84 {offsets = [0, 0], sizes = [4, 64], strides = [1, 1]} : vector<16x64xf32> to vector<4x64xf32>
    %86 = vector.extract_strided_slice %84 {offsets = [4, 0], sizes = [4, 64], strides = [1, 1]} : vector<16x64xf32> to vector<4x64xf32>
    %87 = arith.maximumf %85, %86 : vector<4x64xf32>
    %88 = vector.extract_strided_slice %87 {offsets = [0, 0], sizes = [2, 64], strides = [1, 1]} : vector<4x64xf32> to vector<2x64xf32>
    %cst_23 = arith.constant dense<0xFF800000> : vector<64xf32>
    %89 = vector.multi_reduction <maximumf>, %88, %cst_23 [0] : vector<2x64xf32> to vector<64xf32>
    %90 = vector.shape_cast %89 : vector<64xf32> to vector<1x64xf32>
    %91 = vector.extract_strided_slice %87 {offsets = [1, 0], sizes = [3, 64], strides = [1, 1]} : vector<4x64xf32> to vector<3x64xf32>
    %cst_24 = arith.constant dense<0xFF800000> : vector<64xf32>
    %92 = vector.multi_reduction <maximumf>, %91, %cst_24 [0] : vector<3x64xf32> to vector<64xf32>
    %93 = vector.shape_cast %92 : vector<64xf32> to vector<1x64xf32>
    %94 = vector.extract_strided_slice %84 {offsets = [4, 0], sizes = [4, 64], strides = [1, 1]} : vector<16x64xf32> to vector<4x64xf32>
    %95 = vector.extract_strided_slice %84 {offsets = [8, 0], sizes = [4, 64], strides = [1, 1]} : vector<16x64xf32> to vector<4x64xf32>
    %96 = arith.maximumf %94, %95 : vector<4x64xf32>
    %97 = vector.extract_strided_slice %84 {offsets = [12, 0], sizes = [4, 64], strides = [1, 1]} : vector<16x64xf32> to vector<4x64xf32>
    %98 = arith.maximumf %96, %97 : vector<4x64xf32>
    %99 = vector.extract_strided_slice %98 {offsets = [0, 0], sizes = [2, 64], strides = [1, 1]} : vector<4x64xf32> to vector<2x64xf32>
    %cst_25 = arith.constant dense<0xFF800000> : vector<64xf32>
    %100 = vector.multi_reduction <maximumf>, %99, %cst_25 [0] : vector<2x64xf32> to vector<64xf32>
    %101 = vector.shape_cast %100 : vector<64xf32> to vector<1x64xf32>
    %102 = vector.extract_strided_slice %98 {offsets = [1, 0], sizes = [3, 64], strides = [1, 1]} : vector<4x64xf32> to vector<3x64xf32>
    %cst_26 = arith.constant dense<0xFF800000> : vector<64xf32>
    %103 = vector.multi_reduction <maximumf>, %102, %cst_26 [0] : vector<3x64xf32> to vector<64xf32>
    %104 = vector.shape_cast %103 : vector<64xf32> to vector<1x64xf32>
    %105 = vector.extract_strided_slice %80 {offsets = [1, 0], sizes = [16, 64], strides = [1, 1]} : vector<33x64xf32> to vector<16x64xf32>
    %106 = vector.extract_strided_slice %80 {offsets = [17, 0], sizes = [16, 64], strides = [1, 1]} : vector<33x64xf32> to vector<16x64xf32>
    %107 = arith.maximumf %105, %106 : vector<16x64xf32>
    %108 = vector.extract_strided_slice %107 {offsets = [0, 0], sizes = [4, 64], strides = [1, 1]} : vector<16x64xf32> to vector<4x64xf32>
    %109 = vector.extract_strided_slice %107 {offsets = [4, 0], sizes = [4, 64], strides = [1, 1]} : vector<16x64xf32> to vector<4x64xf32>
    %110 = arith.maximumf %108, %109 : vector<4x64xf32>
    %111 = vector.extract_strided_slice %110 {offsets = [0, 0], sizes = [2, 64], strides = [1, 1]} : vector<4x64xf32> to vector<2x64xf32>
    %cst_27 = arith.constant dense<0xFF800000> : vector<64xf32>
    %112 = vector.multi_reduction <maximumf>, %111, %cst_27 [0] : vector<2x64xf32> to vector<64xf32>
    %113 = vector.shape_cast %112 : vector<64xf32> to vector<1x64xf32>
    %114 = vector.extract_strided_slice %110 {offsets = [1, 0], sizes = [3, 64], strides = [1, 1]} : vector<4x64xf32> to vector<3x64xf32>
    %cst_28 = arith.constant dense<0xFF800000> : vector<64xf32>
    %115 = vector.multi_reduction <maximumf>, %114, %cst_28 [0] : vector<3x64xf32> to vector<64xf32>
    %116 = vector.shape_cast %115 : vector<64xf32> to vector<1x64xf32>
    %117 = vector.extract_strided_slice %107 {offsets = [4, 0], sizes = [4, 64], strides = [1, 1]} : vector<16x64xf32> to vector<4x64xf32>
    %118 = vector.extract_strided_slice %107 {offsets = [8, 0], sizes = [4, 64], strides = [1, 1]} : vector<16x64xf32> to vector<4x64xf32>
    %119 = arith.maximumf %117, %118 : vector<4x64xf32>
    %120 = vector.extract_strided_slice %107 {offsets = [12, 0], sizes = [4, 64], strides = [1, 1]} : vector<16x64xf32> to vector<4x64xf32>
    %121 = arith.maximumf %119, %120 : vector<4x64xf32>
    %122 = vector.extract_strided_slice %121 {offsets = [0, 0], sizes = [2, 64], strides = [1, 1]} : vector<4x64xf32> to vector<2x64xf32>
    %cst_29 = arith.constant dense<0xFF800000> : vector<64xf32>
    %123 = vector.multi_reduction <maximumf>, %122, %cst_29 [0] : vector<2x64xf32> to vector<64xf32>
    %124 = vector.shape_cast %123 : vector<64xf32> to vector<1x64xf32>
    %125 = vector.extract_strided_slice %121 {offsets = [1, 0], sizes = [3, 64], strides = [1, 1]} : vector<4x64xf32> to vector<3x64xf32>
    %cst_30 = arith.constant dense<0xFF800000> : vector<64xf32>
    %126 = vector.multi_reduction <maximumf>, %125, %cst_30 [0] : vector<3x64xf32> to vector<64xf32>
    %127 = vector.shape_cast %126 : vector<64xf32> to vector<1x64xf32>
    %128 = tpu.concatenate %81, %90, %93, %101, %104, %113, %116, %124, %127 in 0 : vector<1x64xf32>, vector<1x64xf32>, vector<1x64xf32>, vector<1x64xf32>, vector<1x64xf32>, vector<1x64xf32>, vector<1x64xf32>, vector<1x64xf32>, vector<1x64xf32> -> vector<9x64xf32>
    %c0_31 = arith.constant 0 : index
    %c0_32 = arith.constant 0 : index
    %129 = vector.load %arg6[%c0_31, %c0_32] : memref<64x64xbf16, #tpu.memory_space<vmem>>, vector<64x64xbf16>
    %c0_33 = arith.constant 0 : index
    %c0_34 = arith.constant 0 : index
    %130 = vector.load %arg7[%c0_33, %c0_34] : memref<1x64xf32, #tpu.memory_space<vmem>>, vector<1x64xf32>
    %131 = vector.broadcast %130 : vector<1x64xf32> to vector<33x64xf32>
    %132 = arith.addf %1, %131 : vector<33x64xf32>
    %133 = vector.extract_strided_slice %30 {offsets = [0, 0], sizes = [33, 32], strides = [1, 1]} : vector<33x64xf32> to vector<33x32xf32>
    %cst_35 = arith.constant 0.176776692 : f32
    %134 = vector.broadcast %cst_35 : f32 to vector<33x32xf32>
    %135 = arith.mulf %133, %134 : vector<33x32xf32>
    %136 = vector.extract_strided_slice %79 {offsets = [0, 0], sizes = [9, 32], strides = [1, 1]} : vector<9x64xf32> to vector<9x32xf32>
    %137 = vector.extract_strided_slice %128 {offsets = [0, 0], sizes = [9, 32], strides = [1, 1]} : vector<9x64xf32> to vector<9x32xf32>
    %138 = arith.truncf %135 : vector<33x32xf32> to vector<33x32xbf16>
    %139 = arith.truncf %136 : vector<9x32xf32> to vector<9x32xbf16>
    %cst_36 = arith.constant dense<0.000000e+00> : vector<33x9xf32>
    %140 = tpu.matmul %138, %139, %cst_36 {dimension_numbers = #tpu.dot_dimension_numbers<[1], [1], [0], [0], [0, 0, 1, 0], [], []>} : vector<33x32xbf16>, vector<9x32xbf16>, vector<33x9xf32> -> vector<33x9xf32>
    %cst_37 = arith.constant dense<0xFF800000> : vector<33xf32>
    %141 = vector.multi_reduction <maximumf>, %140, %cst_37 [1] : vector<33x9xf32> to vector<33xf32>
    %142 = vector.shape_cast %141 : vector<33xf32> to vector<33x1xf32>
    %143 = vector.broadcast %142 : vector<33x1xf32> to vector<33x9xf32>
    %144 = arith.subf %140, %143 : vector<33x9xf32>
    %145 = math.exp %144 : vector<33x9xf32>
    %cst_38 = arith.constant dense<0.000000e+00> : vector<33xf32>
    %146 = vector.multi_reduction <add>, %145, %cst_38 [1] : vector<33x9xf32> to vector<33xf32>
    %147 = vector.shape_cast %146 : vector<33xf32> to vector<33x1xf32>
    %148 = tpu.reciprocal %147 {approx = true} : vector<33x1xf32> -> vector<33x1xf32>
    %149 = vector.broadcast %148 : vector<33x1xf32> to vector<33x9xf32>
    %150 = arith.mulf %145, %149 : vector<33x9xf32>
    %151 = arith.truncf %150 : vector<33x9xf32> to vector<33x9xbf16>
    %152 = arith.truncf %137 : vector<9x32xf32> to vector<9x32xbf16>
    %cst_39 = arith.constant dense<0.000000e+00> : vector<33x32xf32>
    %153 = tpu.matmul %151, %152, %cst_39 {dimension_numbers = #tpu.dot_dimension_numbers<[1], [0], [0], [1], [0, 0, 1, 1], [], []>} : vector<33x9xbf16>, vector<9x32xbf16>, vector<33x32xf32> -> vector<33x32xf32>
    %154 = arith.truncf %153 : vector<33x32xf32> to vector<33x32xbf16>
    %155 = vector.extract_strided_slice %129 {offsets = [0, 0], sizes = [32, 64], strides = [1, 1]} : vector<64x64xbf16> to vector<32x64xbf16>
    %cst_40 = arith.constant dense<0.000000e+00> : vector<33x64xf32>
    %156 = tpu.matmul %154, %155, %cst_40 {dimension_numbers = #tpu.dot_dimension_numbers<[1], [0], [0], [1], [0, 0, 1, 1], [], []>} : vector<33x32xbf16>, vector<32x64xbf16>, vector<33x64xf32> -> vector<33x64xf32>
    %157 = arith.addf %132, %156 : vector<33x64xf32>
    %158 = vector.extract_strided_slice %30 {offsets = [0, 32], sizes = [33, 32], strides = [1, 1]} : vector<33x64xf32> to vector<33x32xf32>
    %cst_41 = arith.constant 0.176776692 : f32
    %159 = vector.broadcast %cst_41 : f32 to vector<33x32xf32>
    %160 = arith.mulf %158, %159 : vector<33x32xf32>
    %161 = vector.extract_strided_slice %79 {offsets = [0, 32], sizes = [9, 32], strides = [1, 1]} : vector<9x64xf32> to vector<9x32xf32>
    %162 = vector.extract_strided_slice %128 {offsets = [0, 32], sizes = [9, 32], strides = [1, 1]} : vector<9x64xf32> to vector<9x32xf32>
    %163 = arith.truncf %160 : vector<33x32xf32> to vector<33x32xbf16>
    %164 = arith.truncf %161 : vector<9x32xf32> to vector<9x32xbf16>
    %cst_42 = arith.constant dense<0.000000e+00> : vector<33x9xf32>
    %165 = tpu.matmul %163, %164, %cst_42 {dimension_numbers = #tpu.dot_dimension_numbers<[1], [1], [0], [0], [0, 0, 1, 0], [], []>} : vector<33x32xbf16>, vector<9x32xbf16>, vector<33x9xf32> -> vector<33x9xf32>
    %cst_43 = arith.constant dense<0xFF800000> : vector<33xf32>
    %166 = vector.multi_reduction <maximumf>, %165, %cst_43 [1] : vector<33x9xf32> to vector<33xf32>
    %167 = vector.shape_cast %166 : vector<33xf32> to vector<33x1xf32>
    %168 = vector.broadcast %167 : vector<33x1xf32> to vector<33x9xf32>
    %169 = arith.subf %165, %168 : vector<33x9xf32>
    %170 = math.exp %169 : vector<33x9xf32>
    %cst_44 = arith.constant dense<0.000000e+00> : vector<33xf32>
    %171 = vector.multi_reduction <add>, %170, %cst_44 [1] : vector<33x9xf32> to vector<33xf32>
    %172 = vector.shape_cast %171 : vector<33xf32> to vector<33x1xf32>
    %173 = tpu.reciprocal %172 {approx = true} : vector<33x1xf32> -> vector<33x1xf32>
    %174 = vector.broadcast %173 : vector<33x1xf32> to vector<33x9xf32>
    %175 = arith.mulf %170, %174 : vector<33x9xf32>
    %176 = arith.truncf %175 : vector<33x9xf32> to vector<33x9xbf16>
    %177 = arith.truncf %162 : vector<9x32xf32> to vector<9x32xbf16>
    %cst_45 = arith.constant dense<0.000000e+00> : vector<33x32xf32>
    %178 = tpu.matmul %176, %177, %cst_45 {dimension_numbers = #tpu.dot_dimension_numbers<[1], [0], [0], [1], [0, 0, 1, 1], [], []>} : vector<33x9xbf16>, vector<9x32xbf16>, vector<33x32xf32> -> vector<33x32xf32>
    %179 = arith.truncf %178 : vector<33x32xf32> to vector<33x32xbf16>
    %180 = vector.extract_strided_slice %129 {offsets = [32, 0], sizes = [32, 64], strides = [1, 1]} : vector<64x64xbf16> to vector<32x64xbf16>
    %cst_46 = arith.constant dense<0.000000e+00> : vector<33x64xf32>
    %181 = tpu.matmul %179, %180, %cst_46 {dimension_numbers = #tpu.dot_dimension_numbers<[1], [0], [0], [1], [0, 0, 1, 1], [], []>} : vector<33x32xbf16>, vector<32x64xbf16>, vector<33x64xf32> -> vector<33x64xf32>
    %182 = arith.addf %157, %181 : vector<33x64xf32>
    %c0_47 = arith.constant 0 : index
    %c0_48 = arith.constant 0 : index
    %183 = vector.load %arg8[%c0_47, %c0_48] : memref<1x64xf32, #tpu.memory_space<vmem>>, vector<1x64xf32>
    %c0_49 = arith.constant 0 : index
    %c0_50 = arith.constant 0 : index
    %184 = vector.load %arg9[%c0_49, %c0_50] : memref<1x64xf32, #tpu.memory_space<vmem>>, vector<1x64xf32>
    %cst_51 = arith.constant dense<0.000000e+00> : vector<33xf32>
    %185 = vector.multi_reduction <add>, %182, %cst_51 [1] : vector<33x64xf32> to vector<33xf32>
    %186 = vector.shape_cast %185 : vector<33xf32> to vector<33x1xf32>
    %cst_52 = arith.constant 6.400000e+01 : f32
    %187 = vector.broadcast %cst_52 : f32 to vector<33x1xf32>
    %188 = arith.divf %186, %187 : vector<33x1xf32>
    %189 = vector.broadcast %188 : vector<33x1xf32> to vector<33x64xf32>
    %190 = arith.subf %182, %189 : vector<33x64xf32>
    %191 = arith.mulf %190, %190 : vector<33x64xf32>
    %cst_53 = arith.constant dense<0.000000e+00> : vector<33xf32>
    %192 = vector.multi_reduction <add>, %191, %cst_53 [1] : vector<33x64xf32> to vector<33xf32>
    %193 = vector.shape_cast %192 : vector<33xf32> to vector<33x1xf32>
    %cst_54 = arith.constant 6.400000e+01 : f32
    %194 = vector.broadcast %cst_54 : f32 to vector<33x1xf32>
    %195 = arith.divf %193, %194 : vector<33x1xf32>
    %cst_55 = arith.constant 9.99999997E-7 : f32
    %196 = vector.broadcast %cst_55 : f32 to vector<33x1xf32>
    %197 = arith.addf %195, %196 : vector<33x1xf32>
    %198 = math.rsqrt %197 : vector<33x1xf32>
    %199 = vector.broadcast %198 : vector<33x1xf32> to vector<33x64xf32>
    %200 = arith.mulf %190, %199 : vector<33x64xf32>
    %201 = vector.broadcast %183 : vector<1x64xf32> to vector<33x64xf32>
    %202 = arith.mulf %200, %201 : vector<33x64xf32>
    %203 = vector.broadcast %184 : vector<1x64xf32> to vector<33x64xf32>
    %204 = arith.addf %202, %203 : vector<33x64xf32>
    %205 = arith.truncf %204 : vector<33x64xf32> to vector<33x64xbf16>
    %c0_56 = arith.constant 0 : index
    %c0_57 = arith.constant 0 : index
    %206 = vector.load %arg10[%c0_56, %c0_57] : memref<64x256xbf16, #tpu.memory_space<vmem>>, vector<64x256xbf16>
    %cst_58 = arith.constant dense<0.000000e+00> : vector<33x256xf32>
    %207 = tpu.matmul %205, %206, %cst_58 {dimension_numbers = #tpu.dot_dimension_numbers<[1], [0], [0], [1], [0, 0, 1, 1], [], []>} : vector<33x64xbf16>, vector<64x256xbf16>, vector<33x256xf32> -> vector<33x256xf32>
    %c0_59 = arith.constant 0 : index
    %c0_60 = arith.constant 0 : index
    %208 = vector.load %arg11[%c0_59, %c0_60] : memref<1x256xf32, #tpu.memory_space<vmem>>, vector<1x256xf32>
    %209 = vector.broadcast %208 : vector<1x256xf32> to vector<33x256xf32>
    %210 = arith.addf %207, %209 : vector<33x256xf32>
    %cst_61 = arith.constant 5.000000e-01 : f32
    %211 = vector.broadcast %cst_61 : f32 to vector<33x256xf32>
    %212 = arith.mulf %211, %210 : vector<33x256xf32>
    %cst_62 = arith.constant 4.471500e-02 : f32
    %213 = vector.broadcast %cst_62 : f32 to vector<33x256xf32>
    %214 = arith.mulf %213, %210 : vector<33x256xf32>
    %215 = arith.mulf %214, %210 : vector<33x256xf32>
    %216 = arith.mulf %215, %210 : vector<33x256xf32>
    %217 = arith.addf %210, %216 : vector<33x256xf32>
    %cst_63 = arith.constant 0.797884583 : f32
    %218 = vector.broadcast %cst_63 : f32 to vector<33x256xf32>
    %219 = arith.mulf %218, %217 : vector<33x256xf32>
    %220 = math.tanh %219 : vector<33x256xf32>
    %cst_64 = arith.constant 1.000000e+00 : f32
    %221 = vector.broadcast %cst_64 : f32 to vector<33x256xf32>
    %222 = arith.addf %221, %220 : vector<33x256xf32>
    %223 = arith.mulf %212, %222 : vector<33x256xf32>
    %224 = arith.truncf %223 : vector<33x256xf32> to vector<33x256xbf16>
    %c0_65 = arith.constant 0 : index
    %c0_66 = arith.constant 0 : index
    %225 = vector.load %arg12[%c0_65, %c0_66] : memref<256x64xbf16, #tpu.memory_space<vmem>>, vector<256x64xbf16>
    %cst_67 = arith.constant dense<0.000000e+00> : vector<33x64xf32>
    %226 = tpu.matmul %224, %225, %cst_67 {dimension_numbers = #tpu.dot_dimension_numbers<[1], [0], [0], [1], [0, 0, 1, 1], [], []>} : vector<33x256xbf16>, vector<256x64xbf16>, vector<33x64xf32> -> vector<33x64xf32>
    %227 = arith.addf %182, %226 : vector<33x64xf32>
    %c0_68 = arith.constant 0 : index
    %c0_69 = arith.constant 0 : index
    %228 = vector.load %arg13[%c0_68, %c0_69] : memref<1x64xf32, #tpu.memory_space<vmem>>, vector<1x64xf32>
    %229 = vector.broadcast %228 : vector<1x64xf32> to vector<33x64xf32>
    %230 = arith.addf %227, %229 : vector<33x64xf32>
    %c0_70 = arith.constant 0 : index
    %c0_71 = arith.constant 0 : index
    %c0_72 = arith.constant 0 : index
    %231 = vector.load %arg14[%c0_70, %c0_71, %c0_72] : memref<1x33x64xf32, #tpu.memory_space<vmem>>, vector<1x33x64xf32>
    %232 = vector.shape_cast %231 : vector<1x33x64xf32> to vector<33x64xf32>
    %233 = vector.shape_cast %230 : vector<33x64xf32> to vector<1x33x64xf32>
    tpu.vector_store %arg14[%c0_70, %c0_71, %c0_72], %233 {strides = array<i32>} : memref<1x33x64xf32, #tpu.memory_space<vmem>>, vector<1x33x64xf32>,
    return
  }
  func.func @transform_0(%arg0: i32) -> (i32, i32, i32) {
    %c0_i32 = arith.constant 0 : i32
    %c0_i32_0 = arith.constant 0 : i32
    %c0_i32_1 = arith.constant 0 : i32
    return %arg0, %c0_i32, %c0_i32_0 : i32, i32, i32
  }
  func.func @transform_1(%arg0: i32) -> (i32, i32) {
    %c0_i32 = arith.constant 0 : i32
    %c0_i32_0 = arith.constant 0 : i32
    %c0_i32_1 = arith.constant 0 : i32
    return %c0_i32, %c0_i32_0 : i32, i32
  }
  func.func @transform_2(%arg0: i32) -> (i32, i32) {
    %c0_i32 = arith.constant 0 : i32
    %c0_i32_0 = arith.constant 0 : i32
    %c0_i32_1 = arith.constant 0 : i32
    return %c0_i32, %c0_i32_0 : i32, i32
  }
  func.func @transform_3(%arg0: i32) -> (i32, i32) {
    %c0_i32 = arith.constant 0 : i32
    %c0_i32_0 = arith.constant 0 : i32
    %c0_i32_1 = arith.constant 0 : i32
    return %c0_i32, %c0_i32_0 : i32, i32
  }
  func.func @transform_4(%arg0: i32) -> (i32, i32) {
    %c0_i32 = arith.constant 0 : i32
    %c0_i32_0 = arith.constant 0 : i32
    %c0_i32_1 = arith.constant 0 : i32
    return %c0_i32, %c0_i32_0 : i32, i32
  }
  func.func @transform_5(%arg0: i32) -> (i32, i32) {
    %c0_i32 = arith.constant 0 : i32
    %c0_i32_0 = arith.constant 0 : i32
    %c0_i32_1 = arith.constant 0 : i32
    return %c0_i32, %c0_i32_0 : i32, i32
  }
  func.func @transform_6(%arg0: i32) -> (i32, i32) {
    %c0_i32 = arith.constant 0 : i32
    %c0_i32_0 = arith.constant 0 : i32
    %c0_i32_1 = arith.constant 0 : i32
    return %c0_i32, %c0_i32_0 : i32, i32
  }
  func.func @transform_7(%arg0: i32) -> (i32, i32) {
    %c0_i32 = arith.constant 0 : i32
    %c0_i32_0 = arith.constant 0 : i32
    %c0_i32_1 = arith.constant 0 : i32
    return %c0_i32, %c0_i32_0 : i32, i32
  }
  func.func @transform_8(%arg0: i32) -> (i32, i32) {
    %c0_i32 = arith.constant 0 : i32
    %c0_i32_0 = arith.constant 0 : i32
    %c0_i32_1 = arith.constant 0 : i32
    return %c0_i32, %c0_i32_0 : i32, i32
  }
  func.func @transform_9(%arg0: i32) -> (i32, i32) {
    %c0_i32 = arith.constant 0 : i32
    %c0_i32_0 = arith.constant 0 : i32
    %c0_i32_1 = arith.constant 0 : i32
    return %c0_i32, %c0_i32_0 : i32, i32
  }
  func.func @transform_10(%arg0: i32) -> (i32, i32) {
    %c0_i32 = arith.constant 0 : i32
    %c0_i32_0 = arith.constant 0 : i32
    %c0_i32_1 = arith.constant 0 : i32
    return %c0_i32, %c0_i32_0 : i32, i32
  }
  func.func @transform_11(%arg0: i32) -> (i32, i32) {
    %c0_i32 = arith.constant 0 : i32
    %c0_i32_0 = arith.constant 0 : i32
    %c0_i32_1 = arith.constant 0 : i32
    return %c0_i32, %c0_i32_0 : i32, i32
  }
  func.func @transform_12(%arg0: i32) -> (i32, i32) {
    %c0_i32 = arith.constant 0 : i32
    %c0_i32_0 = arith.constant 0 : i32
    %c0_i32_1 = arith.constant 0 : i32
    return %c0_i32, %c0_i32_0 : i32, i32
  }
  func.func @transform_13(%arg0: i32) -> (i32, i32, i32) {
    %c0_i32 = arith.constant 0 : i32
    %c0_i32_0 = arith.constant 0 : i32
    %c0_i32_1 = arith.constant 0 : i32
    return %arg0, %c0_i32, %c0_i32_0 : i32, i32, i32
  }
}

module attributes {stable_mosaic.version = 11 : i64} {
  func.func @_block_kernel(%arg0: i32, %arg1: memref<1x33x64xf32, #tpu.memory_space<vmem>>, %arg2: memref<1x64xf32, #tpu.memory_space<vmem>>, %arg3: memref<1x64xf32, #tpu.memory_space<vmem>>, %arg4: memref<64x192xbf16, #tpu.memory_space<vmem>>, %arg5: memref<1x192xf32, #tpu.memory_space<vmem>>, %arg6: memref<64x64xbf16, #tpu.memory_space<vmem>>, %arg7: memref<1x64xf32, #tpu.memory_space<vmem>>, %arg8: memref<1x64xf32, #tpu.memory_space<vmem>>, %arg9: memref<1x64xf32, #tpu.memory_space<vmem>>, %arg10: memref<64x256xbf16, #tpu.memory_space<vmem>>, %arg11: memref<1x256xf32, #tpu.memory_space<vmem>>, %arg12: memref<256x64xbf16, #tpu.memory_space<vmem>>, %arg13: memref<1x64xf32, #tpu.memory_space<vmem>>, %arg14: memref<1x9x64xf32, #tpu.memory_space<vmem>>) attributes {dimension_semantics = [#tpu.dimension_semantics<parallel>], iteration_bounds = array<i64: 2>, scalar_prefetch = 0 : i64, scratch_operands = 0 : i64, tpu.core_type = #tpu.core_type<tc>, window_params = [{transform_indices = @transform_0, window_bounds = array<i64: 1, 33, 64>}, {pipeline_mode = #tpu.pipeline_mode<synchronous>, transform_indices = @transform_1, window_bounds = array<i64: 1, 64>}, {pipeline_mode = #tpu.pipeline_mode<synchronous>, transform_indices = @transform_2, window_bounds = array<i64: 1, 64>}, {pipeline_mode = #tpu.pipeline_mode<synchronous>, transform_indices = @transform_3, window_bounds = array<i64: 64, 192>}, {pipeline_mode = #tpu.pipeline_mode<synchronous>, transform_indices = @transform_4, window_bounds = array<i64: 1, 192>}, {pipeline_mode = #tpu.pipeline_mode<synchronous>, transform_indices = @transform_5, window_bounds = array<i64: 64, 64>}, {pipeline_mode = #tpu.pipeline_mode<synchronous>, transform_indices = @transform_6, window_bounds = array<i64: 1, 64>}, {pipeline_mode = #tpu.pipeline_mode<synchronous>, transform_indices = @transform_7, window_bounds = array<i64: 1, 64>}, {pipeline_mode = #tpu.pipeline_mode<synchronous>, transform_indices = @transform_8, window_bounds = array<i64: 1, 64>}, {pipeline_mode = #tpu.pipeline_mode<synchronous>, transform_indices = @transform_9, window_bounds = array<i64: 64, 256>}, {pipeline_mode = #tpu.pipeline_mode<synchronous>, transform_indices = @transform_10, window_bounds = array<i64: 1, 256>}, {pipeline_mode = #tpu.pipeline_mode<synchronous>, transform_indices = @transform_11, window_bounds = array<i64: 256, 64>}, {pipeline_mode = #tpu.pipeline_mode<synchronous>, transform_indices = @transform_12, window_bounds = array<i64: 1, 64>}, {transform_indices = @transform_13, window_bounds = array<i64: 1, 9, 64>}]} {
    %c0 = arith.constant 0 : index
    %c0_0 = arith.constant 0 : index
    %c0_1 = arith.constant 0 : index
    %0 = vector.load %arg1[%c0, %c0_0, %c0_1] : memref<1x33x64xf32, #tpu.memory_space<vmem>>, vector<1x33x64xf32>
    %1 = vector.shape_cast %0 : vector<1x33x64xf32> to vector<33x64xf32>
    %c0_2 = arith.constant 0 : index
    %c0_3 = arith.constant 0 : index
    %2 = vector.load %arg2[%c0_2, %c0_3] : memref<1x64xf32, #tpu.memory_space<vmem>>, vector<1x64xf32>
    %c0_4 = arith.constant 0 : index
    %c0_5 = arith.constant 0 : index
    %3 = vector.load %arg3[%c0_4, %c0_5] : memref<1x64xf32, #tpu.memory_space<vmem>>, vector<1x64xf32>
    %cst = arith.constant dense<0.000000e+00> : vector<33xf32>
    %4 = vector.multi_reduction <add>, %1, %cst [1] : vector<33x64xf32> to vector<33xf32>
    %5 = vector.shape_cast %4 : vector<33xf32> to vector<33x1xf32>
    %cst_6 = arith.constant 6.400000e+01 : f32
    %6 = vector.broadcast %cst_6 : f32 to vector<33x1xf32>
    %7 = arith.divf %5, %6 : vector<33x1xf32>
    %8 = vector.broadcast %7 : vector<33x1xf32> to vector<33x64xf32>
    %9 = arith.subf %1, %8 : vector<33x64xf32>
    %10 = arith.mulf %9, %9 : vector<33x64xf32>
    %cst_7 = arith.constant dense<0.000000e+00> : vector<33xf32>
    %11 = vector.multi_reduction <add>, %10, %cst_7 [1] : vector<33x64xf32> to vector<33xf32>
    %12 = vector.shape_cast %11 : vector<33xf32> to vector<33x1xf32>
    %cst_8 = arith.constant 6.400000e+01 : f32
    %13 = vector.broadcast %cst_8 : f32 to vector<33x1xf32>
    %14 = arith.divf %12, %13 : vector<33x1xf32>
    %cst_9 = arith.constant 9.99999997E-7 : f32
    %15 = vector.broadcast %cst_9 : f32 to vector<33x1xf32>
    %16 = arith.addf %14, %15 : vector<33x1xf32>
    %17 = math.rsqrt %16 : vector<33x1xf32>
    %18 = vector.broadcast %17 : vector<33x1xf32> to vector<33x64xf32>
    %19 = arith.mulf %9, %18 : vector<33x64xf32>
    %20 = vector.broadcast %2 : vector<1x64xf32> to vector<33x64xf32>
    %21 = arith.mulf %19, %20 : vector<33x64xf32>
    %22 = vector.broadcast %3 : vector<1x64xf32> to vector<33x64xf32>
    %23 = arith.addf %21, %22 : vector<33x64xf32>
    %24 = arith.truncf %23 : vector<33x64xf32> to vector<33x64xbf16>
    %c0_10 = arith.constant 0 : index
    %c0_11 = arith.constant 0 : index
    %25 = vector.load %arg4[%c0_10, %c0_11] : memref<64x192xbf16, #tpu.memory_space<vmem>>, vector<64x192xbf16>
    %cst_12 = arith.constant dense<0.000000e+00> : vector<33x192xf32>
    %26 = tpu.matmul %24, %25, %cst_12 {dimension_numbers = #tpu.dot_dimension_numbers<[1], [0], [0], [1], [0, 0, 1, 1], [], []>} : vector<33x64xbf16>, vector<64x192xbf16>, vector<33x192xf32> -> vector<33x192xf32>
    %c0_13 = arith.constant 0 : index
    %c0_14 = arith.constant 0 : index
    %27 = vector.load %arg5[%c0_13, %c0_14] : memref<1x192xf32, #tpu.memory_space<vmem>>, vector<1x192xf32>
    %28 = vector.broadcast %27 : vector<1x192xf32> to vector<33x192xf32>
    %29 = arith.addf %26, %28 : vector<33x192xf32>
    %30 = vector.extract_strided_slice %29 {offsets = [0, 0], sizes = [33, 64], strides = [1, 1]} : vector<33x192xf32> to vector<33x64xf32>
    %31 = vector.extract_strided_slice %30 {offsets = [0, 0], sizes = [1, 64], strides = [1, 1]} : vector<33x64xf32> to vector<1x64xf32>
    %32 = vector.extract_strided_slice %30 {offsets = [1, 0], sizes = [16, 64], strides = [1, 1]} : vector<33x64xf32> to vector<16x64xf32>
    %33 = vector.extract_strided_slice %30 {offsets = [17, 0], sizes = [16, 64], strides = [1, 1]} : vector<33x64xf32> to vector<16x64xf32>
    %34 = arith.maximumf %32, %33 : vector<16x64xf32>
    %35 = vector.extract_strided_slice %34 {offsets = [0, 0], sizes = [4, 64], strides = [1, 1]} : vector<16x64xf32> to vector<4x64xf32>
    %36 = vector.extract_strided_slice %34 {offsets = [4, 0], sizes = [4, 64], strides = [1, 1]} : vector<16x64xf32> to vector<4x64xf32>
    %37 = arith.maximumf %35, %36 : vector<4x64xf32>
    %38 = vector.extract_strided_slice %37 {offsets = [0, 0], sizes = [2, 64], strides = [1, 1]} : vector<4x64xf32> to vector<2x64xf32>
    %cst_15 = arith.constant dense<0xFF800000> : vector<64xf32>
    %39 = vector.multi_reduction <maximumf>, %38, %cst_15 [0] : vector<2x64xf32> to vector<64xf32>
    %40 = vector.shape_cast %39 : vector<64xf32> to vector<1x64xf32>
    %41 = vector.extract_strided_slice %37 {offsets = [1, 0], sizes = [3, 64], strides = [1, 1]} : vector<4x64xf32> to vector<3x64xf32>
    %cst_16 = arith.constant dense<0xFF800000> : vector<64xf32>
    %42 = vector.multi_reduction <maximumf>, %41, %cst_16 [0] : vector<3x64xf32> to vector<64xf32>
    %43 = vector.shape_cast %42 : vector<64xf32> to vector<1x64xf32>
    %44 = vector.extract_strided_slice %34 {offsets = [4, 0], sizes = [4, 64], strides = [1, 1]} : vector<16x64xf32> to vector<4x64xf32>
    %45 = vector.extract_strided_slice %34 {offsets = [8, 0], sizes = [4, 64], strides = [1, 1]} : vector<16x64xf32> to vector<4x64xf32>
    %46 = arith.maximumf %44, %45 : vector<4x64xf32>
    %47 = vector.extract_strided_slice %34 {offsets = [12, 0], sizes = [4, 64], strides = [1, 1]} : vector<16x64xf32> to vector<4x64xf32>
    %48 = arith.maximumf %46, %47 : vector<4x64xf32>
    %49 = vector.extract_strided_slice %48 {offsets = [0, 0], sizes = [2, 64], strides = [1, 1]} : vector<4x64xf32> to vector<2x64xf32>
    %cst_17 = arith.constant dense<0xFF800000> : vector<64xf32>
    %50 = vector.multi_reduction <maximumf>, %49, %cst_17 [0] : vector<2x64xf32> to vector<64xf32>
    %51 = vector.shape_cast %50 : vector<64xf32> to vector<1x64xf32>
    %52 = vector.extract_strided_slice %48 {offsets = [1, 0], sizes = [3, 64], strides = [1, 1]} : vector<4x64xf32> to vector<3x64xf32>
    %cst_18 = arith.constant dense<0xFF800000> : vector<64xf32>
    %53 = vector.multi_reduction <maximumf>, %52, %cst_18 [0] : vector<3x64xf32> to vector<64xf32>
    %54 = vector.shape_cast %53 : vector<64xf32> to vector<1x64xf32>
    %55 = vector.extract_strided_slice %30 {offsets = [1, 0], sizes = [16, 64], strides = [1, 1]} : vector<33x64xf32> to vector<16x64xf32>
    %56 = vector.extract_strided_slice %30 {offsets = [17, 0], sizes = [16, 64], strides = [1, 1]} : vector<33x64xf32> to vector<16x64xf32>
    %57 = arith.maximumf %55, %56 : vector<16x64xf32>
    %58 = vector.extract_strided_slice %57 {offsets = [0, 0], sizes = [4, 64], strides = [1, 1]} : vector<16x64xf32> to vector<4x64xf32>
    %59 = vector.extract_strided_slice %57 {offsets = [4, 0], sizes = [4, 64], strides = [1, 1]} : vector<16x64xf32> to vector<4x64xf32>
    %60 = arith.maximumf %58, %59 : vector<4x64xf32>
    %61 = vector.extract_strided_slice %60 {offsets = [0, 0], sizes = [2, 64], strides = [1, 1]} : vector<4x64xf32> to vector<2x64xf32>
    %cst_19 = arith.constant dense<0xFF800000> : vector<64xf32>
    %62 = vector.multi_reduction <maximumf>, %61, %cst_19 [0] : vector<2x64xf32> to vector<64xf32>
    %63 = vector.shape_cast %62 : vector<64xf32> to vector<1x64xf32>
    %64 = vector.extract_strided_slice %60 {offsets = [1, 0], sizes = [3, 64], strides = [1, 1]} : vector<4x64xf32> to vector<3x64xf32>
    %cst_20 = arith.constant dense<0xFF800000> : vector<64xf32>
    %65 = vector.multi_reduction <maximumf>, %64, %cst_20 [0] : vector<3x64xf32> to vector<64xf32>
    %66 = vector.shape_cast %65 : vector<64xf32> to vector<1x64xf32>
    %67 = vector.extract_strided_slice %57 {offsets = [4, 0], sizes = [4, 64], strides = [1, 1]} : vector<16x64xf32> to vector<4x64xf32>
    %68 = vector.extract_strided_slice %57 {offsets = [8, 0], sizes = [4, 64], strides = [1, 1]} : vector<16x64xf32> to vector<4x64xf32>
    %69 = arith.maximumf %67, %68 : vector<4x64xf32>
    %70 = vector.extract_strided_slice %57 {offsets = [12, 0], sizes = [4, 64], strides = [1, 1]} : vector<16x64xf32> to vector<4x64xf32>
    %71 = arith.maximumf %69, %70 : vector<4x64xf32>
    %72 = vector.extract_strided_slice %71 {offsets = [0, 0], sizes = [2, 64], strides = [1, 1]} : vector<4x64xf32> to vector<2x64xf32>
    %cst_21 = arith.constant dense<0xFF800000> : vector<64xf32>
    %73 = vector.multi_reduction <maximumf>, %72, %cst_21 [0] : vector<2x64xf32> to vector<64xf32>
    %74 = vector.shape_cast %73 : vector<64xf32> to vector<1x64xf32>
    %75 = vector.extract_strided_slice %71 {offsets = [1, 0], sizes = [3, 64], strides = [1, 1]} : vector<4x64xf32> to vector<3x64xf32>
    %cst_22 = arith.constant dense<0xFF800000> : vector<64xf32>
    %76 = vector.multi_reduction <maximumf>, %75, %cst_22 [0] : vector<3x64xf32> to vector<64xf32>
    %77 = vector.shape_cast %76 : vector<64xf32> to vector<1x64xf32>
    %78 = tpu.concatenate %31, %40, %43, %51, %54, %63, %66, %74, %77 in 0 : vector<1x64xf32>, vector<1x64xf32>, vector<1x64xf32>, vector<1x64xf32>, vector<1x64xf32>, vector<1x64xf32>, vector<1x64xf32>, vector<1x64xf32>, vector<1x64xf32> -> vector<9x64xf32>
    %79 = vector.extract_strided_slice %29 {offsets = [0, 64], sizes = [33, 64], strides = [1, 1]} : vector<33x192xf32> to vector<33x64xf32>
    %80 = vector.extract_strided_slice %79 {offsets = [0, 0], sizes = [1, 64], strides = [1, 1]} : vector<33x64xf32> to vector<1x64xf32>
    %81 = vector.extract_strided_slice %79 {offsets = [1, 0], sizes = [16, 64], strides = [1, 1]} : vector<33x64xf32> to vector<16x64xf32>
    %82 = vector.extract_strided_slice %79 {offsets = [17, 0], sizes = [16, 64], strides = [1, 1]} : vector<33x64xf32> to vector<16x64xf32>
    %83 = arith.maximumf %81, %82 : vector<16x64xf32>
    %84 = vector.extract_strided_slice %83 {offsets = [0, 0], sizes = [4, 64], strides = [1, 1]} : vector<16x64xf32> to vector<4x64xf32>
    %85 = vector.extract_strided_slice %83 {offsets = [4, 0], sizes = [4, 64], strides = [1, 1]} : vector<16x64xf32> to vector<4x64xf32>
    %86 = arith.maximumf %84, %85 : vector<4x64xf32>
    %87 = vector.extract_strided_slice %86 {offsets = [0, 0], sizes = [2, 64], strides = [1, 1]} : vector<4x64xf32> to vector<2x64xf32>
    %cst_23 = arith.constant dense<0xFF800000> : vector<64xf32>
    %88 = vector.multi_reduction <maximumf>, %87, %cst_23 [0] : vector<2x64xf32> to vector<64xf32>
    %89 = vector.shape_cast %88 : vector<64xf32> to vector<1x64xf32>
    %90 = vector.extract_strided_slice %86 {offsets = [0, 0], sizes = [3, 64], strides = [1, 1]} : vector<4x64xf32> to vector<3x64xf32>
    %cst_24 = arith.constant dense<0xFF800000> : vector<64xf32>
    %91 = vector.multi_reduction <maximumf>, %90, %cst_24 [0] : vector<3x64xf32> to vector<64xf32>
    %92 = vector.shape_cast %91 : vector<64xf32> to vector<1x64xf32>
    %93 = vector.extract_strided_slice %86 {offsets = [1, 0], sizes = [3, 64], strides = [1, 1]} : vector<4x64xf32> to vector<3x64xf32>
    %cst_25 = arith.constant dense<0xFF800000> : vector<64xf32>
    %94 = vector.multi_reduction <maximumf>, %93, %cst_25 [0] : vector<3x64xf32> to vector<64xf32>
    %95 = vector.shape_cast %94 : vector<64xf32> to vector<1x64xf32>
    %96 = vector.extract_strided_slice %86 {offsets = [2, 0], sizes = [2, 64], strides = [1, 1]} : vector<4x64xf32> to vector<2x64xf32>
    %cst_26 = arith.constant dense<0xFF800000> : vector<64xf32>
    %97 = vector.multi_reduction <maximumf>, %96, %cst_26 [0] : vector<2x64xf32> to vector<64xf32>
    %98 = vector.shape_cast %97 : vector<64xf32> to vector<1x64xf32>
    %99 = vector.extract_strided_slice %83 {offsets = [0, 0], sizes = [4, 64], strides = [1, 1]} : vector<16x64xf32> to vector<4x64xf32>
    %100 = vector.extract_strided_slice %83 {offsets = [4, 0], sizes = [4, 64], strides = [1, 1]} : vector<16x64xf32> to vector<4x64xf32>
    %101 = arith.maximumf %99, %100 : vector<4x64xf32>
    %102 = vector.extract_strided_slice %83 {offsets = [8, 0], sizes = [4, 64], strides = [1, 1]} : vector<16x64xf32> to vector<4x64xf32>
    %103 = arith.maximumf %101, %102 : vector<4x64xf32>
    %104 = vector.extract_strided_slice %103 {offsets = [0, 0], sizes = [2, 64], strides = [1, 1]} : vector<4x64xf32> to vector<2x64xf32>
    %cst_27 = arith.constant dense<0xFF800000> : vector<64xf32>
    %105 = vector.multi_reduction <maximumf>, %104, %cst_27 [0] : vector<2x64xf32> to vector<64xf32>
    %106 = vector.shape_cast %105 : vector<64xf32> to vector<1x64xf32>
    %107 = vector.extract_strided_slice %103 {offsets = [0, 0], sizes = [3, 64], strides = [1, 1]} : vector<4x64xf32> to vector<3x64xf32>
    %cst_28 = arith.constant dense<0xFF800000> : vector<64xf32>
    %108 = vector.multi_reduction <maximumf>, %107, %cst_28 [0] : vector<3x64xf32> to vector<64xf32>
    %109 = vector.shape_cast %108 : vector<64xf32> to vector<1x64xf32>
    %110 = vector.extract_strided_slice %103 {offsets = [1, 0], sizes = [3, 64], strides = [1, 1]} : vector<4x64xf32> to vector<3x64xf32>
    %cst_29 = arith.constant dense<0xFF800000> : vector<64xf32>
    %111 = vector.multi_reduction <maximumf>, %110, %cst_29 [0] : vector<3x64xf32> to vector<64xf32>
    %112 = vector.shape_cast %111 : vector<64xf32> to vector<1x64xf32>
    %113 = vector.extract_strided_slice %103 {offsets = [2, 0], sizes = [2, 64], strides = [1, 1]} : vector<4x64xf32> to vector<2x64xf32>
    %cst_30 = arith.constant dense<0xFF800000> : vector<64xf32>
    %114 = vector.multi_reduction <maximumf>, %113, %cst_30 [0] : vector<2x64xf32> to vector<64xf32>
    %115 = vector.shape_cast %114 : vector<64xf32> to vector<1x64xf32>
    %116 = vector.extract_strided_slice %83 {offsets = [4, 0], sizes = [4, 64], strides = [1, 1]} : vector<16x64xf32> to vector<4x64xf32>
    %117 = vector.extract_strided_slice %83 {offsets = [8, 0], sizes = [4, 64], strides = [1, 1]} : vector<16x64xf32> to vector<4x64xf32>
    %118 = arith.maximumf %116, %117 : vector<4x64xf32>
    %119 = vector.extract_strided_slice %83 {offsets = [12, 0], sizes = [4, 64], strides = [1, 1]} : vector<16x64xf32> to vector<4x64xf32>
    %120 = arith.maximumf %118, %119 : vector<4x64xf32>
    %121 = vector.extract_strided_slice %120 {offsets = [0, 0], sizes = [2, 64], strides = [1, 1]} : vector<4x64xf32> to vector<2x64xf32>
    %cst_31 = arith.constant dense<0xFF800000> : vector<64xf32>
    %122 = vector.multi_reduction <maximumf>, %121, %cst_31 [0] : vector<2x64xf32> to vector<64xf32>
    %123 = vector.shape_cast %122 : vector<64xf32> to vector<1x64xf32>
    %124 = vector.extract_strided_slice %120 {offsets = [0, 0], sizes = [3, 64], strides = [1, 1]} : vector<4x64xf32> to vector<3x64xf32>
    %cst_32 = arith.constant dense<0xFF800000> : vector<64xf32>
    %125 = vector.multi_reduction <maximumf>, %124, %cst_32 [0] : vector<3x64xf32> to vector<64xf32>
    %126 = vector.shape_cast %125 : vector<64xf32> to vector<1x64xf32>
    %127 = vector.extract_strided_slice %120 {offsets = [1, 0], sizes = [3, 64], strides = [1, 1]} : vector<4x64xf32> to vector<3x64xf32>
    %cst_33 = arith.constant dense<0xFF800000> : vector<64xf32>
    %128 = vector.multi_reduction <maximumf>, %127, %cst_33 [0] : vector<3x64xf32> to vector<64xf32>
    %129 = vector.shape_cast %128 : vector<64xf32> to vector<1x64xf32>
    %130 = vector.extract_strided_slice %120 {offsets = [2, 0], sizes = [2, 64], strides = [1, 1]} : vector<4x64xf32> to vector<2x64xf32>
    %cst_34 = arith.constant dense<0xFF800000> : vector<64xf32>
    %131 = vector.multi_reduction <maximumf>, %130, %cst_34 [0] : vector<2x64xf32> to vector<64xf32>
    %132 = vector.shape_cast %131 : vector<64xf32> to vector<1x64xf32>
    %133 = vector.extract_strided_slice %83 {offsets = [8, 0], sizes = [4, 64], strides = [1, 1]} : vector<16x64xf32> to vector<4x64xf32>
    %134 = vector.extract_strided_slice %83 {offsets = [12, 0], sizes = [4, 64], strides = [1, 1]} : vector<16x64xf32> to vector<4x64xf32>
    %135 = arith.maximumf %133, %134 : vector<4x64xf32>
    %136 = vector.extract_strided_slice %135 {offsets = [0, 0], sizes = [2, 64], strides = [1, 1]} : vector<4x64xf32> to vector<2x64xf32>
    %cst_35 = arith.constant dense<0xFF800000> : vector<64xf32>
    %137 = vector.multi_reduction <maximumf>, %136, %cst_35 [0] : vector<2x64xf32> to vector<64xf32>
    %138 = vector.shape_cast %137 : vector<64xf32> to vector<1x64xf32>
    %139 = vector.extract_strided_slice %135 {offsets = [0, 0], sizes = [3, 64], strides = [1, 1]} : vector<4x64xf32> to vector<3x64xf32>
    %cst_36 = arith.constant dense<0xFF800000> : vector<64xf32>
    %140 = vector.multi_reduction <maximumf>, %139, %cst_36 [0] : vector<3x64xf32> to vector<64xf32>
    %141 = vector.shape_cast %140 : vector<64xf32> to vector<1x64xf32>
    %142 = vector.extract_strided_slice %135 {offsets = [1, 0], sizes = [3, 64], strides = [1, 1]} : vector<4x64xf32> to vector<3x64xf32>
    %cst_37 = arith.constant dense<0xFF800000> : vector<64xf32>
    %143 = vector.multi_reduction <maximumf>, %142, %cst_37 [0] : vector<3x64xf32> to vector<64xf32>
    %144 = vector.shape_cast %143 : vector<64xf32> to vector<1x64xf32>
    %145 = vector.extract_strided_slice %135 {offsets = [2, 0], sizes = [2, 64], strides = [1, 1]} : vector<4x64xf32> to vector<2x64xf32>
    %cst_38 = arith.constant dense<0xFF800000> : vector<64xf32>
    %146 = vector.multi_reduction <maximumf>, %145, %cst_38 [0] : vector<2x64xf32> to vector<64xf32>
    %147 = vector.shape_cast %146 : vector<64xf32> to vector<1x64xf32>
    %148 = vector.extract_strided_slice %79 {offsets = [1, 0], sizes = [16, 64], strides = [1, 1]} : vector<33x64xf32> to vector<16x64xf32>
    %149 = vector.extract_strided_slice %79 {offsets = [17, 0], sizes = [16, 64], strides = [1, 1]} : vector<33x64xf32> to vector<16x64xf32>
    %150 = arith.maximumf %148, %149 : vector<16x64xf32>
    %151 = vector.extract_strided_slice %150 {offsets = [0, 0], sizes = [4, 64], strides = [1, 1]} : vector<16x64xf32> to vector<4x64xf32>
    %152 = vector.extract_strided_slice %150 {offsets = [4, 0], sizes = [4, 64], strides = [1, 1]} : vector<16x64xf32> to vector<4x64xf32>
    %153 = arith.maximumf %151, %152 : vector<4x64xf32>
    %154 = vector.extract_strided_slice %153 {offsets = [0, 0], sizes = [2, 64], strides = [1, 1]} : vector<4x64xf32> to vector<2x64xf32>
    %cst_39 = arith.constant dense<0xFF800000> : vector<64xf32>
    %155 = vector.multi_reduction <maximumf>, %154, %cst_39 [0] : vector<2x64xf32> to vector<64xf32>
    %156 = vector.shape_cast %155 : vector<64xf32> to vector<1x64xf32>
    %157 = vector.extract_strided_slice %153 {offsets = [0, 0], sizes = [3, 64], strides = [1, 1]} : vector<4x64xf32> to vector<3x64xf32>
    %cst_40 = arith.constant dense<0xFF800000> : vector<64xf32>
    %158 = vector.multi_reduction <maximumf>, %157, %cst_40 [0] : vector<3x64xf32> to vector<64xf32>
    %159 = vector.shape_cast %158 : vector<64xf32> to vector<1x64xf32>
    %160 = vector.extract_strided_slice %153 {offsets = [1, 0], sizes = [3, 64], strides = [1, 1]} : vector<4x64xf32> to vector<3x64xf32>
    %cst_41 = arith.constant dense<0xFF800000> : vector<64xf32>
    %161 = vector.multi_reduction <maximumf>, %160, %cst_41 [0] : vector<3x64xf32> to vector<64xf32>
    %162 = vector.shape_cast %161 : vector<64xf32> to vector<1x64xf32>
    %163 = vector.extract_strided_slice %153 {offsets = [2, 0], sizes = [2, 64], strides = [1, 1]} : vector<4x64xf32> to vector<2x64xf32>
    %cst_42 = arith.constant dense<0xFF800000> : vector<64xf32>
    %164 = vector.multi_reduction <maximumf>, %163, %cst_42 [0] : vector<2x64xf32> to vector<64xf32>
    %165 = vector.shape_cast %164 : vector<64xf32> to vector<1x64xf32>
    %166 = vector.extract_strided_slice %150 {offsets = [0, 0], sizes = [4, 64], strides = [1, 1]} : vector<16x64xf32> to vector<4x64xf32>
    %167 = vector.extract_strided_slice %150 {offsets = [4, 0], sizes = [4, 64], strides = [1, 1]} : vector<16x64xf32> to vector<4x64xf32>
    %168 = arith.maximumf %166, %167 : vector<4x64xf32>
    %169 = vector.extract_strided_slice %150 {offsets = [8, 0], sizes = [4, 64], strides = [1, 1]} : vector<16x64xf32> to vector<4x64xf32>
    %170 = arith.maximumf %168, %169 : vector<4x64xf32>
    %171 = vector.extract_strided_slice %170 {offsets = [0, 0], sizes = [2, 64], strides = [1, 1]} : vector<4x64xf32> to vector<2x64xf32>
    %cst_43 = arith.constant dense<0xFF800000> : vector<64xf32>
    %172 = vector.multi_reduction <maximumf>, %171, %cst_43 [0] : vector<2x64xf32> to vector<64xf32>
    %173 = vector.shape_cast %172 : vector<64xf32> to vector<1x64xf32>
    %174 = vector.extract_strided_slice %170 {offsets = [0, 0], sizes = [3, 64], strides = [1, 1]} : vector<4x64xf32> to vector<3x64xf32>
    %cst_44 = arith.constant dense<0xFF800000> : vector<64xf32>
    %175 = vector.multi_reduction <maximumf>, %174, %cst_44 [0] : vector<3x64xf32> to vector<64xf32>
    %176 = vector.shape_cast %175 : vector<64xf32> to vector<1x64xf32>
    %177 = vector.extract_strided_slice %170 {offsets = [1, 0], sizes = [3, 64], strides = [1, 1]} : vector<4x64xf32> to vector<3x64xf32>
    %cst_45 = arith.constant dense<0xFF800000> : vector<64xf32>
    %178 = vector.multi_reduction <maximumf>, %177, %cst_45 [0] : vector<3x64xf32> to vector<64xf32>
    %179 = vector.shape_cast %178 : vector<64xf32> to vector<1x64xf32>
    %180 = vector.extract_strided_slice %170 {offsets = [2, 0], sizes = [2, 64], strides = [1, 1]} : vector<4x64xf32> to vector<2x64xf32>
    %cst_46 = arith.constant dense<0xFF800000> : vector<64xf32>
    %181 = vector.multi_reduction <maximumf>, %180, %cst_46 [0] : vector<2x64xf32> to vector<64xf32>
    %182 = vector.shape_cast %181 : vector<64xf32> to vector<1x64xf32>
    %183 = vector.extract_strided_slice %150 {offsets = [4, 0], sizes = [4, 64], strides = [1, 1]} : vector<16x64xf32> to vector<4x64xf32>
    %184 = vector.extract_strided_slice %150 {offsets = [8, 0], sizes = [4, 64], strides = [1, 1]} : vector<16x64xf32> to vector<4x64xf32>
    %185 = arith.maximumf %183, %184 : vector<4x64xf32>
    %186 = vector.extract_strided_slice %150 {offsets = [12, 0], sizes = [4, 64], strides = [1, 1]} : vector<16x64xf32> to vector<4x64xf32>
    %187 = arith.maximumf %185, %186 : vector<4x64xf32>
    %188 = vector.extract_strided_slice %187 {offsets = [0, 0], sizes = [2, 64], strides = [1, 1]} : vector<4x64xf32> to vector<2x64xf32>
    %cst_47 = arith.constant dense<0xFF800000> : vector<64xf32>
    %189 = vector.multi_reduction <maximumf>, %188, %cst_47 [0] : vector<2x64xf32> to vector<64xf32>
    %190 = vector.shape_cast %189 : vector<64xf32> to vector<1x64xf32>
    %191 = vector.extract_strided_slice %187 {offsets = [0, 0], sizes = [3, 64], strides = [1, 1]} : vector<4x64xf32> to vector<3x64xf32>
    %cst_48 = arith.constant dense<0xFF800000> : vector<64xf32>
    %192 = vector.multi_reduction <maximumf>, %191, %cst_48 [0] : vector<3x64xf32> to vector<64xf32>
    %193 = vector.shape_cast %192 : vector<64xf32> to vector<1x64xf32>
    %194 = vector.extract_strided_slice %187 {offsets = [1, 0], sizes = [3, 64], strides = [1, 1]} : vector<4x64xf32> to vector<3x64xf32>
    %cst_49 = arith.constant dense<0xFF800000> : vector<64xf32>
    %195 = vector.multi_reduction <maximumf>, %194, %cst_49 [0] : vector<3x64xf32> to vector<64xf32>
    %196 = vector.shape_cast %195 : vector<64xf32> to vector<1x64xf32>
    %197 = vector.extract_strided_slice %187 {offsets = [2, 0], sizes = [2, 64], strides = [1, 1]} : vector<4x64xf32> to vector<2x64xf32>
    %cst_50 = arith.constant dense<0xFF800000> : vector<64xf32>
    %198 = vector.multi_reduction <maximumf>, %197, %cst_50 [0] : vector<2x64xf32> to vector<64xf32>
    %199 = vector.shape_cast %198 : vector<64xf32> to vector<1x64xf32>
    %200 = vector.extract_strided_slice %150 {offsets = [8, 0], sizes = [4, 64], strides = [1, 1]} : vector<16x64xf32> to vector<4x64xf32>
    %201 = vector.extract_strided_slice %150 {offsets = [12, 0], sizes = [4, 64], strides = [1, 1]} : vector<16x64xf32> to vector<4x64xf32>
    %202 = arith.maximumf %200, %201 : vector<4x64xf32>
    %203 = vector.extract_strided_slice %202 {offsets = [0, 0], sizes = [2, 64], strides = [1, 1]} : vector<4x64xf32> to vector<2x64xf32>
    %cst_51 = arith.constant dense<0xFF800000> : vector<64xf32>
    %204 = vector.multi_reduction <maximumf>, %203, %cst_51 [0] : vector<2x64xf32> to vector<64xf32>
    %205 = vector.shape_cast %204 : vector<64xf32> to vector<1x64xf32>
    %206 = vector.extract_strided_slice %202 {offsets = [0, 0], sizes = [3, 64], strides = [1, 1]} : vector<4x64xf32> to vector<3x64xf32>
    %cst_52 = arith.constant dense<0xFF800000> : vector<64xf32>
    %207 = vector.multi_reduction <maximumf>, %206, %cst_52 [0] : vector<3x64xf32> to vector<64xf32>
    %208 = vector.shape_cast %207 : vector<64xf32> to vector<1x64xf32>
    %209 = vector.extract_strided_slice %202 {offsets = [1, 0], sizes = [3, 64], strides = [1, 1]} : vector<4x64xf32> to vector<3x64xf32>
    %cst_53 = arith.constant dense<0xFF800000> : vector<64xf32>
    %210 = vector.multi_reduction <maximumf>, %209, %cst_53 [0] : vector<3x64xf32> to vector<64xf32>
    %211 = vector.shape_cast %210 : vector<64xf32> to vector<1x64xf32>
    %212 = vector.extract_strided_slice %202 {offsets = [2, 0], sizes = [2, 64], strides = [1, 1]} : vector<4x64xf32> to vector<2x64xf32>
    %cst_54 = arith.constant dense<0xFF800000> : vector<64xf32>
    %213 = vector.multi_reduction <maximumf>, %212, %cst_54 [0] : vector<2x64xf32> to vector<64xf32>
    %214 = vector.shape_cast %213 : vector<64xf32> to vector<1x64xf32>
    %215 = tpu.concatenate %80, %89, %92, %95, %98, %106, %109, %112, %115, %123, %126, %129, %132, %138, %141, %144 in 0 : vector<1x64xf32>, vector<1x64xf32>, vector<1x64xf32>, vector<1x64xf32>, vector<1x64xf32>, vector<1x64xf32>, vector<1x64xf32>, vector<1x64xf32>, vector<1x64xf32>, vector<1x64xf32>, vector<1x64xf32>, vector<1x64xf32>, vector<1x64xf32>, vector<1x64xf32>, vector<1x64xf32>, vector<1x64xf32> -> vector<16x64xf32>
    %216 = tpu.concatenate %147, %156, %159, %162, %165, %173, %176, %179, %182, %190, %193, %196, %199, %205, %208, %211 in 0 : vector<1x64xf32>, vector<1x64xf32>, vector<1x64xf32>, vector<1x64xf32>, vector<1x64xf32>, vector<1x64xf32>, vector<1x64xf32>, vector<1x64xf32>, vector<1x64xf32>, vector<1x64xf32>, vector<1x64xf32>, vector<1x64xf32>, vector<1x64xf32>, vector<1x64xf32>, vector<1x64xf32>, vector<1x64xf32> -> vector<16x64xf32>
    %217 = tpu.concatenate %215, %216, %214 in 0 : vector<16x64xf32>, vector<16x64xf32>, vector<1x64xf32> -> vector<33x64xf32>
    %218 = vector.extract_strided_slice %29 {offsets = [0, 128], sizes = [33, 64], strides = [1, 1]} : vector<33x192xf32> to vector<33x64xf32>
    %219 = vector.extract_strided_slice %218 {offsets = [0, 0], sizes = [1, 64], strides = [1, 1]} : vector<33x64xf32> to vector<1x64xf32>
    %220 = vector.extract_strided_slice %218 {offsets = [1, 0], sizes = [16, 64], strides = [1, 1]} : vector<33x64xf32> to vector<16x64xf32>
    %221 = vector.extract_strided_slice %218 {offsets = [17, 0], sizes = [16, 64], strides = [1, 1]} : vector<33x64xf32> to vector<16x64xf32>
    %222 = arith.maximumf %220, %221 : vector<16x64xf32>
    %223 = vector.extract_strided_slice %222 {offsets = [0, 0], sizes = [4, 64], strides = [1, 1]} : vector<16x64xf32> to vector<4x64xf32>
    %224 = vector.extract_strided_slice %222 {offsets = [4, 0], sizes = [4, 64], strides = [1, 1]} : vector<16x64xf32> to vector<4x64xf32>
    %225 = arith.maximumf %223, %224 : vector<4x64xf32>
    %226 = vector.extract_strided_slice %225 {offsets = [0, 0], sizes = [2, 64], strides = [1, 1]} : vector<4x64xf32> to vector<2x64xf32>
    %cst_55 = arith.constant dense<0xFF800000> : vector<64xf32>
    %227 = vector.multi_reduction <maximumf>, %226, %cst_55 [0] : vector<2x64xf32> to vector<64xf32>
    %228 = vector.shape_cast %227 : vector<64xf32> to vector<1x64xf32>
    %229 = vector.extract_strided_slice %225 {offsets = [0, 0], sizes = [3, 64], strides = [1, 1]} : vector<4x64xf32> to vector<3x64xf32>
    %cst_56 = arith.constant dense<0xFF800000> : vector<64xf32>
    %230 = vector.multi_reduction <maximumf>, %229, %cst_56 [0] : vector<3x64xf32> to vector<64xf32>
    %231 = vector.shape_cast %230 : vector<64xf32> to vector<1x64xf32>
    %232 = vector.extract_strided_slice %225 {offsets = [1, 0], sizes = [3, 64], strides = [1, 1]} : vector<4x64xf32> to vector<3x64xf32>
    %cst_57 = arith.constant dense<0xFF800000> : vector<64xf32>
    %233 = vector.multi_reduction <maximumf>, %232, %cst_57 [0] : vector<3x64xf32> to vector<64xf32>
    %234 = vector.shape_cast %233 : vector<64xf32> to vector<1x64xf32>
    %235 = vector.extract_strided_slice %225 {offsets = [2, 0], sizes = [2, 64], strides = [1, 1]} : vector<4x64xf32> to vector<2x64xf32>
    %cst_58 = arith.constant dense<0xFF800000> : vector<64xf32>
    %236 = vector.multi_reduction <maximumf>, %235, %cst_58 [0] : vector<2x64xf32> to vector<64xf32>
    %237 = vector.shape_cast %236 : vector<64xf32> to vector<1x64xf32>
    %238 = vector.extract_strided_slice %222 {offsets = [0, 0], sizes = [4, 64], strides = [1, 1]} : vector<16x64xf32> to vector<4x64xf32>
    %239 = vector.extract_strided_slice %222 {offsets = [4, 0], sizes = [4, 64], strides = [1, 1]} : vector<16x64xf32> to vector<4x64xf32>
    %240 = arith.maximumf %238, %239 : vector<4x64xf32>
    %241 = vector.extract_strided_slice %222 {offsets = [8, 0], sizes = [4, 64], strides = [1, 1]} : vector<16x64xf32> to vector<4x64xf32>
    %242 = arith.maximumf %240, %241 : vector<4x64xf32>
    %243 = vector.extract_strided_slice %242 {offsets = [0, 0], sizes = [2, 64], strides = [1, 1]} : vector<4x64xf32> to vector<2x64xf32>
    %cst_59 = arith.constant dense<0xFF800000> : vector<64xf32>
    %244 = vector.multi_reduction <maximumf>, %243, %cst_59 [0] : vector<2x64xf32> to vector<64xf32>
    %245 = vector.shape_cast %244 : vector<64xf32> to vector<1x64xf32>
    %246 = vector.extract_strided_slice %242 {offsets = [0, 0], sizes = [3, 64], strides = [1, 1]} : vector<4x64xf32> to vector<3x64xf32>
    %cst_60 = arith.constant dense<0xFF800000> : vector<64xf32>
    %247 = vector.multi_reduction <maximumf>, %246, %cst_60 [0] : vector<3x64xf32> to vector<64xf32>
    %248 = vector.shape_cast %247 : vector<64xf32> to vector<1x64xf32>
    %249 = vector.extract_strided_slice %242 {offsets = [1, 0], sizes = [3, 64], strides = [1, 1]} : vector<4x64xf32> to vector<3x64xf32>
    %cst_61 = arith.constant dense<0xFF800000> : vector<64xf32>
    %250 = vector.multi_reduction <maximumf>, %249, %cst_61 [0] : vector<3x64xf32> to vector<64xf32>
    %251 = vector.shape_cast %250 : vector<64xf32> to vector<1x64xf32>
    %252 = vector.extract_strided_slice %242 {offsets = [2, 0], sizes = [2, 64], strides = [1, 1]} : vector<4x64xf32> to vector<2x64xf32>
    %cst_62 = arith.constant dense<0xFF800000> : vector<64xf32>
    %253 = vector.multi_reduction <maximumf>, %252, %cst_62 [0] : vector<2x64xf32> to vector<64xf32>
    %254 = vector.shape_cast %253 : vector<64xf32> to vector<1x64xf32>
    %255 = vector.extract_strided_slice %222 {offsets = [4, 0], sizes = [4, 64], strides = [1, 1]} : vector<16x64xf32> to vector<4x64xf32>
    %256 = vector.extract_strided_slice %222 {offsets = [8, 0], sizes = [4, 64], strides = [1, 1]} : vector<16x64xf32> to vector<4x64xf32>
    %257 = arith.maximumf %255, %256 : vector<4x64xf32>
    %258 = vector.extract_strided_slice %222 {offsets = [12, 0], sizes = [4, 64], strides = [1, 1]} : vector<16x64xf32> to vector<4x64xf32>
    %259 = arith.maximumf %257, %258 : vector<4x64xf32>
    %260 = vector.extract_strided_slice %259 {offsets = [0, 0], sizes = [2, 64], strides = [1, 1]} : vector<4x64xf32> to vector<2x64xf32>
    %cst_63 = arith.constant dense<0xFF800000> : vector<64xf32>
    %261 = vector.multi_reduction <maximumf>, %260, %cst_63 [0] : vector<2x64xf32> to vector<64xf32>
    %262 = vector.shape_cast %261 : vector<64xf32> to vector<1x64xf32>
    %263 = vector.extract_strided_slice %259 {offsets = [0, 0], sizes = [3, 64], strides = [1, 1]} : vector<4x64xf32> to vector<3x64xf32>
    %cst_64 = arith.constant dense<0xFF800000> : vector<64xf32>
    %264 = vector.multi_reduction <maximumf>, %263, %cst_64 [0] : vector<3x64xf32> to vector<64xf32>
    %265 = vector.shape_cast %264 : vector<64xf32> to vector<1x64xf32>
    %266 = vector.extract_strided_slice %259 {offsets = [1, 0], sizes = [3, 64], strides = [1, 1]} : vector<4x64xf32> to vector<3x64xf32>
    %cst_65 = arith.constant dense<0xFF800000> : vector<64xf32>
    %267 = vector.multi_reduction <maximumf>, %266, %cst_65 [0] : vector<3x64xf32> to vector<64xf32>
    %268 = vector.shape_cast %267 : vector<64xf32> to vector<1x64xf32>
    %269 = vector.extract_strided_slice %259 {offsets = [2, 0], sizes = [2, 64], strides = [1, 1]} : vector<4x64xf32> to vector<2x64xf32>
    %cst_66 = arith.constant dense<0xFF800000> : vector<64xf32>
    %270 = vector.multi_reduction <maximumf>, %269, %cst_66 [0] : vector<2x64xf32> to vector<64xf32>
    %271 = vector.shape_cast %270 : vector<64xf32> to vector<1x64xf32>
    %272 = vector.extract_strided_slice %222 {offsets = [8, 0], sizes = [4, 64], strides = [1, 1]} : vector<16x64xf32> to vector<4x64xf32>
    %273 = vector.extract_strided_slice %222 {offsets = [12, 0], sizes = [4, 64], strides = [1, 1]} : vector<16x64xf32> to vector<4x64xf32>
    %274 = arith.maximumf %272, %273 : vector<4x64xf32>
    %275 = vector.extract_strided_slice %274 {offsets = [0, 0], sizes = [2, 64], strides = [1, 1]} : vector<4x64xf32> to vector<2x64xf32>
    %cst_67 = arith.constant dense<0xFF800000> : vector<64xf32>
    %276 = vector.multi_reduction <maximumf>, %275, %cst_67 [0] : vector<2x64xf32> to vector<64xf32>
    %277 = vector.shape_cast %276 : vector<64xf32> to vector<1x64xf32>
    %278 = vector.extract_strided_slice %274 {offsets = [0, 0], sizes = [3, 64], strides = [1, 1]} : vector<4x64xf32> to vector<3x64xf32>
    %cst_68 = arith.constant dense<0xFF800000> : vector<64xf32>
    %279 = vector.multi_reduction <maximumf>, %278, %cst_68 [0] : vector<3x64xf32> to vector<64xf32>
    %280 = vector.shape_cast %279 : vector<64xf32> to vector<1x64xf32>
    %281 = vector.extract_strided_slice %274 {offsets = [1, 0], sizes = [3, 64], strides = [1, 1]} : vector<4x64xf32> to vector<3x64xf32>
    %cst_69 = arith.constant dense<0xFF800000> : vector<64xf32>
    %282 = vector.multi_reduction <maximumf>, %281, %cst_69 [0] : vector<3x64xf32> to vector<64xf32>
    %283 = vector.shape_cast %282 : vector<64xf32> to vector<1x64xf32>
    %284 = vector.extract_strided_slice %274 {offsets = [2, 0], sizes = [2, 64], strides = [1, 1]} : vector<4x64xf32> to vector<2x64xf32>
    %cst_70 = arith.constant dense<0xFF800000> : vector<64xf32>
    %285 = vector.multi_reduction <maximumf>, %284, %cst_70 [0] : vector<2x64xf32> to vector<64xf32>
    %286 = vector.shape_cast %285 : vector<64xf32> to vector<1x64xf32>
    %287 = vector.extract_strided_slice %218 {offsets = [1, 0], sizes = [16, 64], strides = [1, 1]} : vector<33x64xf32> to vector<16x64xf32>
    %288 = vector.extract_strided_slice %218 {offsets = [17, 0], sizes = [16, 64], strides = [1, 1]} : vector<33x64xf32> to vector<16x64xf32>
    %289 = arith.maximumf %287, %288 : vector<16x64xf32>
    %290 = vector.extract_strided_slice %289 {offsets = [0, 0], sizes = [4, 64], strides = [1, 1]} : vector<16x64xf32> to vector<4x64xf32>
    %291 = vector.extract_strided_slice %289 {offsets = [4, 0], sizes = [4, 64], strides = [1, 1]} : vector<16x64xf32> to vector<4x64xf32>
    %292 = arith.maximumf %290, %291 : vector<4x64xf32>
    %293 = vector.extract_strided_slice %292 {offsets = [0, 0], sizes = [2, 64], strides = [1, 1]} : vector<4x64xf32> to vector<2x64xf32>
    %cst_71 = arith.constant dense<0xFF800000> : vector<64xf32>
    %294 = vector.multi_reduction <maximumf>, %293, %cst_71 [0] : vector<2x64xf32> to vector<64xf32>
    %295 = vector.shape_cast %294 : vector<64xf32> to vector<1x64xf32>
    %296 = vector.extract_strided_slice %292 {offsets = [0, 0], sizes = [3, 64], strides = [1, 1]} : vector<4x64xf32> to vector<3x64xf32>
    %cst_72 = arith.constant dense<0xFF800000> : vector<64xf32>
    %297 = vector.multi_reduction <maximumf>, %296, %cst_72 [0] : vector<3x64xf32> to vector<64xf32>
    %298 = vector.shape_cast %297 : vector<64xf32> to vector<1x64xf32>
    %299 = vector.extract_strided_slice %292 {offsets = [1, 0], sizes = [3, 64], strides = [1, 1]} : vector<4x64xf32> to vector<3x64xf32>
    %cst_73 = arith.constant dense<0xFF800000> : vector<64xf32>
    %300 = vector.multi_reduction <maximumf>, %299, %cst_73 [0] : vector<3x64xf32> to vector<64xf32>
    %301 = vector.shape_cast %300 : vector<64xf32> to vector<1x64xf32>
    %302 = vector.extract_strided_slice %292 {offsets = [2, 0], sizes = [2, 64], strides = [1, 1]} : vector<4x64xf32> to vector<2x64xf32>
    %cst_74 = arith.constant dense<0xFF800000> : vector<64xf32>
    %303 = vector.multi_reduction <maximumf>, %302, %cst_74 [0] : vector<2x64xf32> to vector<64xf32>
    %304 = vector.shape_cast %303 : vector<64xf32> to vector<1x64xf32>
    %305 = vector.extract_strided_slice %289 {offsets = [0, 0], sizes = [4, 64], strides = [1, 1]} : vector<16x64xf32> to vector<4x64xf32>
    %306 = vector.extract_strided_slice %289 {offsets = [4, 0], sizes = [4, 64], strides = [1, 1]} : vector<16x64xf32> to vector<4x64xf32>
    %307 = arith.maximumf %305, %306 : vector<4x64xf32>
    %308 = vector.extract_strided_slice %289 {offsets = [8, 0], sizes = [4, 64], strides = [1, 1]} : vector<16x64xf32> to vector<4x64xf32>
    %309 = arith.maximumf %307, %308 : vector<4x64xf32>
    %310 = vector.extract_strided_slice %309 {offsets = [0, 0], sizes = [2, 64], strides = [1, 1]} : vector<4x64xf32> to vector<2x64xf32>
    %cst_75 = arith.constant dense<0xFF800000> : vector<64xf32>
    %311 = vector.multi_reduction <maximumf>, %310, %cst_75 [0] : vector<2x64xf32> to vector<64xf32>
    %312 = vector.shape_cast %311 : vector<64xf32> to vector<1x64xf32>
    %313 = vector.extract_strided_slice %309 {offsets = [0, 0], sizes = [3, 64], strides = [1, 1]} : vector<4x64xf32> to vector<3x64xf32>
    %cst_76 = arith.constant dense<0xFF800000> : vector<64xf32>
    %314 = vector.multi_reduction <maximumf>, %313, %cst_76 [0] : vector<3x64xf32> to vector<64xf32>
    %315 = vector.shape_cast %314 : vector<64xf32> to vector<1x64xf32>
    %316 = vector.extract_strided_slice %309 {offsets = [1, 0], sizes = [3, 64], strides = [1, 1]} : vector<4x64xf32> to vector<3x64xf32>
    %cst_77 = arith.constant dense<0xFF800000> : vector<64xf32>
    %317 = vector.multi_reduction <maximumf>, %316, %cst_77 [0] : vector<3x64xf32> to vector<64xf32>
    %318 = vector.shape_cast %317 : vector<64xf32> to vector<1x64xf32>
    %319 = vector.extract_strided_slice %309 {offsets = [2, 0], sizes = [2, 64], strides = [1, 1]} : vector<4x64xf32> to vector<2x64xf32>
    %cst_78 = arith.constant dense<0xFF800000> : vector<64xf32>
    %320 = vector.multi_reduction <maximumf>, %319, %cst_78 [0] : vector<2x64xf32> to vector<64xf32>
    %321 = vector.shape_cast %320 : vector<64xf32> to vector<1x64xf32>
    %322 = vector.extract_strided_slice %289 {offsets = [4, 0], sizes = [4, 64], strides = [1, 1]} : vector<16x64xf32> to vector<4x64xf32>
    %323 = vector.extract_strided_slice %289 {offsets = [8, 0], sizes = [4, 64], strides = [1, 1]} : vector<16x64xf32> to vector<4x64xf32>
    %324 = arith.maximumf %322, %323 : vector<4x64xf32>
    %325 = vector.extract_strided_slice %289 {offsets = [12, 0], sizes = [4, 64], strides = [1, 1]} : vector<16x64xf32> to vector<4x64xf32>
    %326 = arith.maximumf %324, %325 : vector<4x64xf32>
    %327 = vector.extract_strided_slice %326 {offsets = [0, 0], sizes = [2, 64], strides = [1, 1]} : vector<4x64xf32> to vector<2x64xf32>
    %cst_79 = arith.constant dense<0xFF800000> : vector<64xf32>
    %328 = vector.multi_reduction <maximumf>, %327, %cst_79 [0] : vector<2x64xf32> to vector<64xf32>
    %329 = vector.shape_cast %328 : vector<64xf32> to vector<1x64xf32>
    %330 = vector.extract_strided_slice %326 {offsets = [0, 0], sizes = [3, 64], strides = [1, 1]} : vector<4x64xf32> to vector<3x64xf32>
    %cst_80 = arith.constant dense<0xFF800000> : vector<64xf32>
    %331 = vector.multi_reduction <maximumf>, %330, %cst_80 [0] : vector<3x64xf32> to vector<64xf32>
    %332 = vector.shape_cast %331 : vector<64xf32> to vector<1x64xf32>
    %333 = vector.extract_strided_slice %326 {offsets = [1, 0], sizes = [3, 64], strides = [1, 1]} : vector<4x64xf32> to vector<3x64xf32>
    %cst_81 = arith.constant dense<0xFF800000> : vector<64xf32>
    %334 = vector.multi_reduction <maximumf>, %333, %cst_81 [0] : vector<3x64xf32> to vector<64xf32>
    %335 = vector.shape_cast %334 : vector<64xf32> to vector<1x64xf32>
    %336 = vector.extract_strided_slice %326 {offsets = [2, 0], sizes = [2, 64], strides = [1, 1]} : vector<4x64xf32> to vector<2x64xf32>
    %cst_82 = arith.constant dense<0xFF800000> : vector<64xf32>
    %337 = vector.multi_reduction <maximumf>, %336, %cst_82 [0] : vector<2x64xf32> to vector<64xf32>
    %338 = vector.shape_cast %337 : vector<64xf32> to vector<1x64xf32>
    %339 = vector.extract_strided_slice %289 {offsets = [8, 0], sizes = [4, 64], strides = [1, 1]} : vector<16x64xf32> to vector<4x64xf32>
    %340 = vector.extract_strided_slice %289 {offsets = [12, 0], sizes = [4, 64], strides = [1, 1]} : vector<16x64xf32> to vector<4x64xf32>
    %341 = arith.maximumf %339, %340 : vector<4x64xf32>
    %342 = vector.extract_strided_slice %341 {offsets = [0, 0], sizes = [2, 64], strides = [1, 1]} : vector<4x64xf32> to vector<2x64xf32>
    %cst_83 = arith.constant dense<0xFF800000> : vector<64xf32>
    %343 = vector.multi_reduction <maximumf>, %342, %cst_83 [0] : vector<2x64xf32> to vector<64xf32>
    %344 = vector.shape_cast %343 : vector<64xf32> to vector<1x64xf32>
    %345 = vector.extract_strided_slice %341 {offsets = [0, 0], sizes = [3, 64], strides = [1, 1]} : vector<4x64xf32> to vector<3x64xf32>
    %cst_84 = arith.constant dense<0xFF800000> : vector<64xf32>
    %346 = vector.multi_reduction <maximumf>, %345, %cst_84 [0] : vector<3x64xf32> to vector<64xf32>
    %347 = vector.shape_cast %346 : vector<64xf32> to vector<1x64xf32>
    %348 = vector.extract_strided_slice %341 {offsets = [1, 0], sizes = [3, 64], strides = [1, 1]} : vector<4x64xf32> to vector<3x64xf32>
    %cst_85 = arith.constant dense<0xFF800000> : vector<64xf32>
    %349 = vector.multi_reduction <maximumf>, %348, %cst_85 [0] : vector<3x64xf32> to vector<64xf32>
    %350 = vector.shape_cast %349 : vector<64xf32> to vector<1x64xf32>
    %351 = vector.extract_strided_slice %341 {offsets = [2, 0], sizes = [2, 64], strides = [1, 1]} : vector<4x64xf32> to vector<2x64xf32>
    %cst_86 = arith.constant dense<0xFF800000> : vector<64xf32>
    %352 = vector.multi_reduction <maximumf>, %351, %cst_86 [0] : vector<2x64xf32> to vector<64xf32>
    %353 = vector.shape_cast %352 : vector<64xf32> to vector<1x64xf32>
    %354 = tpu.concatenate %219, %228, %231, %234, %237, %245, %248, %251, %254, %262, %265, %268, %271, %277, %280, %283 in 0 : vector<1x64xf32>, vector<1x64xf32>, vector<1x64xf32>, vector<1x64xf32>, vector<1x64xf32>, vector<1x64xf32>, vector<1x64xf32>, vector<1x64xf32>, vector<1x64xf32>, vector<1x64xf32>, vector<1x64xf32>, vector<1x64xf32>, vector<1x64xf32>, vector<1x64xf32>, vector<1x64xf32>, vector<1x64xf32> -> vector<16x64xf32>
    %355 = tpu.concatenate %286, %295, %298, %301, %304, %312, %315, %318, %321, %329, %332, %335, %338, %344, %347, %350 in 0 : vector<1x64xf32>, vector<1x64xf32>, vector<1x64xf32>, vector<1x64xf32>, vector<1x64xf32>, vector<1x64xf32>, vector<1x64xf32>, vector<1x64xf32>, vector<1x64xf32>, vector<1x64xf32>, vector<1x64xf32>, vector<1x64xf32>, vector<1x64xf32>, vector<1x64xf32>, vector<1x64xf32>, vector<1x64xf32> -> vector<16x64xf32>
    %356 = tpu.concatenate %354, %355, %353 in 0 : vector<16x64xf32>, vector<16x64xf32>, vector<1x64xf32> -> vector<33x64xf32>
    %357 = vector.extract_strided_slice %1 {offsets = [0, 0], sizes = [1, 64], strides = [1, 1]} : vector<33x64xf32> to vector<1x64xf32>
    %358 = vector.extract_strided_slice %1 {offsets = [1, 0], sizes = [16, 64], strides = [1, 1]} : vector<33x64xf32> to vector<16x64xf32>
    %359 = vector.extract_strided_slice %358 {offsets = [0, 0], sizes = [4, 64], strides = [1, 1]} : vector<16x64xf32> to vector<4x64xf32>
    %360 = vector.extract_strided_slice %358 {offsets = [4, 0], sizes = [4, 64], strides = [1, 1]} : vector<16x64xf32> to vector<4x64xf32>
    %361 = arith.maximumf %359, %360 : vector<4x64xf32>
    %362 = vector.extract_strided_slice %361 {offsets = [0, 0], sizes = [2, 64], strides = [1, 1]} : vector<4x64xf32> to vector<2x64xf32>
    %cst_87 = arith.constant dense<0xFF800000> : vector<64xf32>
    %363 = vector.multi_reduction <maximumf>, %362, %cst_87 [0] : vector<2x64xf32> to vector<64xf32>
    %364 = vector.shape_cast %363 : vector<64xf32> to vector<1x64xf32>
    %365 = vector.extract_strided_slice %361 {offsets = [1, 0], sizes = [3, 64], strides = [1, 1]} : vector<4x64xf32> to vector<3x64xf32>
    %cst_88 = arith.constant dense<0xFF800000> : vector<64xf32>
    %366 = vector.multi_reduction <maximumf>, %365, %cst_88 [0] : vector<3x64xf32> to vector<64xf32>
    %367 = vector.shape_cast %366 : vector<64xf32> to vector<1x64xf32>
    %368 = vector.extract_strided_slice %358 {offsets = [4, 0], sizes = [4, 64], strides = [1, 1]} : vector<16x64xf32> to vector<4x64xf32>
    %369 = vector.extract_strided_slice %358 {offsets = [8, 0], sizes = [4, 64], strides = [1, 1]} : vector<16x64xf32> to vector<4x64xf32>
    %370 = arith.maximumf %368, %369 : vector<4x64xf32>
    %371 = vector.extract_strided_slice %358 {offsets = [12, 0], sizes = [4, 64], strides = [1, 1]} : vector<16x64xf32> to vector<4x64xf32>
    %372 = arith.maximumf %370, %371 : vector<4x64xf32>
    %373 = vector.extract_strided_slice %372 {offsets = [0, 0], sizes = [2, 64], strides = [1, 1]} : vector<4x64xf32> to vector<2x64xf32>
    %cst_89 = arith.constant dense<0xFF800000> : vector<64xf32>
    %374 = vector.multi_reduction <maximumf>, %373, %cst_89 [0] : vector<2x64xf32> to vector<64xf32>
    %375 = vector.shape_cast %374 : vector<64xf32> to vector<1x64xf32>
    %376 = vector.extract_strided_slice %372 {offsets = [1, 0], sizes = [3, 64], strides = [1, 1]} : vector<4x64xf32> to vector<3x64xf32>
    %cst_90 = arith.constant dense<0xFF800000> : vector<64xf32>
    %377 = vector.multi_reduction <maximumf>, %376, %cst_90 [0] : vector<3x64xf32> to vector<64xf32>
    %378 = vector.shape_cast %377 : vector<64xf32> to vector<1x64xf32>
    %379 = vector.extract_strided_slice %1 {offsets = [17, 0], sizes = [16, 64], strides = [1, 1]} : vector<33x64xf32> to vector<16x64xf32>
    %380 = vector.extract_strided_slice %379 {offsets = [0, 0], sizes = [4, 64], strides = [1, 1]} : vector<16x64xf32> to vector<4x64xf32>
    %381 = vector.extract_strided_slice %379 {offsets = [4, 0], sizes = [4, 64], strides = [1, 1]} : vector<16x64xf32> to vector<4x64xf32>
    %382 = arith.maximumf %380, %381 : vector<4x64xf32>
    %383 = vector.extract_strided_slice %382 {offsets = [0, 0], sizes = [2, 64], strides = [1, 1]} : vector<4x64xf32> to vector<2x64xf32>
    %cst_91 = arith.constant dense<0xFF800000> : vector<64xf32>
    %384 = vector.multi_reduction <maximumf>, %383, %cst_91 [0] : vector<2x64xf32> to vector<64xf32>
    %385 = vector.shape_cast %384 : vector<64xf32> to vector<1x64xf32>
    %386 = vector.extract_strided_slice %382 {offsets = [1, 0], sizes = [3, 64], strides = [1, 1]} : vector<4x64xf32> to vector<3x64xf32>
    %cst_92 = arith.constant dense<0xFF800000> : vector<64xf32>
    %387 = vector.multi_reduction <maximumf>, %386, %cst_92 [0] : vector<3x64xf32> to vector<64xf32>
    %388 = vector.shape_cast %387 : vector<64xf32> to vector<1x64xf32>
    %389 = vector.extract_strided_slice %379 {offsets = [4, 0], sizes = [4, 64], strides = [1, 1]} : vector<16x64xf32> to vector<4x64xf32>
    %390 = vector.extract_strided_slice %379 {offsets = [8, 0], sizes = [4, 64], strides = [1, 1]} : vector<16x64xf32> to vector<4x64xf32>
    %391 = arith.maximumf %389, %390 : vector<4x64xf32>
    %392 = vector.extract_strided_slice %379 {offsets = [12, 0], sizes = [4, 64], strides = [1, 1]} : vector<16x64xf32> to vector<4x64xf32>
    %393 = arith.maximumf %391, %392 : vector<4x64xf32>
    %394 = vector.extract_strided_slice %393 {offsets = [0, 0], sizes = [2, 64], strides = [1, 1]} : vector<4x64xf32> to vector<2x64xf32>
    %cst_93 = arith.constant dense<0xFF800000> : vector<64xf32>
    %395 = vector.multi_reduction <maximumf>, %394, %cst_93 [0] : vector<2x64xf32> to vector<64xf32>
    %396 = vector.shape_cast %395 : vector<64xf32> to vector<1x64xf32>
    %397 = vector.extract_strided_slice %393 {offsets = [1, 0], sizes = [3, 64], strides = [1, 1]} : vector<4x64xf32> to vector<3x64xf32>
    %cst_94 = arith.constant dense<0xFF800000> : vector<64xf32>
    %398 = vector.multi_reduction <maximumf>, %397, %cst_94 [0] : vector<3x64xf32> to vector<64xf32>
    %399 = vector.shape_cast %398 : vector<64xf32> to vector<1x64xf32>
    %400 = tpu.concatenate %357, %364, %367, %375, %378, %385, %388, %396, %399 in 0 : vector<1x64xf32>, vector<1x64xf32>, vector<1x64xf32>, vector<1x64xf32>, vector<1x64xf32>, vector<1x64xf32>, vector<1x64xf32>, vector<1x64xf32>, vector<1x64xf32> -> vector<9x64xf32>
    %c0_95 = arith.constant 0 : index
    %c0_96 = arith.constant 0 : index
    %401 = vector.load %arg6[%c0_95, %c0_96] : memref<64x64xbf16, #tpu.memory_space<vmem>>, vector<64x64xbf16>
    %c0_97 = arith.constant 0 : index
    %c0_98 = arith.constant 0 : index
    %402 = vector.load %arg7[%c0_97, %c0_98] : memref<1x64xf32, #tpu.memory_space<vmem>>, vector<1x64xf32>
    %403 = vector.broadcast %402 : vector<1x64xf32> to vector<9x64xf32>
    %404 = arith.addf %400, %403 : vector<9x64xf32>
    %405 = vector.extract_strided_slice %78 {offsets = [0, 0], sizes = [9, 32], strides = [1, 1]} : vector<9x64xf32> to vector<9x32xf32>
    %cst_99 = arith.constant 0.176776692 : f32
    %406 = vector.broadcast %cst_99 : f32 to vector<9x32xf32>
    %407 = arith.mulf %405, %406 : vector<9x32xf32>
    %408 = vector.extract_strided_slice %217 {offsets = [0, 0], sizes = [33, 32], strides = [1, 1]} : vector<33x64xf32> to vector<33x32xf32>
    %409 = vector.extract_strided_slice %356 {offsets = [0, 0], sizes = [33, 32], strides = [1, 1]} : vector<33x64xf32> to vector<33x32xf32>
    %410 = arith.truncf %407 : vector<9x32xf32> to vector<9x32xbf16>
    %411 = arith.truncf %408 : vector<33x32xf32> to vector<33x32xbf16>
    %cst_100 = arith.constant dense<0.000000e+00> : vector<9x33xf32>
    %412 = tpu.matmul %410, %411, %cst_100 {dimension_numbers = #tpu.dot_dimension_numbers<[1], [1], [0], [0], [0, 0, 1, 0], [], []>} : vector<9x32xbf16>, vector<33x32xbf16>, vector<9x33xf32> -> vector<9x33xf32>
    %cst_101 = arith.constant dense<0xFF800000> : vector<9xf32>
    %413 = vector.multi_reduction <maximumf>, %412, %cst_101 [1] : vector<9x33xf32> to vector<9xf32>
    %414 = vector.shape_cast %413 : vector<9xf32> to vector<9x1xf32>
    %415 = vector.broadcast %414 : vector<9x1xf32> to vector<9x33xf32>
    %416 = arith.subf %412, %415 : vector<9x33xf32>
    %417 = math.exp %416 : vector<9x33xf32>
    %cst_102 = arith.constant dense<0.000000e+00> : vector<9xf32>
    %418 = vector.multi_reduction <add>, %417, %cst_102 [1] : vector<9x33xf32> to vector<9xf32>
    %419 = vector.shape_cast %418 : vector<9xf32> to vector<9x1xf32>
    %420 = tpu.reciprocal %419 {approx = true} : vector<9x1xf32> -> vector<9x1xf32>
    %421 = vector.broadcast %420 : vector<9x1xf32> to vector<9x33xf32>
    %422 = arith.mulf %417, %421 : vector<9x33xf32>
    %423 = arith.truncf %422 : vector<9x33xf32> to vector<9x33xbf16>
    %424 = arith.truncf %409 : vector<33x32xf32> to vector<33x32xbf16>
    %cst_103 = arith.constant dense<0.000000e+00> : vector<9x32xf32>
    %425 = tpu.matmul %423, %424, %cst_103 {dimension_numbers = #tpu.dot_dimension_numbers<[1], [0], [0], [1], [0, 0, 1, 1], [], []>} : vector<9x33xbf16>, vector<33x32xbf16>, vector<9x32xf32> -> vector<9x32xf32>
    %426 = arith.truncf %425 : vector<9x32xf32> to vector<9x32xbf16>
    %427 = vector.extract_strided_slice %401 {offsets = [0, 0], sizes = [32, 64], strides = [1, 1]} : vector<64x64xbf16> to vector<32x64xbf16>
    %cst_104 = arith.constant dense<0.000000e+00> : vector<9x64xf32>
    %428 = tpu.matmul %426, %427, %cst_104 {dimension_numbers = #tpu.dot_dimension_numbers<[1], [0], [0], [1], [0, 0, 1, 1], [], []>} : vector<9x32xbf16>, vector<32x64xbf16>, vector<9x64xf32> -> vector<9x64xf32>
    %429 = arith.addf %404, %428 : vector<9x64xf32>
    %430 = vector.extract_strided_slice %78 {offsets = [0, 32], sizes = [9, 32], strides = [1, 1]} : vector<9x64xf32> to vector<9x32xf32>
    %cst_105 = arith.constant 0.176776692 : f32
    %431 = vector.broadcast %cst_105 : f32 to vector<9x32xf32>
    %432 = arith.mulf %430, %431 : vector<9x32xf32>
    %433 = vector.extract_strided_slice %217 {offsets = [0, 32], sizes = [33, 32], strides = [1, 1]} : vector<33x64xf32> to vector<33x32xf32>
    %434 = vector.extract_strided_slice %356 {offsets = [0, 32], sizes = [33, 32], strides = [1, 1]} : vector<33x64xf32> to vector<33x32xf32>
    %435 = arith.truncf %432 : vector<9x32xf32> to vector<9x32xbf16>
    %436 = arith.truncf %433 : vector<33x32xf32> to vector<33x32xbf16>
    %cst_106 = arith.constant dense<0.000000e+00> : vector<9x33xf32>
    %437 = tpu.matmul %435, %436, %cst_106 {dimension_numbers = #tpu.dot_dimension_numbers<[1], [1], [0], [0], [0, 0, 1, 0], [], []>} : vector<9x32xbf16>, vector<33x32xbf16>, vector<9x33xf32> -> vector<9x33xf32>
    %cst_107 = arith.constant dense<0xFF800000> : vector<9xf32>
    %438 = vector.multi_reduction <maximumf>, %437, %cst_107 [1] : vector<9x33xf32> to vector<9xf32>
    %439 = vector.shape_cast %438 : vector<9xf32> to vector<9x1xf32>
    %440 = vector.broadcast %439 : vector<9x1xf32> to vector<9x33xf32>
    %441 = arith.subf %437, %440 : vector<9x33xf32>
    %442 = math.exp %441 : vector<9x33xf32>
    %cst_108 = arith.constant dense<0.000000e+00> : vector<9xf32>
    %443 = vector.multi_reduction <add>, %442, %cst_108 [1] : vector<9x33xf32> to vector<9xf32>
    %444 = vector.shape_cast %443 : vector<9xf32> to vector<9x1xf32>
    %445 = tpu.reciprocal %444 {approx = true} : vector<9x1xf32> -> vector<9x1xf32>
    %446 = vector.broadcast %445 : vector<9x1xf32> to vector<9x33xf32>
    %447 = arith.mulf %442, %446 : vector<9x33xf32>
    %448 = arith.truncf %447 : vector<9x33xf32> to vector<9x33xbf16>
    %449 = arith.truncf %434 : vector<33x32xf32> to vector<33x32xbf16>
    %cst_109 = arith.constant dense<0.000000e+00> : vector<9x32xf32>
    %450 = tpu.matmul %448, %449, %cst_109 {dimension_numbers = #tpu.dot_dimension_numbers<[1], [0], [0], [1], [0, 0, 1, 1], [], []>} : vector<9x33xbf16>, vector<33x32xbf16>, vector<9x32xf32> -> vector<9x32xf32>
    %451 = arith.truncf %450 : vector<9x32xf32> to vector<9x32xbf16>
    %452 = vector.extract_strided_slice %401 {offsets = [32, 0], sizes = [32, 64], strides = [1, 1]} : vector<64x64xbf16> to vector<32x64xbf16>
    %cst_110 = arith.constant dense<0.000000e+00> : vector<9x64xf32>
    %453 = tpu.matmul %451, %452, %cst_110 {dimension_numbers = #tpu.dot_dimension_numbers<[1], [0], [0], [1], [0, 0, 1, 1], [], []>} : vector<9x32xbf16>, vector<32x64xbf16>, vector<9x64xf32> -> vector<9x64xf32>
    %454 = arith.addf %429, %453 : vector<9x64xf32>
    %c0_111 = arith.constant 0 : index
    %c0_112 = arith.constant 0 : index
    %455 = vector.load %arg8[%c0_111, %c0_112] : memref<1x64xf32, #tpu.memory_space<vmem>>, vector<1x64xf32>
    %c0_113 = arith.constant 0 : index
    %c0_114 = arith.constant 0 : index
    %456 = vector.load %arg9[%c0_113, %c0_114] : memref<1x64xf32, #tpu.memory_space<vmem>>, vector<1x64xf32>
    %cst_115 = arith.constant dense<0.000000e+00> : vector<9xf32>
    %457 = vector.multi_reduction <add>, %454, %cst_115 [1] : vector<9x64xf32> to vector<9xf32>
    %458 = vector.shape_cast %457 : vector<9xf32> to vector<9x1xf32>
    %cst_116 = arith.constant 6.400000e+01 : f32
    %459 = vector.broadcast %cst_116 : f32 to vector<9x1xf32>
    %460 = arith.divf %458, %459 : vector<9x1xf32>
    %461 = vector.broadcast %460 : vector<9x1xf32> to vector<9x64xf32>
    %462 = arith.subf %454, %461 : vector<9x64xf32>
    %463 = arith.mulf %462, %462 : vector<9x64xf32>
    %cst_117 = arith.constant dense<0.000000e+00> : vector<9xf32>
    %464 = vector.multi_reduction <add>, %463, %cst_117 [1] : vector<9x64xf32> to vector<9xf32>
    %465 = vector.shape_cast %464 : vector<9xf32> to vector<9x1xf32>
    %cst_118 = arith.constant 6.400000e+01 : f32
    %466 = vector.broadcast %cst_118 : f32 to vector<9x1xf32>
    %467 = arith.divf %465, %466 : vector<9x1xf32>
    %cst_119 = arith.constant 9.99999997E-7 : f32
    %468 = vector.broadcast %cst_119 : f32 to vector<9x1xf32>
    %469 = arith.addf %467, %468 : vector<9x1xf32>
    %470 = math.rsqrt %469 : vector<9x1xf32>
    %471 = vector.broadcast %470 : vector<9x1xf32> to vector<9x64xf32>
    %472 = arith.mulf %462, %471 : vector<9x64xf32>
    %473 = vector.broadcast %455 : vector<1x64xf32> to vector<9x64xf32>
    %474 = arith.mulf %472, %473 : vector<9x64xf32>
    %475 = vector.broadcast %456 : vector<1x64xf32> to vector<9x64xf32>
    %476 = arith.addf %474, %475 : vector<9x64xf32>
    %477 = arith.truncf %476 : vector<9x64xf32> to vector<9x64xbf16>
    %c0_120 = arith.constant 0 : index
    %c0_121 = arith.constant 0 : index
    %478 = vector.load %arg10[%c0_120, %c0_121] : memref<64x256xbf16, #tpu.memory_space<vmem>>, vector<64x256xbf16>
    %cst_122 = arith.constant dense<0.000000e+00> : vector<9x256xf32>
    %479 = tpu.matmul %477, %478, %cst_122 {dimension_numbers = #tpu.dot_dimension_numbers<[1], [0], [0], [1], [0, 0, 1, 1], [], []>} : vector<9x64xbf16>, vector<64x256xbf16>, vector<9x256xf32> -> vector<9x256xf32>
    %c0_123 = arith.constant 0 : index
    %c0_124 = arith.constant 0 : index
    %480 = vector.load %arg11[%c0_123, %c0_124] : memref<1x256xf32, #tpu.memory_space<vmem>>, vector<1x256xf32>
    %481 = vector.broadcast %480 : vector<1x256xf32> to vector<9x256xf32>
    %482 = arith.addf %479, %481 : vector<9x256xf32>
    %cst_125 = arith.constant 5.000000e-01 : f32
    %483 = vector.broadcast %cst_125 : f32 to vector<9x256xf32>
    %484 = arith.mulf %483, %482 : vector<9x256xf32>
    %cst_126 = arith.constant 4.471500e-02 : f32
    %485 = vector.broadcast %cst_126 : f32 to vector<9x256xf32>
    %486 = arith.mulf %485, %482 : vector<9x256xf32>
    %487 = arith.mulf %486, %482 : vector<9x256xf32>
    %488 = arith.mulf %487, %482 : vector<9x256xf32>
    %489 = arith.addf %482, %488 : vector<9x256xf32>
    %cst_127 = arith.constant 0.797884583 : f32
    %490 = vector.broadcast %cst_127 : f32 to vector<9x256xf32>
    %491 = arith.mulf %490, %489 : vector<9x256xf32>
    %492 = math.tanh %491 : vector<9x256xf32>
    %cst_128 = arith.constant 1.000000e+00 : f32
    %493 = vector.broadcast %cst_128 : f32 to vector<9x256xf32>
    %494 = arith.addf %493, %492 : vector<9x256xf32>
    %495 = arith.mulf %484, %494 : vector<9x256xf32>
    %496 = arith.truncf %495 : vector<9x256xf32> to vector<9x256xbf16>
    %c0_129 = arith.constant 0 : index
    %c0_130 = arith.constant 0 : index
    %497 = vector.load %arg12[%c0_129, %c0_130] : memref<256x64xbf16, #tpu.memory_space<vmem>>, vector<256x64xbf16>
    %cst_131 = arith.constant dense<0.000000e+00> : vector<9x64xf32>
    %498 = tpu.matmul %496, %497, %cst_131 {dimension_numbers = #tpu.dot_dimension_numbers<[1], [0], [0], [1], [0, 0, 1, 1], [], []>} : vector<9x256xbf16>, vector<256x64xbf16>, vector<9x64xf32> -> vector<9x64xf32>
    %499 = arith.addf %454, %498 : vector<9x64xf32>
    %c0_132 = arith.constant 0 : index
    %c0_133 = arith.constant 0 : index
    %500 = vector.load %arg13[%c0_132, %c0_133] : memref<1x64xf32, #tpu.memory_space<vmem>>, vector<1x64xf32>
    %501 = vector.broadcast %500 : vector<1x64xf32> to vector<9x64xf32>
    %502 = arith.addf %499, %501 : vector<9x64xf32>
    %c0_134 = arith.constant 0 : index
    %c0_135 = arith.constant 0 : index
    %c0_136 = arith.constant 0 : index
    %503 = vector.load %arg14[%c0_134, %c0_135, %c0_136] : memref<1x9x64xf32, #tpu.memory_space<vmem>>, vector<1x9x64xf32>
    %504 = vector.shape_cast %503 : vector<1x9x64xf32> to vector<9x64xf32>
    %505 = vector.shape_cast %502 : vector<9x64xf32> to vector<1x9x64xf32>
    tpu.vector_store %arg14[%c0_134, %c0_135, %c0_136], %505 {strides = array<i32>} : memref<1x9x64xf32, #tpu.memory_space<vmem>>, vector<1x9x64xf32>,
    return
  }
  func.func @transform_0(%arg0: i32) -> (i32, i32, i32) {
    %c0_i32 = arith.constant 0 : i32
    %c0_i32_0 = arith.constant 0 : i32
    %c0_i32_1 = arith.constant 0 : i32
    return %arg0, %c0_i32, %c0_i32_0 : i32, i32, i32
  }
  func.func @transform_1(%arg0: i32) -> (i32, i32) {
    %c0_i32 = arith.constant 0 : i32
    %c0_i32_0 = arith.constant 0 : i32
    %c0_i32_1 = arith.constant 0 : i32
    return %c0_i32, %c0_i32_0 : i32, i32
  }
  func.func @transform_2(%arg0: i32) -> (i32, i32) {
    %c0_i32 = arith.constant 0 : i32
    %c0_i32_0 = arith.constant 0 : i32
    %c0_i32_1 = arith.constant 0 : i32
    return %c0_i32, %c0_i32_0 : i32, i32
  }
  func.func @transform_3(%arg0: i32) -> (i32, i32) {
    %c0_i32 = arith.constant 0 : i32
    %c0_i32_0 = arith.constant 0 : i32
    %c0_i32_1 = arith.constant 0 : i32
    return %c0_i32, %c0_i32_0 : i32, i32
  }
  func.func @transform_4(%arg0: i32) -> (i32, i32) {
    %c0_i32 = arith.constant 0 : i32
    %c0_i32_0 = arith.constant 0 : i32
    %c0_i32_1 = arith.constant 0 : i32
    return %c0_i32, %c0_i32_0 : i32, i32
  }
  func.func @transform_5(%arg0: i32) -> (i32, i32) {
    %c0_i32 = arith.constant 0 : i32
    %c0_i32_0 = arith.constant 0 : i32
    %c0_i32_1 = arith.constant 0 : i32
    return %c0_i32, %c0_i32_0 : i32, i32
  }
  func.func @transform_6(%arg0: i32) -> (i32, i32) {
    %c0_i32 = arith.constant 0 : i32
    %c0_i32_0 = arith.constant 0 : i32
    %c0_i32_1 = arith.constant 0 : i32
    return %c0_i32, %c0_i32_0 : i32, i32
  }
  func.func @transform_7(%arg0: i32) -> (i32, i32) {
    %c0_i32 = arith.constant 0 : i32
    %c0_i32_0 = arith.constant 0 : i32
    %c0_i32_1 = arith.constant 0 : i32
    return %c0_i32, %c0_i32_0 : i32, i32
  }
  func.func @transform_8(%arg0: i32) -> (i32, i32) {
    %c0_i32 = arith.constant 0 : i32
    %c0_i32_0 = arith.constant 0 : i32
    %c0_i32_1 = arith.constant 0 : i32
    return %c0_i32, %c0_i32_0 : i32, i32
  }
  func.func @transform_9(%arg0: i32) -> (i32, i32) {
    %c0_i32 = arith.constant 0 : i32
    %c0_i32_0 = arith.constant 0 : i32
    %c0_i32_1 = arith.constant 0 : i32
    return %c0_i32, %c0_i32_0 : i32, i32
  }
  func.func @transform_10(%arg0: i32) -> (i32, i32) {
    %c0_i32 = arith.constant 0 : i32
    %c0_i32_0 = arith.constant 0 : i32
    %c0_i32_1 = arith.constant 0 : i32
    return %c0_i32, %c0_i32_0 : i32, i32
  }
  func.func @transform_11(%arg0: i32) -> (i32, i32) {
    %c0_i32 = arith.constant 0 : i32
    %c0_i32_0 = arith.constant 0 : i32
    %c0_i32_1 = arith.constant 0 : i32
    return %c0_i32, %c0_i32_0 : i32, i32
  }
  func.func @transform_12(%arg0: i32) -> (i32, i32) {
    %c0_i32 = arith.constant 0 : i32
    %c0_i32_0 = arith.constant 0 : i32
    %c0_i32_1 = arith.constant 0 : i32
    return %c0_i32, %c0_i32_0 : i32, i32
  }
  func.func @transform_13(%arg0: i32) -> (i32, i32, i32) {
    %c0_i32 = arith.constant 0 : i32
    %c0_i32_0 = arith.constant 0 : i32
    %c0_i32_1 = arith.constant 0 : i32
    return %arg0, %c0_i32, %c0_i32_0 : i32, i32, i32
  }
}

module attributes {stable_mosaic.version = 11 : i64} {
  func.func @_cls_head_kernel(%arg0: i32, %arg1: memref<2x64xf32, #tpu.memory_space<vmem>>, %arg2: memref<1x64xf32, #tpu.memory_space<vmem>>, %arg3: memref<1x64xf32, #tpu.memory_space<vmem>>, %arg4: memref<64x7xf32, #tpu.memory_space<vmem>>, %arg5: memref<1x7xf32, #tpu.memory_space<vmem>>, %arg6: memref<2x7xf32, #tpu.memory_space<vmem>>) attributes {dimension_semantics = [#tpu.dimension_semantics<arbitrary>], iteration_bounds = array<i64: 1>, scalar_prefetch = 0 : i64, scratch_operands = 0 : i64, tpu.core_type = #tpu.core_type<tc>, window_params = [{pipeline_mode = #tpu.pipeline_mode<synchronous>, transform_indices = @transform_0, window_bounds = array<i64: 2, 64>}, {pipeline_mode = #tpu.pipeline_mode<synchronous>, transform_indices = @transform_1, window_bounds = array<i64: 1, 64>}, {pipeline_mode = #tpu.pipeline_mode<synchronous>, transform_indices = @transform_2, window_bounds = array<i64: 1, 64>}, {pipeline_mode = #tpu.pipeline_mode<synchronous>, transform_indices = @transform_3, window_bounds = array<i64: 64, 7>}, {pipeline_mode = #tpu.pipeline_mode<synchronous>, transform_indices = @transform_4, window_bounds = array<i64: 1, 7>}, {pipeline_mode = #tpu.pipeline_mode<synchronous>, transform_indices = @transform_5, window_bounds = array<i64: 2, 7>}]} {
    %c0 = arith.constant 0 : index
    %c0_0 = arith.constant 0 : index
    %0 = vector.load %arg1[%c0, %c0_0] : memref<2x64xf32, #tpu.memory_space<vmem>>, vector<2x64xf32>
    %c0_1 = arith.constant 0 : index
    %c0_2 = arith.constant 0 : index
    %1 = vector.load %arg2[%c0_1, %c0_2] : memref<1x64xf32, #tpu.memory_space<vmem>>, vector<1x64xf32>
    %c0_3 = arith.constant 0 : index
    %c0_4 = arith.constant 0 : index
    %2 = vector.load %arg3[%c0_3, %c0_4] : memref<1x64xf32, #tpu.memory_space<vmem>>, vector<1x64xf32>
    %cst = arith.constant dense<0.000000e+00> : vector<2xf32>
    %3 = vector.multi_reduction <add>, %0, %cst [1] : vector<2x64xf32> to vector<2xf32>
    %4 = vector.shape_cast %3 : vector<2xf32> to vector<2x1xf32>
    %cst_5 = arith.constant 6.400000e+01 : f32
    %5 = vector.broadcast %cst_5 : f32 to vector<2x1xf32>
    %6 = arith.divf %4, %5 : vector<2x1xf32>
    %7 = vector.broadcast %6 : vector<2x1xf32> to vector<2x64xf32>
    %8 = arith.subf %0, %7 : vector<2x64xf32>
    %9 = arith.mulf %8, %8 : vector<2x64xf32>
    %cst_6 = arith.constant dense<0.000000e+00> : vector<2xf32>
    %10 = vector.multi_reduction <add>, %9, %cst_6 [1] : vector<2x64xf32> to vector<2xf32>
    %11 = vector.shape_cast %10 : vector<2xf32> to vector<2x1xf32>
    %cst_7 = arith.constant 6.400000e+01 : f32
    %12 = vector.broadcast %cst_7 : f32 to vector<2x1xf32>
    %13 = arith.divf %11, %12 : vector<2x1xf32>
    %cst_8 = arith.constant 9.99999997E-7 : f32
    %14 = vector.broadcast %cst_8 : f32 to vector<2x1xf32>
    %15 = arith.addf %13, %14 : vector<2x1xf32>
    %16 = math.rsqrt %15 : vector<2x1xf32>
    %17 = vector.broadcast %16 : vector<2x1xf32> to vector<2x64xf32>
    %18 = arith.mulf %8, %17 : vector<2x64xf32>
    %19 = vector.broadcast %1 : vector<1x64xf32> to vector<2x64xf32>
    %20 = arith.mulf %18, %19 : vector<2x64xf32>
    %21 = vector.broadcast %2 : vector<1x64xf32> to vector<2x64xf32>
    %22 = arith.addf %20, %21 : vector<2x64xf32>
    %c0_9 = arith.constant 0 : index
    %c0_10 = arith.constant 0 : index
    %23 = vector.load %arg4[%c0_9, %c0_10] : memref<64x7xf32, #tpu.memory_space<vmem>>, vector<64x7xf32>
    %cst_11 = arith.constant dense<0.000000e+00> : vector<2x7xf32>
    %24 = tpu.matmul %22, %23, %cst_11 {dimension_numbers = #tpu.dot_dimension_numbers<[1], [0], [0], [1], [0, 0, 1, 1], [], []>} : vector<2x64xf32>, vector<64x7xf32>, vector<2x7xf32> -> vector<2x7xf32>
    %c0_12 = arith.constant 0 : index
    %c0_13 = arith.constant 0 : index
    %25 = vector.load %arg5[%c0_12, %c0_13] : memref<1x7xf32, #tpu.memory_space<vmem>>, vector<1x7xf32>
    %26 = vector.broadcast %25 : vector<1x7xf32> to vector<2x7xf32>
    %27 = arith.addf %24, %26 : vector<2x7xf32>
    %cst_14 = arith.constant dense<0xFF800000> : vector<2xf32>
    %28 = vector.multi_reduction <maximumf>, %27, %cst_14 [1] : vector<2x7xf32> to vector<2xf32>
    %29 = vector.shape_cast %28 : vector<2xf32> to vector<2x1xf32>
    %30 = vector.broadcast %29 : vector<2x1xf32> to vector<2x7xf32>
    %31 = arith.subf %27, %30 : vector<2x7xf32>
    %32 = math.exp %31 : vector<2x7xf32>
    %cst_15 = arith.constant dense<0.000000e+00> : vector<2xf32>
    %33 = vector.multi_reduction <add>, %32, %cst_15 [1] : vector<2x7xf32> to vector<2xf32>
    %34 = vector.shape_cast %33 : vector<2xf32> to vector<2x1xf32>
    %35 = vector.broadcast %34 : vector<2x1xf32> to vector<2x7xf32>
    %36 = arith.divf %32, %35 : vector<2x7xf32>
    %c0_16 = arith.constant 0 : index
    %c0_17 = arith.constant 0 : index
    %37 = vector.load %arg6[%c0_16, %c0_17] : memref<2x7xf32, #tpu.memory_space<vmem>>, vector<2x7xf32>
    tpu.vector_store %arg6[%c0_16, %c0_17], %36 {strides = array<i32>} : memref<2x7xf32, #tpu.memory_space<vmem>>, vector<2x7xf32>,
    return
  }
  func.func @transform_0(%arg0: i32) -> (i32, i32) {
    %c0_i32 = arith.constant 0 : i32
    %c0_i32_0 = arith.constant 0 : i32
    %c0_i32_1 = arith.constant 0 : i32
    return %c0_i32, %c0_i32_0 : i32, i32
  }
  func.func @transform_1(%arg0: i32) -> (i32, i32) {
    %c0_i32 = arith.constant 0 : i32
    %c0_i32_0 = arith.constant 0 : i32
    %c0_i32_1 = arith.constant 0 : i32
    return %c0_i32, %c0_i32_0 : i32, i32
  }
  func.func @transform_2(%arg0: i32) -> (i32, i32) {
    %c0_i32 = arith.constant 0 : i32
    %c0_i32_0 = arith.constant 0 : i32
    %c0_i32_1 = arith.constant 0 : i32
    return %c0_i32, %c0_i32_0 : i32, i32
  }
  func.func @transform_3(%arg0: i32) -> (i32, i32) {
    %c0_i32 = arith.constant 0 : i32
    %c0_i32_0 = arith.constant 0 : i32
    %c0_i32_1 = arith.constant 0 : i32
    return %c0_i32, %c0_i32_0 : i32, i32
  }
  func.func @transform_4(%arg0: i32) -> (i32, i32) {
    %c0_i32 = arith.constant 0 : i32
    %c0_i32_0 = arith.constant 0 : i32
    %c0_i32_1 = arith.constant 0 : i32
    return %c0_i32, %c0_i32_0 : i32, i32
  }
  func.func @transform_5(%arg0: i32) -> (i32, i32) {
    %c0_i32 = arith.constant 0 : i32
    %c0_i32_0 = arith.constant 0 : i32
    %c0_i32_1 = arith.constant 0 : i32
    return %c0_i32, %c0_i32_0 : i32, i32
  }
}

</mosaic_0001>

<bundles_post_ra>
// kernel: mvit_forward.4
= control target key start
LH: loop header
LB: loop body
LE: loop exit
PB: predicated region body
PF: predicated region fallthrough
CT: control target
= control target key end

     0   :  { %s974_s18 = smov 0   ;;  %s1182_s0 = inlined_call_operand.vmem [shape: f32[2,441,32], index: 0, kind: input, shape index: {}]   ;;  %s1183_s1 = inlined_call_operand.vmem [shape: bf16[441,64], index: 1, kind: input, shape index: {}]   ;;  %s1184_s2 = inlined_call_operand.vmem [shape: f32[1,64], index: 2, kind: input, shape index: {}]   ;;  %s1185_s3 = inlined_call_operand.vmem [shape: f32[1,64], index: 3, kind: input, shape index: {}]   ;;  %s1186_s4 = inlined_call_operand.vmem [shape: f32[33,64], index: 4, kind: input, shape index: {}]   ;;  %s1187_s5 = inlined_call_operand.vmem [shape: f32[2,33,64], index: 5, kind: output, shape index: {}]  }
   0x1 LB: > { %s826_s19 = sadd.s32 4294967295, %s940_s18   ;;  %p830_p0 = scmp.ge.s32.totalorder %s940_s18, 1  ;;  %s940_s18 = sphi %s974_s18, %s15_s18  }
   0x2   : > { %p187_p1 = scmp.lt.s32.totalorder %s940_s18, 3 }
   0x4   : > { %p188_p2 = pnand %p830_p0, %p187_p1 }
   0x5   : > { %p215_p3 = scmp.lt.s32.totalorder (!%p188_p2), %s826_s19, 1  ;;  %v942_v0 = vmov (!%p188_p2), 0   ;;  %v906_v1 = vld [vmem:[%s1183_s1 + $0x40] sm:$0xff] (!%p188_p2)   ;;  %v909_v4 = vld [vmem:[%s1183_s1 + $0x48] sm:$0xff] (!%p188_p2)   ;;  %v912_v43 = vld [vmem:[%s1183_s1 + $0x50] sm:$0xff] (!%p188_p2)   ;;  %vm618_vm0 = vcmask (!%p188_p2), 1043456  }
   0x6   : > { %191 = sbr.rel (%p188_p2) target bundleno = 386 (0x182), region = 40  ;;  %674 = vmatprep.subr.bf16.mxu1 (!%p188_p2), %v942_v0  ;;  %v907_v2 = vld [vmem:[%s1183_s1 + $0x80] sm:$0xff] (!%p188_p2)   ;;  %866 = vmatprep.subr.bf16.mxu0 (!%p188_p2), %v906_v1  ;;  %v910_v5 = vld [vmem:[%s1183_s1 + $0x88] sm:$0xff] (!%p188_p2)   ;;  %v913_v47 = vld [vmem:[%s1183_s1 + $0x90] sm:$0xff] (!%p188_p2)   ;;  %vm619_vm1 = vcmask (!%p188_p2), 1044480   ;;  %vm611_vm2 = vcmask (!%p188_p2), 465920  }
   0x7   : > { %v908_v3 = vld [vmem:[%s1183_s1] sm:$0xff] (!%p188_p2)   ;;  %675 = vmatpush1.bf16.msra.mxu1 (!%p188_p2), %v907_v2  ;;  %v911_v6 = vld [vmem:[%s1183_s1 + $0x8] sm:$0xff] (!%p188_p2)   ;;  %v914_v49 = vld [vmem:[%s1183_s1 + $0x10] sm:$0xff] (!%p188_p2)   ;;  %vm728_vm3 = vcmask (!%p188_p2), 1046528   ;;  %vm750_vm4 = vcmask (!%p188_p2), 1040384   ;;  %vm764_vm5 = vcmask (!%p188_p2), 523264  }
   0x8   : > { %867 = vmatpush3.bf16.msra.mxu0 (!%p188_p2), %v908_v3  ;;  %676 = vmatprep.subr.bf16.mxu1 (!%p188_p2), %v942_v0  ;;  %v915_v50 = vld [vmem:[%s1183_s1 + $0x58] sm:$0xff] (!%p188_p2)   ;;  %v918_v59 = vld [vmem:[%s1183_s1 + $0x60] sm:$0xff] (!%p188_p2)   ;;  %v921_v3 = vld [vmem:[%s1183_s1 + $0x68] sm:$0xff] (!%p188_p2)   ;;  %vm769_vm6 = vcmask (!%p188_p2), 516096  }
   0x9   : > { %868 = vmatprep.subr.bf16.mxu0 (!%p188_p2), %v909_v4  ;;  %v916_v53 = vld [vmem:[%s1183_s1 + $0x98] sm:$0xff] (!%p188_p2)   ;;  %v919_v60 = vld [vmem:[%s1183_s1 + $0xa0] sm:$0xff] (!%p188_p2)  }
   0xa   : > { %v917_v57 = vld [vmem:[%s1183_s1 + $0x18] sm:$0xff] (!%p188_p2)   ;;  %v920_v63 = vld [vmem:[%s1183_s1 + $0x20] sm:$0xff] (!%p188_p2)  }
   0xb   : > { %677 = vmatpush1.bf16.msra.mxu1 (!%p188_p2), %v910_v5 }
   0xc   : > { %869 = vmatpush3.bf16.msra.mxu0 (!%p188_p2), %v911_v6  ;;  %678 = vmatprep.subr.bf16.mxu1 (!%p188_p2), %v942_v0  ;;  %v922_v6 = vld [vmem:[%s1183_s1 + $0xa8] sm:$0xff] (!%p188_p2)  }
   0xd   : > { %s1189_s19 = smov (!%p215_p3, %s826_s19), 1  ;;  %870 = vmatprep.subr.bf16.mxu0 %v912_v43  ;;  %v932_v43 = vld [vmem:[%s1183_s1 + $0xd0] sm:$0xff]  }
   0xe   : > { %s894_s26 = smul.u32 448, %s1189_s19 }
   0xf   : > { %679 = vmatpush1.bf16.msra.mxu1 %v913_v47  ;;  %s895_s22 = smul.u32 40, %s1189_s19 }
  0x10   : > { %s1005_s8 = scalar_lea.vmem %s1182_s0, %s894_s26  ;;  %871 = vmatpush3.bf16.msra.mxu0 %v914_v49  ;;  %680 = vmatprep.subr.bf16.mxu1 %v942_v0 }
  0x11   : > { %v242_v7 = vld [vmem:[%s1005_s8 + $0x80] sm:$0xff]  ;;  %v243_v8 = vld [vmem:[%s1005_s8 + $0x88] sm:$0xff]  ;;  %v244_v12 = vld [vmem:[%s1005_s8 + $0x90] sm:$0xff]  ;;  %872 = vmatprep.subr.bf16.mxu0 %v915_v50  ;;  %s224_s28 = scalar_lea.vmem %s1187_s5, %s895_s22 }
  0x12   : > { %v226_v9 = vld [vmem:[%s1005_s8] sm:$0xff]  ;;  %v290_v10 = vpack.c.bf16 %v243_v8, %v242_v7  ;;  %v227_v11 = vld [vmem:[%s1005_s8 + $0x8] sm:$0xff]  ;;  %v245_v13 = vld [vmem:[%s1005_s8 + $0x98] sm:$0xff] }
  0x13   : > { %v282_v14 = vpack.c.bf16 %v227_v11, %v226_v9  ;;  %v228_v15 = vld [vmem:[%s1005_s8 + $0x10] sm:$0xff]  ;;  %v229_v16 = vld [vmem:[%s1005_s8 + $0x18] sm:$0xff]  ;;  %v291_v17 = vpack.c.bf16 %v245_v13, %v244_v12  ;;  %v246_v19 = vld [vmem:[%s1005_s8 + $0xa0] sm:$0xff]  ;;  %681 = vmatpush1.bf16.msra.mxu1 %v916_v53 }
  0x14   : > { %396 = vxpose.xlu0.c.b16.start [1/8] (narrow) %v290_v10, 32  ;;  %v283_v18 = vpack.c.bf16 %v229_v16, %v228_v15  ;;  %v247_v20 = vld [vmem:[%s1005_s8 + $0xa8] sm:$0xff]  ;;  %v230_v21 = vld [vmem:[%s1005_s8 + $0x20] sm:$0xff]  ;;  %v248_v25 = vld [vmem:[%s1005_s8 + $0xb0] sm:$0xff]  ;;  %873 = vmatpush3.bf16.msra.mxu0 %v917_v57 }
  0x15   : > { %380 = vxpose.xlu1.c.b16.start [1/8] (narrow) %v282_v14, 32  ;;  %v231_v22 = vld [vmem:[%s1005_s8 + $0x28] sm:$0xff]  ;;  %v292_v23 = vpack.c.bf16 %v247_v20, %v246_v19  ;;  %v249_v26 = vld [vmem:[%s1005_s8 + $0xb8] sm:$0xff]  ;;  %v232_v27 = vld [vmem:[%s1005_s8 + $0x30] sm:$0xff]  ;;  %682 = vmatprep.subr.bf16.mxu1 %v942_v0 }
  0x16   : > { %v284_v24 = vpack.c.bf16 %v231_v22, %v230_v21  ;;  %v233_v28 = vld [vmem:[%s1005_s8 + $0x38] sm:$0xff]  ;;  %v293_v29 = vpack.c.bf16 %v249_v26, %v248_v25  ;;  %v250_v31 = vld [vmem:[%s1005_s8 + $0xc0] sm:$0xff]  ;;  %v251_v32 = vld [vmem:[%s1005_s8 + $0xc8] sm:$0xff]  ;;  %874 = vmatprep.subr.bf16.mxu0 %v918_v59 }
  0x17   : > { %v285_v30 = vpack.c.bf16 %v233_v28, %v232_v27  ;;  %v234_v33 = vld [vmem:[%s1005_s8 + $0x40] sm:$0xff]  ;;  %v235_v34 = vld [vmem:[%s1005_s8 + $0x48] sm:$0xff]  ;;  %v294_v35 = vpack.c.bf16 %v251_v32, %v250_v31  ;;  %v252_v37 = vld [vmem:[%s1005_s8 + $0xd0] sm:$0xff]  ;;  %683 = vmatpush1.bf16.msra.mxu1 %v919_v60 }
  0x18   : > { %397 = vxpose.xlu0.c.b16.cont [2/8] (narrow) %v291_v17, 32  ;;  %v286_v36 = vpack.c.bf16 %v235_v34, %v234_v33  ;;  %v253_v38 = vld [vmem:[%s1005_s8 + $0xd8] sm:$0xff]  ;;  %v236_v39 = vld [vmem:[%s1005_s8 + $0x50] sm:$0xff]  ;;  %v254_v41 = vld [vmem:[%s1005_s8 + $0xe0] sm:$0xff]  ;;  %875 = vmatpush3.bf16.msra.mxu0 %v920_v63 }
  0x19   : > { %381 = vxpose.xlu1.c.b16.cont [2/8] (narrow) %v283_v18, 32  ;;  %v237_v40 = vld [vmem:[%s1005_s8 + $0x58] sm:$0xff]  ;;  %v255_v42 = vld [vmem:[%s1005_s8 + $0xe8] sm:$0xff]  ;;  %v295_v44 = vpack.c.bf16 %v253_v38, %v252_v37  ;;  %v238_v45 = vld [vmem:[%s1005_s8 + $0x60] sm:$0xff]  ;;  %684 = vmatprep.subr.bf16.mxu1 %v942_v0  ;;  %v943_v38 = vmov 65535  }
  0x1a   : > { %v239_v46 = vld [vmem:[%s1005_s8 + $0x68] sm:$0xff]  ;;  %v287_v48 = vpack.c.bf16 %v237_v40, %v236_v39  ;;  %v256_v51 = vld [vmem:[%s1005_s8 + $0xf0] sm:$0xff]  ;;  %v257_v52 = vld [vmem:[%s1005_s8 + $0xf8] sm:$0xff]  ;;  %v296_v54 = vpack.c.bf16 %v255_v42, %v254_v41  ;;  %876 = vmatprep.subr.bf16.mxu0 %v921_v3  ;;  %v620_v39 = vsel %vm618_vm0, 4294967295, %v943_v38 }
  0x1b   : > { %v240_v55 = vld [vmem:[%s1005_s8 + $0x70] sm:$0xff]  ;;  %v241_v56 = vld [vmem:[%s1005_s8 + $0x78] sm:$0xff]  ;;  %v288_v58 = vpack.c.bf16 %v239_v46, %v238_v45  ;;  %v274_v61 = vld [vmem:[%s1005_s8 + $0x180] sm:$0xff]  ;;  %v297_v1 = vpack.c.bf16 %v257_v52, %v256_v51  ;;  %685 = vmatpush1.bf16.msra.mxu1 %v922_v6  ;;  %v621_v45 = vsel %vm619_vm1, %v620_v39, 0 }
  0x1c   : > { %398 = vxpose.xlu0.c.b16.cont [3/8] (narrow) %v292_v23, 32  ;;  %v275_v62 = vld [vmem:[%s1005_s8 + $0x188] sm:$0xff]  ;;  %v258_v2 = vld [vmem:[%s1005_s8 + $0x100] sm:$0xff]  ;;  %v289_v4 = vpack.c.bf16 %v241_v56, %v240_v55  ;;  %v276_v7 = vld [vmem:[%s1005_s8 + $0x190] sm:$0xff]  ;;  %686 = vmatprep.subr.bf16.mxu1 %v942_v0 }
  0x1d   : > { %382 = vxpose.xlu1.c.b16.cont [3/8] (narrow) %v284_v24, 32  ;;  %v259_v5 = vld [vmem:[%s1005_s8 + $0x108] sm:$0xff]  ;;  %v277_v8 = vld [vmem:[%s1005_s8 + $0x198] sm:$0xff]  ;;  %v306_v10 = vpack.c.bf16 %v275_v62, %v274_v61  ;;  %v260_v11 = vld [vmem:[%s1005_s8 + $0x110] sm:$0xff] }
  0x1e   : > { %v923_v9 = vld [vmem:[%s1183_s1 + $0x28] sm:$0xff]   ;;  %v924_v12 = vld [vmem:[%s1183_s1 + $0x70] sm:$0xff]   ;;  %v298_v13 = vpack.c.bf16 %v259_v5, %v258_v2  ;;  %v261_v14 = vld [vmem:[%s1005_s8 + $0x118] sm:$0xff]  ;;  %v307_v19 = vpack.c.bf16 %v277_v8, %v276_v7 }
  0x1f   : > { %v925_v15 = vld [vmem:[%s1183_s1 + $0xb0] sm:$0xff]   ;;  %v278_v16 = vld [vmem:[%s1005_s8 + $0x1a0] sm:$0xff]  ;;  %v279_v17 = vld [vmem:[%s1005_s8 + $0x1a8] sm:$0xff]  ;;  %877 = vmatpush3.bf16.msra.mxu0 %v923_v9  ;;  %v299_v22 = vpack.c.bf16 %v261_v14, %v260_v11 }
  0x20   : > { %399 = vxpose.xlu0.c.b16.cont [4/8] (narrow) %v293_v29, 32  ;;  %v926_v18 = vld [vmem:[%s1183_s1 + $0x30] sm:$0xff]   ;;  %v262_v20 = vld [vmem:[%s1005_s8 + $0x120] sm:$0xff]  ;;  %878 = vmatprep.subr.bf16.mxu0 %v924_v12  ;;  %v927_v21 = vld [vmem:[%s1183_s1 + $0x78] sm:$0xff]   ;;  %v308_v26 = vpack.c.bf16 %v279_v17, %v278_v16 }
  0x21   : > { %383 = vxpose.xlu1.c.b16.cont [4/8] (narrow) %v285_v30, 32  ;;  %v263_v23 = vld [vmem:[%s1005_s8 + $0x128] sm:$0xff]  ;;  %687 = vmatpush1.bf16.msra.mxu1 %v925_v15  ;;  %v928_v24 = vld [vmem:[%s1183_s1 + $0xb8] sm:$0xff]   ;;  %v280_v28 = vld [vmem:[%s1005_s8 + $0x1b0] sm:$0xff] }
  0x22   : > { %688 = vmatprep.subr.bf16.mxu1 %v942_v0  ;;  %v929_v25 = vld [vmem:[%s1183_s1 + $0x38] sm:$0xff]   ;;  %v300_v27 = vpack.c.bf16 %v263_v23, %v262_v20  ;;  %v264_v30 = vld [vmem:[%s1005_s8 + $0x130] sm:$0xff]  ;;  %v930_v32 = vld [vmem:[%s1183_s1 + $0xc0] sm:$0xff]  }
  0x23   : > { %879 = vmatpush3.bf16.msra.mxu0 %v926_v18  ;;  %v281_v29 = vld [vmem:[%s1005_s8 + $0x1b8] sm:$0x1]  ;;  %v931_v37 = vld [vmem:[%s1183_s1 + $0xc8] sm:$0xff]   ;;  %v268_v41 = vld [vmem:[%s1005_s8 + $0x150] sm:$0xff] }
  0x24   : > { %400 = vxpose.xlu0.c.b16.cont [5/8] (narrow) %v294_v35, 32  ;;  %880 = vmatprep.subr.bf16.mxu0 %v927_v21  ;;  %v265_v31 = vld [vmem:[%s1005_s8 + $0x138] sm:$0xff]  ;;  %v309_v33 = vpack.c.bf16 %v281_v29, %v280_v28  ;;  %v266_v35 = vld [vmem:[%s1005_s8 + $0x140] sm:$0xff]  ;;  %v272_v51 = vld [vmem:[%s1005_s8 + $0x170] sm:$0xff] }
  0x25   : > { %384 = vxpose.xlu1.c.b16.cont [5/8] (narrow) %v286_v36, 32  ;;  %689 = vmatpush1.bf16.msra.mxu1 %v928_v24  ;;  %v301_v34 = vpack.c.bf16 %v265_v31, %v264_v30  ;;  %v267_v36 = vld [vmem:[%s1005_s8 + $0x148] sm:$0xff]  ;;  %v269_v42 = vld [vmem:[%s1005_s8 + $0x158] sm:$0xff]  ;;  %v270_v47 = vld [vmem:[%s1005_s8 + $0x160] sm:$0xff] }
  0x26   : > { %690 = vmatprep.subr.bf16.mxu1 %v942_v0  ;;  %v302_v40 = vpack.c.bf16 %v267_v36, %v266_v35  ;;  %v303_v46 = vpack.c.bf16 %v269_v42, %v268_v41  ;;  %v273_v52 = vld [vmem:[%s1005_s8 + $0x178] sm:$0xff]  ;;  %v367_v11 = vld [vmem:[%s1186_s4 + $0x8] sm:$0xff]  ;;  %v368_v12 = vld [vmem:[%s1186_s4 + $0x10] sm:$0xff] }
  0x27   : > { %881 = vmatpush3.bf16.msra.mxu0 %v929_v25  ;;  %v305_v53 = vpack.c.bf16 %v273_v52, %v272_v51  ;;  %v730_v15 = vrot.slane %v367_v11, 1  ;;  %v732_v16 = vrot.slane %v368_v12, 1  ;;  %v371_v18 = vld [vmem:[%s1185_s3] sm:$0x1]  ;;  %v369_v24 = vld [vmem:[%s1186_s4 + $0x18] sm:$0xff] }
  0x28   : > { %401 = vxpose.xlu0.c.b16.cont [6/8] (narrow) %v295_v44, 32  ;;  %v933_v44 = vld [vmem:[%s1183_s1 + $0xd8] sm:$0x1f]   ;;  %v370_v31 = vld [vmem:[%s1186_s4 + $0x20] sm:$0x1] }
  0x29   : > { %385 = vxpose.xlu1.c.b16.cont [6/8] (narrow) %v287_v48, 32  ;;  %691 = vmatpush1.bf16.msra.mxu1 %v930_v32  ;;  %v271_v48 = vld [vmem:[%s1005_s8 + $0x168] sm:$0xff]  ;;  %v623_v49 = vand.u32 %v933_v44, %v621_v45  ;;  %v734_v32 = vrot.slane %v369_v24, 1  ;;  %v736_v35 = vrot.slane %v370_v31, 1 }
  0x2a   : > { %692 = vmatprep.subr.bf16.mxu1 %v942_v0  ;;  %v304_v50 = vpack.c.bf16 %v271_v48, %v270_v47 }
  0x2c   : > { %402 = vxpose.xlu0.c.b16.cont [7/8] (narrow) %v296_v54, 32 }
  0x2d   : > { %386 = vxpose.xlu1.c.b16.cont [7/8] (narrow) %v288_v58, 32  ;;  %693 = vmatpush1.bf16.msra.mxu1 %v931_v37 }
  0x2e   : > { %694 = vmatprep.subr.bf16.mxu1 %v942_v0 }
  0x30   : > { %403 = vxpose.xlu0.c.b16.end [8/8] (narrow) %v297_v1, 32 }
  0x31   : > { %387 = vxpose.xlu1.c.b16.end [8/8] (narrow) %v289_v4, 32  ;;  %695 = vmatpush1.bf16.msra.mxu1 %v932_v43 }
  0x32   : > { %696 = vmatprep.subr.bf16.mxu1 %v942_v0 }
  0x34   : > { %428 = vxpose.xlu0.c.b16.start [1/4] (short) (narrow) %v306_v10, 32  ;;  %v366_v10 = vld [vmem:[%s1186_s4] sm:$0xff] }
  0x35   : > { %412 = vxpose.xlu1.c.b16.start [1/8] (narrow) %v298_v13, 32  ;;  %697 = vmatpush1.bf16.msra.mxu1 %v623_v49  ;;  %v833_v13 = vld [vmem:[%s1184_s2] ss:$0 sm:$0xff]  ;;  %v729_v14 = vrot.slane %v366_v10, 1 }
  0x37   : > { %v731_v20 = vsel %vm728_vm3, %v729_v14, %v730_v15 }
  0x38   : > { %429 = vxpose.xlu0.c.b16.cont [2/4] (short) (narrow) %v307_v19, 32 }
  0x39   : > { %413 = vxpose.xlu1.c.b16.cont [2/8] (narrow) %v299_v22, 32 }
  0x3c   : > { %430 = vxpose.xlu0.c.b16.cont [3/4] (short) (narrow) %v308_v26, 32  ;;  %v733_v26 = vsel %vm728_vm3, %v730_v15, %v732_v16 }
  0x3d   : > { %414 = vxpose.xlu1.c.b16.cont [3/8] (narrow) %v300_v27, 32  ;;  %v372_v27 = vadd.f32 %v371_v18, %v366_v10 }
  0x40   : > { %431 = vxpose.xlu0.c.b16.end [4/4] (short) (narrow) %v309_v33, 32 }
  0x41   : > { %415 = vxpose.xlu1.c.b16.cont [4/8] (narrow) %v301_v34, 32 }
  0x45   : > { %416 = vxpose.xlu1.c.b16.cont [5/8] (narrow) %v302_v40, 32  ;;  %v735_v40 = vsel %vm728_vm3, %v732_v16, %v734_v32 }
  0x49   : > { %417 = vxpose.xlu1.c.b16.cont [6/8] (narrow) %v303_v46, 32  ;;  %v737_v46 = vsel %vm728_vm3, %v734_v32, %v736_v35 }
  0x4d   : > { %418 = vxpose.xlu1.c.b16.cont [7/8] (narrow) %v304_v50, 32 }
  0x51   : > { %419 = vxpose.xlu1.c.b16.end [8/8] (narrow) %v305_v53, 32 }
  0x7a   : > { %v404_v54 = vpop.trf.xlu0 }
  0x7b   : > { %657 = vmatprep.mubr.bf16.mxu0 %v404_v54  ;;  %v388_v55 = vpop.trf.xlu1 }
  0x7c   : > { %658 = vmatmul.mubr.bf16.vlgmr.msra.gmra.mrb[0].mxu0 %v388_v55 }
  0x7e   : > { %v405_v56 = vpop.trf.xlu0 }
  0x7f   : > { %665 = vmatprep.mubr.bf16.mxu0 %v405_v56  ;;  %v389_v57 = vpop.trf.xlu1 }
  0x84   : > { %666 = vmatmul.mubr.bf16.gmra.mrb[4].mxu0 %v389_v57 }
  0x9a   : > { %v436_v58 = vpop.trf.xlu0 }
  0x9b   : > { %862 = vmatprep.mubr.msk.bf16.mxu1 %vm611_vm2, %v436_v58  ;;  %v420_v0 = vpop.trf.xlu1 }
  0x9c   : > { %707 = vmatmul.mubr.bf16.vlgmr.msra.gmra.mrb[0].mxu1 %v420_v0 }
  0x9e   : > { %v437_v59 = vpop.trf.xlu0 }
  0x9f   : > { %863 = vmatprep.mubr.msk.bf16.mxu1 %vm611_vm2, %v437_v59  ;;  %v421_v60 = vpop.trf.xlu1 }
  0xa4   : > { %715 = vmatmul.mubr.bf16.gmra.mrb[4].mxu1 %v421_v60 }
 0x14f   : > { %v882_v61 = vpop.f32.mrb[0].mxu0 }
 0x150   : > { %v883_v62 = vpop.f32.mrb[1].mxu0 }
 0x151   : > { %v884_v63 = vadd.f32 %v883_v62, %v882_v61  ;;  %v885_v1 = vpop.f32.mrb[2].mxu0 }
 0x152   : > { %v886_v2 = vpop.f32.mrb[3].mxu0 }
 0x153   : > { %v887_v3 = vadd.f32 %v886_v2, %v885_v1  ;;  %v660_v17 = vadd.f32 %v884_v63, %v833_v13 }
 0x155   : > { %v663_v23 = vadd.f32 %v887_v3, %v833_v13 }
 0x157   : > { %v888_v4 = vpop.f32.mrb[4].mxu0 }
 0x158   : > { %v889_v5 = vpop.f32.mrb[5].mxu0 }
 0x159   : > { %v890_v6 = vadd.f32 %v889_v5, %v888_v4  ;;  %v891_v7 = vpop.f32.mrb[6].mxu0 }
 0x15a   : > { %v892_v8 = vpop.f32.mrb[7].mxu0 }
 0x15b   : > { %v893_v9 = vadd.f32 %v892_v8, %v891_v7  ;;  %v668_v38 = vadd.f32 %v890_v6, %v833_v13 }
 0x15d   : > { %v671_v44 = vadd.f32 %v893_v9, %v833_v13 }
 0x16f   : > { %v708_v19 = vpop.f32.mrb[0].mxu1 }
 0x170   : > { %v709_v21 = vadd.f32 %v708_v19, %v660_v17  ;;  %v710_v22 = vpop.f32.mrb[1].mxu1 }
 0x171   : > { %v711_v25 = vpop.f32.mrb[2].mxu1 }
 0x172   : > { %v742_v28 = vadd.f32 %v731_v20, %v709_v21  ;;  %v712_v29 = vadd.f32 %v711_v25, %v663_v23  ;;  %v713_v30 = vpop.f32.mrb[3].mxu1 }
 0x174   : > { %v751_v33 = vrot.slane %v742_v28, 7  ;;  %v743_v34 = vadd.f32 %v733_v26, %v712_v29 }
 0x176   : > { %v763_v36 = vsel %vm750_vm4, %v372_v27, %v751_v33  ;;  %v752_v37 = vrot.slane %v743_v34, 7 }
 0x177   : > { %765 = vst.msk [vmem:[%s224_s28] sm:$0xff] %vm764_vm5, %v763_v36  ;;  %v716_v39 = vpop.f32.mrb[4].mxu1 }
 0x178   : > { %v753_v41 = vsel %vm750_vm4, %v751_v33, %v752_v37  ;;  %v717_v42 = vadd.f32 %v716_v39, %v668_v38  ;;  %v718_v43 = vpop.f32.mrb[5].mxu1 }
 0x179   : > { %766 = vst.msk [vmem:[%s224_s28 + $0x8] sm:$0xff] %vm764_vm5, %v753_v41  ;;  %v719_v45 = vpop.f32.mrb[6].mxu1 }
 0x17a   : > { %v744_v47 = vadd.f32 %v735_v40, %v717_v42  ;;  %v720_v48 = vadd.f32 %v719_v45, %v671_v44  ;;  %v721_v49 = vpop.f32.mrb[7].mxu1 }
 0x17c   : > { %v754_v50 = vrot.slane %v744_v47, 7  ;;  %v745_v51 = vadd.f32 %v737_v46, %v720_v48 }
 0x17e   : > { %v755_v52 = vsel %vm750_vm4, %v752_v37, %v754_v50  ;;  %v756_v53 = vrot.slane %v745_v51, 7 }
 0x17f   : > { %767 = vst.msk [vmem:[%s224_s28 + $0x10] sm:$0xff] %vm764_vm5, %v755_v52 }
 0x180   : > { %v757_v54 = vsel %vm750_vm4, %v754_v50, %v756_v53  ;;  %770 = vst.msk [vmem:[%s224_s28 + $0x20] sm:$0x1] %vm769_vm6, %v756_v53 }
 0x181   : > { %768 = vst.msk [vmem:[%s224_s28 + $0x18] sm:$0xff] %vm764_vm5, %v757_v54 }
 0x182 PF: > { %s15_s18 = sadd.s32 1, %s940_s18  }
 0x183   : > { %p12_p4 = scmp.ge.s32.totalorder %s15_s18, 4  }
 0x185   :  { %14 = sbr.rel (!%p12_p4) target bundleno = 1 (0x1), region = 70 }

// kernel: mvit_forward.5
= control target key start
LH: loop header
LB: loop body
LE: loop exit
PB: predicated region body
PF: predicated region fallthrough
CT: control target
= control target key end

     0   :  { %s2453_s25 = smov 0   ;;  %s2959_s0 = inlined_call_operand.vmem [shape: f32[2,33,64], index: 0, kind: input, shape index: {}]   ;;  %s2960_s1 = inlined_call_operand.vmem [shape: f32[1,64], index: 1, kind: input, shape index: {}]   ;;  %s2961_s2 = inlined_call_operand.vmem [shape: f32[1,64], index: 2, kind: input, shape index: {}]   ;;  %s2962_s3 = inlined_call_operand.vmem [shape: bf16[64,192], index: 3, kind: input, shape index: {}]   ;;  %s2963_s4 = inlined_call_operand.vmem [shape: f32[1,192], index: 4, kind: input, shape index: {}]   ;;  %s2964_s5 = inlined_call_operand.vmem [shape: bf16[64,64], index: 5, kind: input, shape index: {}]   ;;  %s2965_s6 = inlined_call_operand.vmem [shape: f32[1,64], index: 6, kind: input, shape index: {}]   ;;  %s2966_s7 = inlined_call_operand.vmem [shape: f32[1,64], index: 7, kind: input, shape index: {}]   ;;  %s2967_s8 = inlined_call_operand.vmem [shape: f32[1,64], index: 8, kind: input, shape index: {}]   ;;  %s2968_s9 = inlined_call_operand.vmem [shape: bf16[64,256], index: 9, kind: input, shape index: {}]   ;;  %s2969_s10 = inlined_call_operand.vmem [shape: f32[1,256], index: 10, kind: input, shape index: {}]   ;;  %s2970_s11 = inlined_call_operand.vmem [shape: bf16[256,64], index: 11, kind: input, shape index: {}]   ;;  %s2971_s12 = inlined_call_operand.vmem [shape: f32[1,64], index: 12, kind: input, shape index: {}]   ;;  %s2972_s13 = inlined_call_operand.vmem [shape: f32[2,33,64], index: 13, kind: output, shape index: {}]  }
   0x1 LB: > { %s1981_s26 = sadd.s32 4294967295, %s2374_s25   ;;  %p1985_p0 = scmp.ge.s32.totalorder %s2374_s25, 1  ;;  %s2374_s25 = sphi %s2453_s25, %s23_s25  }
   0x2   : > { %p387_p1 = scmp.lt.s32.totalorder %s2374_s25, 3 }
   0x4   : > { %p388_p2 = pnand %p1985_p0, %p387_p1 }
   0x5   : > { %p431_p3 = scmp.lt.s32.totalorder (!%p388_p2), %s1981_s26, 1  ;;  %vm449_vm0 = vcmask (!%p388_p2), 523264   ;;  %vm462_vm1 = vcmask (!%p388_p2), 516096   ;;  %v2239_v35 = vld [vmem:[%s2962_s3 + $0x4] ss:$8 sps:$4 sm:$0xff] (!%p388_p2)   ;;  %v2376_v43 = vmov (!%p388_p2), 0  }
   0x6   : > { %391 = sbr.rel (%p388_p2) target bundleno = 3038 (0xbde), region = 72  ;;  %v2241_v36 = vld [vmem:[%s2962_s3] ss:$8 sps:$4 sm:$0xff] (!%p388_p2)   ;;  %611 = vmatprep.subr.bf16.mxu0 (!%p388_p2), %v2239_v35  ;;  %v2242_v37 = vld [vmem:[%s2962_s3 + $0x14] ss:$8 sps:$4 sm:$0xff] (!%p388_p2)   ;;  %643 = vmatprep.mubr.bf16.mxu0 (!%p388_p2), %v2376_v43  ;;  %vm677_vm2 = vcmask (!%p388_p2), 1043456  }
   0x7   : > { %612 = vmatpush1.bf16.msra.mxu0 (!%p388_p2), %v2241_v36  ;;  %v2244_v38 = vld [vmem:[%s2962_s3 + $0x10] ss:$8 sps:$4 sm:$0xff] (!%p388_p2)   ;;  %v2245_v39 = vld [vmem:[%s2962_s3 + $0x24] ss:$8 sps:$4 sm:$0xff] (!%p388_p2)   ;;  %v2247_v40 = vld [vmem:[%s2962_s3 + $0x20] ss:$8 sps:$4 sm:$0xff] (!%p388_p2)  }
   0x8   : > { %613 = vmatprep.subr.bf16.mxu0 (!%p388_p2), %v2242_v37  ;;  %v2248_v41 = vld [vmem:[%s2962_s3 + $0x34] ss:$8 sps:$4 sm:$0xff] (!%p388_p2)   ;;  %v2250_v42 = vld [vmem:[%s2962_s3 + $0x30] ss:$8 sps:$4 sm:$0xff] (!%p388_p2)   ;;  %v1988_v61 = vld [vmem:[%s2960_s1] ss:$0 sm:$0xff] (!%p388_p2) }
   0x9   : > { %vm683_vm3 = vcmask (!%p388_p2), 1042945   ;;  %vm691_vm4 = vcmask (!%p388_p2), 1044994   ;;  %vm704_vm5 = vcmask (!%p388_p2), 1047045   ;;  %vm746_vm6 = vcmask (!%p388_p2), 518145   ;;  %s2379_s23 = smov (!%p388_p2), 64   ;;  %s2381_s24 = smov (!%p388_p2), 96  }
   0xa   : > { %vm754_vm7 = vcmask (!%p388_p2), 520194   ;;  %vm767_vm8 = vcmask (!%p388_p2), 522245   ;;  %vm712_vm9 = vcmask (!%p388_p2), 1048070   ;;  %vm714_vm10 = vcmask (!%p388_p2), 1040896   ;;  %s2382_s28 = smov (!%p388_p2), 32  }
   0xb   : > { %614 = vmatpush1.bf16.msra.mxu0 (!%p388_p2), %v2244_v38  ;;  %vm775_vm11 = vcmask (!%p388_p2), 523270   ;;  %vm723_vm12 = vcmask (!%p388_p2), 1040384   ;;  %vm725_vm13 = vcmask (!%p388_p2), 1041408   ;;  %vm727_vm14 = vcmask (!%p388_p2), 1042432  }
   0xc   : > { %615 = vmatprep.subr.bf16.mxu0 (!%p388_p2), %v2245_v39  ;;  %vm2378_vm15 = vmmov (!%p388_p2), 0  }
   0xd   : > { %s2974_s26 = smov (!%p431_p3, %s1981_s26), 1 }
   0xe   : > { %s2223_s27 = smul.u32 40, %s2974_s26 }
   0xf   : > { %616 = vmatpush1.bf16.msra.mxu0 %v2247_v40 }
  0x10   : > { %s2469_s30 = scalar_lea.vmem %s2959_s0, %s2223_s27  ;;  %617 = vmatprep.subr.bf16.mxu0 %v2248_v41 }
  0x11   : > { %v442_v0 = vld [vmem:[%s2469_s30] sm:$0xff]  ;;  %v444_v1 = vld [vmem:[%s2469_s30 + $0x10] sm:$0xff]  ;;  %v443_v2 = vld [vmem:[%s2469_s30 + $0x8] sm:$0xff] }
  0x12   : > { %v450_v3 = vsel %vm449_vm0, %v442_v0, 0.0  ;;  %v456_v4 = vsel %vm449_vm0, %v444_v1, 0.0  ;;  %v445_v5 = vld [vmem:[%s2469_s30 + $0x18] sm:$0xff]  ;;  %v446_v6 = vld [vmem:[%s2469_s30 + $0x20] sm:$0x1]  ;;  %v453_v7 = vsel %vm449_vm0, %v443_v2, 0.0 }
  0x13   : > { %451 = vadd.xlane.f32.xlu0 %v450_v3  ;;  %457 = vadd.xlane.f32.xlu1 %v456_v4  ;;  %v459_v8 = vsel %vm449_vm0, %v445_v5, 0.0  ;;  %v463_v9 = vsel %vm462_vm1, %v446_v6, 0.0 }
  0x14   : > { %618 = vmatpush1.bf16.msra.mxu0 %v2250_v42 }
  0x17   : > { %454 = vadd.xlane.f32.xlu0 %v453_v7  ;;  %460 = vadd.xlane.f32.xlu1 %v459_v8 }
  0x1b   : > { %464 = vadd.xlane.f32.xlu0 %v463_v9 }
  0xa0   : > { %v452_v10 = vpop.xlane.xlu0 %451  ;;  %v458_v11 = vpop.xlane.xlu1 %457 }
  0xa1   : > { %v467_v12 = vmul.f32 0.015625, %v452_v10  ;;  %v469_v13 = vmul.f32 0.015625, %v458_v11 }
  0xa3   : > { %v2481_v14 = vsub.f32 %v442_v0, %v467_v12  ;;  %v2483_v15 = vsub.f32 %v444_v1, %v469_v13 }
  0xa4   : > { %v455_v16 = vpop.xlane.xlu0 %454  ;;  %v461_v17 = vpop.xlane.xlu1 %460 }
  0xa5   : > { %v468_v18 = vmul.f32 0.015625, %v455_v16  ;;  %v470_v19 = vmul.f32 0.015625, %v461_v17  ;;  %v477_v20 = vmul.f32 %v2481_v14, %v2481_v14  ;;  %v479_v21 = vmul.f32 %v2483_v15, %v2483_v15 }
  0xa7   : > { %v473_v22 = vsub.f32 %v443_v2, %v468_v18  ;;  %v2489_v23 = vsub.f32 %v445_v5, %v470_v19  ;;  %v482_v24 = vsel %vm449_vm0, %v477_v20, 0.0  ;;  %v488_v27 = vsel %vm449_vm0, %v479_v21, 0.0  ;;  %v1989_v2 = vld [vmem:[%s2961_s2] ss:$0 sm:$0xff] }
  0xa8   : > { %483 = vadd.xlane.f32.xlu1 %v482_v24  ;;  %v465_v25 = vpop.xlane.xlu0 %464  ;;  %v552_v20 = vlaneseq }
  0xa9   : > { %v471_v26 = vmul.f32 0.015625, %v465_v25  ;;  %v478_v28 = vmul.f32 %v473_v22, %v473_v22  ;;  %v480_v29 = vmul.f32 %v2489_v23, %v2489_v23 }
  0xaa   : > { %v2542_v21 = vshrl.u32 %v552_v20, 7 }
  0xab   : > { %v2495_v30 = vsub.f32 %v446_v6, %v471_v26  ;;  %v485_v31 = vsel %vm449_vm0, %v478_v28, 0.0  ;;  %v491_v32 = vsel %vm449_vm0, %v480_v29, 0.0 }
  0xac   : > { %489 = vadd.xlane.f32.xlu1 %v488_v27  ;;  %486 = vadd.xlane.f32.xlu0 %v485_v31  ;;  %v558_v28 = vsub.s32 1, %v2542_v21 }
  0xad   : > { %v481_v33 = vmul.f32 %v2495_v30, %v2495_v30 }
  0xaf   : > { %v494_v34 = vsel %vm462_vm1, %v481_v33, 0.0 }
  0xb0   : > { %492 = vadd.xlane.f32.xlu0 %v491_v32  ;;  %495 = vadd.xlane.f32.xlu1 %v494_v34 }
 0x135   : > { %v484_v44 = vpop.xlane.xlu1 %483 }
 0x136   : > { %v497_v45 = vmul.f32 0.015625, %v484_v44 }
 0x138   : > { %v502_v46 = vadd.f32 1e-06, %v497_v45 }
 0x139   : > { %v490_v47 = vpop.xlane.xlu1 %489  ;;  %v487_v48 = vpop.xlane.xlu0 %486 }
 0x13a   : > { %2283 = vrsqrt.f32 %v502_v46  ;;  %v499_v49 = vmul.f32 0.015625, %v490_v47  ;;  %v498_v50 = vmul.f32 0.015625, %v487_v48 }
 0x13c   : > { %v503_v51 = vadd.f32 1e-06, %v498_v50  ;;  %v504_v52 = vadd.f32 1e-06, %v499_v49 }
 0x13d   : > { %v496_v53 = vpop.xlane.xlu1 %495  ;;  %v493_v54 = vpop.xlane.xlu0 %492 }
 0x13e   : > { %v500_v55 = vmul.f32 0.015625, %v493_v54  ;;  %2285 = vrsqrt.f32 %v503_v51  ;;  %v501_v56 = vmul.f32 0.015625, %v496_v53 }
 0x13f   : > { %2287 = vrsqrt.f32 %v504_v52 }
 0x140   : > { %v505_v57 = vadd.f32 1e-06, %v500_v55  ;;  %v506_v58 = vadd.f32 1e-06, %v501_v56 }
 0x142   : > { %2289 = vrsqrt.f32 %v505_v57 }
 0x143   : > { %2291 = vrsqrt.f32 %v506_v58 }
 0x144   : > { %v2284_v59 = vpop.eup %2283 }
 0x145   : > { %v512_v60 = vmul.f32 %v2284_v59, %v2481_v14 }
 0x147   : > { %v523_v0 = vmul.f32 %v1988_v61, %v512_v60 }
 0x148   : > { %v2286_v62 = vpop.eup %2285 }
 0x149   : > { %v513_v63 = vmul.f32 %v2286_v62, %v473_v22  ;;  %v2288_v1 = vpop.eup %2287  ;;  %v534_v7 = vadd.f32 %v1989_v2, %v523_v0  ;;  %v554_v22 = vsub.s32 0, %v2542_v21 }
 0x14a   : > { %v514_v5 = vmul.f32 %v2288_v1, %v2483_v15 }
 0x14b   : > { %v524_v3 = vmul.f32 %v1988_v61, %v513_v63 }
 0x14c   : > { %v2290_v4 = vpop.eup %2289  ;;  %v525_v12 = vmul.f32 %v1988_v61, %v514_v5 }
 0x14d   : > { %v515_v6 = vmul.f32 %v2290_v4, %v2489_v23  ;;  %v535_v8 = vadd.f32 %v1989_v2, %v524_v3  ;;  %v2292_v11 = vpop.eup %2291  ;;  %v550_v23 = vld [vmem:[%s2963_s4] sm:$0x3] }
 0x14e   : > { %v516_v14 = vmul.f32 %v2292_v11, %v2495_v30  ;;  %v536_v16 = vadd.f32 %v1989_v2, %v525_v12  ;;  %v555_v24 = vrot.slane %v550_v23, %v554_v22  ;;  %v559_v34 = vrot.slane %v550_v23, %v558_v28 }
 0x14f   : > { %v539_v9 = vpack.c.bf16 %v535_v8, %v534_v7  ;;  %v526_v10 = vmul.f32 %v1988_v61, %v515_v6 }
 0x150   : > { %v527_v18 = vmul.f32 %v1988_v61, %v516_v14 }
 0x151   : > { %1998 = vmatmul.mubr.msk.bf16.vlgmr.msra.gmra.mrb[0].mxu0 %vm449_vm0, %v539_v9  ;;  %v537_v13 = vadd.f32 %v1989_v2, %v526_v10 }
 0x152   : > { %653 = vmatprep.mubr.bf16.mxu0 %v2376_v43  ;;  %v538_v15 = vadd.f32 %v1989_v2, %v527_v18 }
 0x153   : > { %v540_v17 = vpack.c.bf16 %v537_v13, %v536_v16 }
 0x154   : > { %v541_v19 = vpack.c.bf16 %v538_v15, %v538_v15 }
 0x159   : > { %1999 = vmatmul.mubr.msk.bf16.gmra.mrb[4].mxu0 %vm449_vm0, %v540_v17 }
 0x15a   : > { %663 = vmatprep.mubr.bf16.mxu0 %v2376_v43 }
 0x161   : > { %2000 = vmatmul.mubr.msk.bf16.gmra.mrb[8].mxu0 %vm449_vm0, %v541_v19 }
 0x224   : > { %v645_v25 = vpop.f32.mrb[0].mxu0 }
 0x225   : > { %v2550_v26 = vadd.f32 %v645_v25, %v555_v24  ;;  %v647_v27 = vpop.f32.mrb[1].mxu0 }
 0x226   : > { %v649_v29 = vpop.f32.mrb[2].mxu0  ;;  %v2560_v39 = vadd.f32 %v647_v27, %v559_v34 }
 0x227   : > { %v650_v30 = vadd.f32 %v649_v29, %v555_v24  ;;  %v651_v31 = vpop.f32.mrb[3].mxu0  ;;  %v812_v32 = vmul.f32 0.17677669, %v2550_v26 }
 0x228   : > { %v652_v46 = vadd.f32 %v651_v31, %v559_v34 }
 0x229   : > { %v813_v33 = vmul.f32 0.17677669, %v650_v30 }
 0x22b   : > { %v2556_v35 = vpack.c.bf16 %v813_v33, %v812_v32 }
 0x22c   : > { %v655_v36 = vpop.f32.mrb[4].mxu0 }
 0x22d   : > { %v2558_v37 = vadd.f32 %v655_v36, %v555_v24  ;;  %v657_v38 = vpop.f32.mrb[5].mxu0 }
 0x22e   : > { %v2562_v40 = vadd.f32 %v657_v38, %v559_v34  ;;  %v659_v41 = vpop.f32.mrb[6].mxu0 }
 0x22f   : > { %v672_v42 = vmax.f32 %v2550_v26, %v2558_v37  ;;  %v660_v44 = vadd.f32 %v659_v41, %v555_v24  ;;  %v661_v45 = vpop.f32.mrb[7].mxu0  ;;  %v814_v49 = vmul.f32 0.17677669, %v2558_v37 }
 0x230   : > { %v736_v47 = vmax.f32 %v2560_v39, %v2562_v40  ;;  %v662_v48 = vadd.f32 %v661_v45, %v559_v34 }
 0x231   : > { %v673_v50 = vmax.f32 %v650_v30, %v660_v44  ;;  %v815_v51 = vmul.f32 0.17677669, %v660_v44  ;;  %v678_v53 = vrot.slane %v672_v42, 4 }
 0x232   : > { %v2569_v52 = vmax.f32 %v652_v46, %v662_v48  ;;  %v741_v56 = vrot.slane %v736_v47, 4 }
 0x233   : > { %v679_v54 = vrot.slane %v673_v50, 4  ;;  %v2571_v55 = vpack.c.bf16 %v815_v51, %v814_v49 }
 0x234   : > { %v742_v57 = vrot.slane %v2569_v52, 4  ;;  %v665_v58 = vpop.f32.mrb[8].mxu0 }
 0x235   : > { %v680_v59 = vsel %vm677_vm2, %v678_v53, %v679_v54  ;;  %v700_v60 = vmax.f32 %v672_v42, %v679_v54  ;;  %v2575_v61 = vadd.f32 %v665_v58, %v555_v24  ;;  %v667_v62 = vpop.f32.mrb[9].mxu0  ;;  %v701_v7 = vmax.f32 %v673_v50, %v679_v54 }
 0x236   : > { %v682_v63 = vmax.f32 %v672_v42, %v680_v59  ;;  %v743_v0 = vsel %vm677_vm2, %v741_v56, %v742_v57  ;;  %v763_v1 = vmax.f32 %v736_v47, %v742_v57  ;;  %v668_v2 = vadd.f32 %v667_v62, %v559_v34  ;;  %v669_v3 = vpop.f32.mrb[10].mxu0 }
 0x237   : > { %v702_v4 = vmax.f32 %v700_v60, %v673_v50  ;;  %v745_v5 = vmax.f32 %v736_v47, %v743_v0  ;;  %v674_v6 = vmax.f32 %v2558_v37, %v2575_v61  ;;  %v670_v8 = vpop.f32.mrb[11].mxu0  ;;  %v764_v41 = vmax.f32 %v2569_v52, %v742_v57 }
 0x238   : > { %v684_v9 = vsel %vm683_vm3, %v682_v63, -inf  ;;  %v692_v10 = vsel %vm691_vm4, %v682_v63, -inf  ;;  %v765_v11 = vmax.f32 %v763_v1, %v2569_v52  ;;  %v738_v12 = vmax.f32 %v2562_v40, %v668_v2 }
 0x239   : > { %v685_v13 = vrot.slane %v684_v9, 4  ;;  %v693_v14 = vrot.slane %v692_v10, 4  ;;  %v705_v16 = vsel %vm704_vm5, %v702_v4, -inf  ;;  %v747_v17 = vsel %vm746_vm6, %v745_v5, -inf }
 0x23a   : > { %v706_v18 = vrot.slane %v705_v16, 4  ;;  %v748_v15 = vrot.slane %v747_v17, 4  ;;  %v755_v19 = vsel %vm754_vm7, %v745_v5, -inf  ;;  %v768_v20 = vsel %vm767_vm8, %v765_v11, -inf }
 0x23b   : > { %v686_v23 = vmax.f32 %v684_v9, %v685_v13  ;;  %v756_v24 = vrot.slane %v755_v19, 4  ;;  %v769_v25 = vrot.slane %v768_v20, 4  ;;  %v694_v27 = vmax.f32 %v692_v10, %v693_v14 }
 0x23c   : > { %v707_v29 = vmax.f32 %v705_v16, %v706_v18  ;;  %v749_v30 = vmax.f32 %v747_v17, %v748_v15  ;;  %v703_v31 = vmax.f32 %v701_v7, %v674_v6  ;;  %v713_v36 = vsel %vm712_vm9, %v702_v4, -inf }
 0x23d   : > { %v687_v32 = vrot.slane %v686_v23, 2  ;;  %v757_v33 = vmax.f32 %v755_v19, %v756_v24  ;;  %v770_v34 = vmax.f32 %v768_v20, %v769_v25  ;;  %v776_v46 = vsel %vm775_vm11, %v765_v11, -inf }
 0x23e   : > { %v708_v37 = vrot.slane %v707_v29, 2  ;;  %v750_v38 = vrot.slane %v749_v30, 2  ;;  %v715_v40 = vsel %vm714_vm10, %v703_v31, -inf  ;;  %v766_v48 = vmax.f32 %v764_v41, %v738_v12 }
 0x23f   : > { %v758_v42 = vrot.slane %v757_v33, 2  ;;  %v771_v44 = vrot.slane %v770_v34, 2  ;;  %v716_v45 = vmax.f32 %v713_v36, %v715_v40  ;;  %v688_v49 = vmax.f32 %v686_v23, %v687_v32 }
 0x240   : > { %v751_v47 = vmax.f32 %v749_v30, %v750_v38  ;;  %v695_v50 = vrot.slane %v694_v27, 2  ;;  %v709_v56 = vmax.f32 %v707_v29, %v708_v37  ;;  %v777_v59 = vsel %vm462_vm1, %v766_v48, -inf }
 0x241   : > { %v759_v51 = vmax.f32 %v757_v33, %v758_v42  ;;  %v772_v53 = vmax.f32 %v770_v34, %v771_v44  ;;  %v717_v54 = vrot.slane %v716_v45, 4  ;;  %v689_v60 = vrot.slane %v688_v49, 1 }
 0x242   : > { %v752_v58 = vrot.slane %v751_v47, 1  ;;  %v696_v62 = vmax.f32 %v694_v27, %v695_v50  ;;  %v778_v63 = vmax.f32 %v776_v46, %v777_v59  ;;  %v710_v0 = vrot.slane %v709_v56, 1 }
 0x243   : > { %v773_v52 = vrot.slane %v772_v53, 1  ;;  %v718_v57 = vmax.f32 %v716_v45, %v717_v54  ;;  %v690_v1 = vmax.f32 %v688_v49, %v689_v60  ;;  %v760_v4 = vrot.slane %v759_v51, 1 }
 0x244   : > { %v697_v2 = vrot.slane %v696_v62, 1  ;;  %v753_v3 = vmax.f32 %v751_v47, %v752_v58  ;;  %v779_v5 = vrot.slane %v778_v63, 4  ;;  %v711_v6 = vmax.f32 %v709_v56, %v710_v0 }
 0x245   : > { %v719_v7 = vrot.slane %v718_v57, 2  ;;  %v774_v8 = vmax.f32 %v772_v53, %v773_v52  ;;  %v724_v10 = vsel %vm723_vm12, %v2550_v26, %v690_v1  ;;  %v761_v11 = vmax.f32 %v759_v51, %v760_v4 }
 0x246   : > { %v698_v9 = vmax.f32 %v696_v62, %v697_v2  ;;  %v785_v12 = vsel %vm723_vm12, %v2560_v39, %v753_v3  ;;  %v780_v13 = vmax.f32 %v778_v63, %v779_v5  ;;  %v2377_v18 = vmov 0.0  }
 0x247   : > { %v720_v14 = vmax.f32 %v718_v57, %v719_v7  ;;  %v786_v17 = vsel %vm725_vm13, %v785_v12, %v761_v11  ;;  %2116 = vmatprep.subr.bf16.mxu0 %v2377_v18  ;;  %2204 = vmatprep.subr.bf16.mxu1 %v2377_v18  ;;  %vm730_vm3 = vcmask 1044480   ;;  %vm732_vm4 = vcmask 1045504  }
 0x248   : > { %v726_v16 = vsel %vm725_vm13, %v724_v10, %v698_v9  ;;  %v781_v15 = vrot.slane %v780_v13, 2  ;;  %v787_v26 = vsel %vm727_vm14, %v786_v17, %v774_v8  ;;  %2118 = vmatprep.mubr.msk.bf16.mxu0 %vm2378_vm15, %v2377_v18  ;;  %2126 = vmatprep.mubr.msk.bf16.mxu1 %vm2378_vm15, %v2377_v18  ;;  %vm734_vm5 = vcmask 1046528  }
 0x249   : > { %v721_v19 = vrot.slane %v720_v14, 1  ;;  %v728_v20 = vsel %vm727_vm14, %v726_v16, %v711_v6  ;;  %vm824_vm6 = vcmask 261120   ;;  %v2380_v42 = vmov 65535  }
 0x24a   : > { %v782_v39 = vmax.f32 %v780_v13, %v781_v15  ;;  %v963_v44 = vsel %vm677_vm2, 4294967295, %v2380_v42  ;;  %v816_v45 = vmul.f32 0.17677669, %v2575_v61  ;;  %vm906_vm7 = vcmask 65536  }
 0x24b   : > { %v722_v23 = vmax.f32 %v720_v14, %v721_v19  ;;  %v2622_v46 = vsel %vm730_vm3, %v963_v44, 0 }
 0x24c   : > { %v783_v24 = vrot.slane %v782_v39, 1  ;;  %v2624_v47 = vpack.c.bf16 %v816_v45, %v816_v45 }
 0x24d   : > { %v729_v25 = vsel %vm677_vm2, %v728_v20, %v722_v23 }
 0x24e   : > { %v731_v27 = vsel %vm730_vm3, %v729_v25, %v690_v1  ;;  %v784_v29 = vmax.f32 %v782_v39, %v783_v24 }
 0x24f   : > { %v733_v30 = vsel %vm732_vm4, %v731_v27, %v698_v9 }
 0x250   : > { %v735_v31 = vsel %vm734_vm5, %v733_v30, %v711_v6  ;;  %v788_v32 = vsel %vm677_vm2, %v787_v26, %v784_v29  ;;  %vm893_vm2 = vcmask 72704  }
 0x251   : > { %v2610_v33 = vpack.c.bf16 %v722_v23, %v735_v31  ;;  %v789_v34 = vsel %vm730_vm3, %v788_v32, %v753_v3  ;;  %v2251_v31 = vld [vmem:[%s2964_s5] sm:$0xff]  }
 0x252   : > { %v790_v36 = vsel %vm732_vm4, %v789_v34, %v761_v11 }
 0x253   : > { %822 = vrot.lane.b32.xlu0 %v2610_v33, %s2379_s23  ;;  %v791_v37 = vsel %vm734_vm5, %v790_v36, %v774_v8 }
 0x254   : > { %v2614_v38 = vpack.c.bf16 %v784_v29, %v791_v37 }
 0x256   : > { %v966_v48 = vand.u32 %v2622_v46, %v2614_v38 }
 0x2c5   : > { %v823_v40 = vpop.permute.xlu0 %822 }
 0x2c6   : > { %v835_v41 = vsel %vm824_vm6, %v823_v40, 0 }
 0x2c7   : > { %2117 = vmatpush3.bf16.xpose.msra.mxu0 %v835_v41  ;;  %2205 = vmatpush3.bf16.xpose.msra.mxu1 %v835_v41 }
 0x2c8   : > { %2130 = vmatprep.subr.bf16.mxu1 %v2377_v18  ;;  %2144 = vmatprep.subr.bf16.mxu0 %v2377_v18 }
 0x2ce   : > { %2119 = vmatmul.mubr.msk.bf16.vlgmr.msra.gmra.mrb[12].mxu0 %vm824_vm6, %v2556_v35  ;;  %2127 = vmatmul.mubr.msk.bf16.vlgmr.msra.gmra.mrb[0].mxu1 %vm824_vm6, %v2624_v47 }
 0x2cf   : > { %2131 = vmatpush3.bf16.msra.mxu1 %v966_v48  ;;  %2122 = vmatprep.mubr.msk.bf16.mxu0 %vm2378_vm15, %v2377_v18 }
 0x2d0   : > { %2132 = vmatprep.mubr.msk.bf16.mxu1 %vm2378_vm15, %v2377_v18  ;;  %2160 = vmatprep.subr.bf16.mxu1 %v2377_v18 }
 0x2d1   : > { %2145 = vmatpush3.bf16.msra.mxu0 %v2251_v31 }
 0x2d2   : > { %2146 = vmatprep.subr.bf16.mxu0 %v2377_v18 }
 0x2d6   : > { %2123 = vmatmul.mubr.msk.bf16.gmra.mrb[16].mxu0 %vm824_vm6, %v2571_v55 }
 0x2d7   : > { %2148 = vmatprep.mubr.msk.bf16.mxu0 %vm2378_vm15, %v2377_v18 }
 0x3a1   : > { %v871_v61 = vpop.f32.mrb[12].mxu0  ;;  %v887_v49 = vpop.f32.mrb[0].mxu1 }
 0x3a2   : > { %v2120_v50 = vpop.f32.mrb[13].mxu0  ;;  %v2128_v51 = vpop.f32.mrb[1].mxu1  ;;  %v894_v53 = vsel %vm893_vm2, %v871_v61, -inf  ;;  %v907_v2 = vsel %vm906_vm7, %v887_v49, -inf }
 0x3a3   : > { %v890_v54 = vpop.f32.mrb[2].mxu1  ;;  %895 = vmax.xlane.f32.xlu1 %v894_v53  ;;  %v874_v56 = vpop.f32.mrb[14].mxu0 }
 0x3a4   : > { %v2121_v58 = vpop.f32.mrb[15].mxu0  ;;  %v2129_v59 = vpop.f32.mrb[3].mxu1  ;;  %v897_v60 = vsel %vm893_vm2, %v874_v56, -inf }
 0x3a7   : > { %898 = vmax.xlane.f32.xlu1 %v897_v60  ;;  %v2252_v60 = vld [vmem:[%s2964_s5 + $0x8] sm:$0xff]  }
 0x3a8   : > { %2147 = vmatpush3.bf16.msra.mxu0 %v2252_v60 }
 0x3a9   : > { %v879_v62 = vpop.f32.mrb[16].mxu0  ;;  %2174 = vmatprep.subr.bf16.mxu0 %v2377_v18 }
 0x3aa   : > { %v2124_v52 = vpop.f32.mrb[17].mxu0  ;;  %v900_v57 = vsel %vm893_vm2, %v879_v62, -inf }
 0x3ab   : > { %901 = vmax.xlane.f32.xlu1 %v900_v57  ;;  %v882_v63 = vpop.f32.mrb[18].mxu0 }
 0x3ac   : > { %v2125_v0 = vpop.f32.mrb[19].mxu0  ;;  %v903_v1 = vsel %vm893_vm2, %v882_v63, -inf }
 0x3af   : > { %904 = vmax.xlane.f32.xlu1 %v903_v1 }
 0x3b3   : > { %908 = vmax.xlane.f32.xlu1 %v907_v2 }
 0x430   : > { %v896_v3 = vpop.xlane.xlu1 %895 }
 0x431   : > { %v910_v4 = vsub.f32 %v871_v61, %v896_v3 }
 0x433   : > { %v915_v5 = vmul.f32 1.442695, %v910_v4 }
 0x434   : > { %v899_v6 = vpop.xlane.xlu1 %898 }
 0x435   : > { %2293 = vpow2.f32 %v915_v5  ;;  %v911_v7 = vsub.f32 %v874_v56, %v899_v6 }
 0x437   : > { %v917_v8 = vmul.f32 1.442695, %v911_v7 }
 0x438   : > { %v902_v9 = vpop.xlane.xlu1 %901 }
 0x439   : > { %2295 = vpow2.f32 %v917_v8  ;;  %v912_v10 = vsub.f32 %v879_v62, %v902_v9 }
 0x43b   : > { %v919_v11 = vmul.f32 1.442695, %v912_v10 }
 0x43c   : > { %v905_v12 = vpop.xlane.xlu1 %904 }
 0x43d   : > { %2297 = vpow2.f32 %v919_v11  ;;  %v913_v13 = vsub.f32 %v882_v63, %v905_v12 }
 0x43f   : > { %v2294_v14 = vpop.eup %2293  ;;  %v921_v16 = vmul.f32 1.442695, %v913_v13 }
 0x440   : > { %v909_v17 = vpop.xlane.xlu1 %908  ;;  %v925_v15 = vsel %vm893_vm2, %v2294_v14, 0.0 }
 0x441   : > { %2299 = vpow2.f32 %v921_v16  ;;  %v914_v19 = vsub.f32 %v887_v49, %v909_v17  ;;  %926 = vadd.xlane.f32.xlu1 %v925_v15 }
 0x443   : > { %v2296_v20 = vpop.eup %2295  ;;  %v923_v26 = vmul.f32 1.442695, %v914_v19 }
 0x444   : > { %v928_v39 = vsel %vm893_vm2, %v2296_v20, 0.0 }
 0x445   : > { %2301 = vpow2.f32 %v923_v26  ;;  %929 = vadd.xlane.f32.xlu0 %v928_v39 }
 0x447   : > { %v2298_v23 = vpop.eup %2297 }
 0x448   : > { %v931_v24 = vsel %vm893_vm2, %v2298_v23, 0.0 }
 0x449   : > { %932 = vadd.xlane.f32.xlu1 %v931_v24 }
 0x44b   : > { %v2300_v25 = vpop.eup %2299 }
 0x44c   : > { %v934_v27 = vsel %vm893_vm2, %v2300_v25, 0.0 }
 0x44d   : > { %935 = vadd.xlane.f32.xlu1 %v934_v27 }
 0x44f   : > { %v2302_v29 = vpop.eup %2301 }
 0x450   : > { %v937_v30 = vsel %vm906_vm7, %v2302_v29, 0.0 }
 0x451   : > { %938 = vadd.xlane.f32.xlu1 %v937_v30 }
 0x45b   : > { %1112 = vrot.lane.b32.xlu0 %v2556_v35, %s2381_s24 }
 0x462   : > { %1118 = vrot.lane.b32.xlu1 %v2610_v33, %s2382_s28 }
 0x466   : > { %1114 = vrot.lane.b32.xlu1 %v2571_v55, %s2381_s24 }
 0x46a   : > { %1116 = vrot.lane.b32.xlu1 %v2624_v47, %s2381_s24 }
 0x4ce   : > { %v927_v32 = vpop.xlane.xlu1 %926 }
 0x4cf   : > { %2303 = vrcp.f32 %v927_v32 }
 0x4d2   : > { %v930_v34 = vpop.xlane.xlu0 %929 }
 0x4d3   : > { %2305 = vrcp.f32 %v930_v34 }
 0x4d6   : > { %v933_v35 = vpop.xlane.xlu1 %932  ;;  %v1113_v56 = vpop.permute.xlu0 %1112 }
 0x4d7   : > { %2307 = vrcp.f32 %v933_v35 }
 0x4d9   : > { %v2304_v36 = vpop.eup %2303 }
 0x4da   : > { %v936_v33 = vpop.xlane.xlu1 %935  ;;  %v945_v37 = vmul.f32 %v2304_v36, %v2294_v14 }
 0x4db   : > { %2309 = vrcp.f32 %v936_v33 }
 0x4dd   : > { %v2306_v55 = vpop.eup %2305 }
 0x4de   : > { %v946_v40 = vmul.f32 %v2306_v55, %v2296_v20  ;;  %v939_v41 = vpop.xlane.xlu1 %938 }
 0x4df   : > { %2311 = vrcp.f32 %v939_v41 }
 0x4e0   : > { %v950_v42 = vpack.c.bf16 %v946_v40, %v945_v37 }
 0x4e1   : > { %v2308_v45 = vpop.eup %2307 }
 0x4e2   : > { %2133 = vmatmul.mubr.msk.bf16.vlgmr.msra.gmra.mrb[4].mxu1 %vm893_vm2, %v950_v42  ;;  %v1119_v44 = vpop.permute.xlu1 %1118  ;;  %v947_v61 = vmul.f32 %v2308_v45, %v2298_v23 }
 0x4e3   : > { %v1130_v47 = vsel %vm824_vm6, %v1119_v44, 0  ;;  %2136 = vmatprep.mubr.msk.bf16.mxu1 %vm2378_vm15, %v2377_v18 }
 0x4e4   : > { %2161 = vmatpush3.bf16.xpose.msra.mxu1 %v1130_v47 }
 0x4e5   : > { %v2310_v48 = vpop.eup %2309 }
 0x4e6   : > { %v948_v49 = vmul.f32 %v2310_v48, %v2300_v25  ;;  %v1115_v58 = vpop.permute.xlu1 %1114 }
 0x4e8   : > { %v951_v50 = vpack.c.bf16 %v948_v49, %v947_v61 }
 0x4e9   : > { %v2312_v51 = vpop.eup %2311 }
 0x4ea   : > { %2137 = vmatmul.mubr.msk.bf16.gmra.mrb[8].mxu1 %vm893_vm2, %v951_v50  ;;  %v949_v53 = vmul.f32 %v2312_v51, %v2302_v29  ;;  %v1117_v59 = vpop.permute.xlu1 %1116 }
 0x4eb   : > { %2140 = vmatprep.mubr.msk.bf16.mxu1 %vm2378_vm15, %v2377_v18 }
 0x4ec   : > { %v952_v54 = vpack.c.bf16 %v949_v53, %v949_v53 }
 0x4f2   : > { %2141 = vmatmul.mubr.msk.bf16.gmra.mrb[12].mxu1 %vm893_vm2, %v952_v54 }
 0x4f3   : > { %2162 = vmatprep.mubr.msk.bf16.mxu1 %vm2378_vm15, %v2377_v18 }
 0x4fa   : > { %2163 = vmatmul.mubr.msk.bf16.vlgmr.msra.gmra.mrb[16].mxu1 %vm824_vm6, %v1113_v56 }
 0x4fb   : > { %2166 = vmatprep.mubr.msk.bf16.mxu1 %vm2378_vm15, %v2377_v18 }
 0x502   : > { %2167 = vmatmul.mubr.msk.bf16.gmra.mrb[20].mxu1 %vm824_vm6, %v1115_v58 }
 0x503   : > { %2170 = vmatprep.mubr.msk.bf16.mxu1 %vm2378_vm15, %v2377_v18 }
 0x50a   : > { %2171 = vmatmul.mubr.msk.bf16.gmra.mrb[24].mxu1 %vm824_vm6, %v1117_v59 }
 0x50b   : > { %1595 = vmatprep.mubr.bf16.mxu1 %v2376_v43 }
 0x5b5   : > { %v1002_v62 = vpop.f32.mrb[4].mxu1 }
 0x5b6   : > { %v2134_v52 = vpop.f32.mrb[5].mxu1 }
 0x5b7   : > { %v1005_v57 = vpop.f32.mrb[6].mxu1 }
 0x5b8   : > { %v1024_v63 = vpack.c.bf16 %v1005_v57, %v1002_v62  ;;  %v2135_v0 = vpop.f32.mrb[7].mxu1 }
 0x5ba   : > { %2149 = vmatmul.mubr.msk.bf16.vlgmr.msra.gmra.mrb[20].mxu0 %vm824_vm6, %v1024_v63 }
 0x5bb   : > { %2152 = vmatprep.mubr.msk.bf16.mxu0 %vm2378_vm15, %v2377_v18 }
 0x5bd   : > { %v1010_v1 = vpop.f32.mrb[8].mxu1 }
 0x5be   : > { %v2138_v2 = vpop.f32.mrb[9].mxu1 }
 0x5bf   : > { %v1013_v3 = vpop.f32.mrb[10].mxu1 }
 0x5c0   : > { %v1025_v4 = vpack.c.bf16 %v1013_v3, %v1010_v1  ;;  %v2139_v5 = vpop.f32.mrb[11].mxu1 }
 0x5c2   : > { %2153 = vmatmul.mubr.msk.bf16.gmra.mrb[24].mxu0 %vm824_vm6, %v1025_v4 }
 0x5c3   : > { %2156 = vmatprep.mubr.msk.bf16.mxu0 %vm2378_vm15, %v2377_v18 }
 0x5c5   : > { %v1018_v6 = vpop.f32.mrb[12].mxu1 }
 0x5c6   : > { %v2142_v7 = vpop.f32.mrb[13].mxu1  ;;  %v1026_v9 = vpack.c.bf16 %v1018_v6, %v1018_v6 }
 0x5c7   : > { %v1021_v8 = vpop.f32.mrb[14].mxu1 }
 0x5c8   : > { %v2143_v10 = vpop.f32.mrb[15].mxu1 }
 0x5ca   : > { %2157 = vmatmul.mubr.msk.bf16.gmra.mrb[28].mxu0 %vm824_vm6, %v1026_v9 }
 0x5cb   : > { %2176 = vmatprep.mubr.msk.bf16.mxu0 %vm2378_vm15, %v2377_v18 }
 0x5cd   : > { %v1166_v11 = vpop.f32.mrb[16].mxu1 }
 0x5ce   : > { %v2164_v12 = vpop.f32.mrb[17].mxu1  ;;  %v1188_v13 = vsel %vm893_vm2, %v1166_v11, -inf }
 0x5cf   : > { %1189 = vmax.xlane.f32.xlu1 %v1188_v13  ;;  %v1169_v14 = vpop.f32.mrb[18].mxu1 }
 0x5d0   : > { %v2165_v16 = vpop.f32.mrb[19].mxu1  ;;  %v1191_v17 = vsel %vm893_vm2, %v1169_v14, -inf }
 0x5d1   : > { %1192 = vmax.xlane.f32.xlu0 %v1191_v17  ;;  %v2254_v16 = vld [vmem:[%s2964_s5 + $0x18] sm:$0xff]  }
 0x5d5   : > { %v1174_v15 = vpop.f32.mrb[20].mxu1 }
 0x5d6   : > { %v2168_v19 = vpop.f32.mrb[21].mxu1  ;;  %v1194_v20 = vsel %vm893_vm2, %v1174_v15, -inf }
 0x5d7   : > { %1195 = vmax.xlane.f32.xlu1 %v1194_v20  ;;  %v1177_v26 = vpop.f32.mrb[22].mxu1 }
 0x5d8   : > { %v2169_v39 = vpop.f32.mrb[23].mxu1  ;;  %v1197_v23 = vsel %vm893_vm2, %v1177_v26, -inf }
 0x5db   : > { %1198 = vmax.xlane.f32.xlu1 %v1197_v23 }
 0x5dd   : > { %v1182_v24 = vpop.f32.mrb[24].mxu1 }
 0x5de   : > { %v2172_v25 = vpop.f32.mrb[25].mxu1  ;;  %v1200_v27 = vsel %vm906_vm7, %v1182_v24, -inf }
 0x5df   : > { %1201 = vmax.xlane.f32.xlu1 %v1200_v27  ;;  %v1185_v29 = vpop.f32.mrb[26].mxu1 }
 0x5e0   : > { %v2173_v30 = vpop.f32.mrb[27].mxu1 }
 0x65c   : > { %v1190_v31 = vpop.xlane.xlu1 %1189 }
 0x65d   : > { %v1203_v32 = vsub.f32 %v1166_v11, %v1190_v31 }
 0x65e   : > { %v1193_v34 = vpop.xlane.xlu0 %1192 }
 0x65f   : > { %v1208_v35 = vmul.f32 1.442695, %v1203_v32  ;;  %v1204_v33 = vsub.f32 %v1169_v14, %v1193_v34 }
 0x661   : > { %2313 = vpow2.f32 %v1208_v35  ;;  %v1210_v36 = vmul.f32 1.442695, %v1204_v33  ;;  %v2001_v35 = vld [vmem:[%s2965_s6] ss:$0 sm:$0xff] }
 0x662   : > { %v2363_v33 = vld [vmem:[%s2469_s30] sm:$0xff] }
 0x663   : > { %2315 = vpow2.f32 %v1210_v36  ;;  %v807_v36 = vadd.f32 %v2363_v33, %v2001_v35  ;;  %v2258_v33 = vld [vmem:[%s2968_s9 + $0x10] ss:$8 sps:$4 sm:$0xff]  }
 0x664   : > { %v1196_v55 = vpop.xlane.xlu1 %1195 }
 0x665   : > { %v1205_v37 = vsub.f32 %v1174_v15, %v1196_v55  ;;  %v2364_v55 = vld [vmem:[%s2469_s30 + $0x8] sm:$0xff] }
 0x667   : > { %v1212_v40 = vmul.f32 1.442695, %v1205_v37  ;;  %v808_v37 = vadd.f32 %v2364_v55, %v2001_v35  ;;  %v2261_v55 = vld [vmem:[%s2968_s9 + $0x20] ss:$8 sps:$4 sm:$0xff]  }
 0x668   : > { %v1199_v41 = vpop.xlane.xlu1 %1198 }
 0x669   : > { %2317 = vpow2.f32 %v1212_v40  ;;  %v1206_v42 = vsub.f32 %v1177_v26, %v1199_v41 }
 0x66b   : > { %v2314_v44 = vpop.eup %2313  ;;  %v1214_v45 = vmul.f32 1.442695, %v1206_v42 }
 0x66c   : > { %v1202_v47 = vpop.xlane.xlu1 %1201  ;;  %v1218_v48 = vsel %vm893_vm2, %v2314_v44, 0.0 }
 0x66d   : > { %v2316_v61 = vpop.eup %2315  ;;  %2319 = vpow2.f32 %v1214_v45  ;;  %v1207_v49 = vsub.f32 %v1182_v24, %v1202_v47  ;;  %1219 = vadd.xlane.f32.xlu0 %v1218_v48  ;;  %v2365_v48 = vld [vmem:[%s2469_s30 + $0x10] sm:$0xff] }
 0x66e   : > { %v1221_v50 = vsel %vm893_vm2, %v2316_v61, 0.0 }
 0x66f   : > { %v1216_v51 = vmul.f32 1.442695, %v1207_v49  ;;  %1222 = vadd.xlane.f32.xlu1 %v1221_v50  ;;  %v2366_v50 = vld [vmem:[%s2469_s30 + $0x18] sm:$0xff] }
 0x671   : > { %2321 = vpow2.f32 %v1216_v51  ;;  %v810_v51 = vadd.f32 %v2366_v50, %v2001_v35 }
 0x673   : > { %v2318_v53 = vpop.eup %2317 }
 0x674   : > { %v1224_v54 = vsel %vm893_vm2, %v2318_v53, 0.0 }
 0x675   : > { %1225 = vadd.xlane.f32.xlu0 %v1224_v54 }
 0x677   : > { %v2320_v56 = vpop.eup %2319 }
 0x678   : > { %v1227_v58 = vsel %vm893_vm2, %v2320_v56, 0.0 }
 0x679   : > { %1228 = vadd.xlane.f32.xlu1 %v1227_v58 }
 0x67b   : > { %v2322_v59 = vpop.eup %2321 }
 0x67c   : > { %v1230_v60 = vsel %vm906_vm7, %v2322_v59, 0.0 }
 0x67d   : > { %1231 = vadd.xlane.f32.xlu0 %v1230_v60 }
 0x68a   : > { %1247 = vrot.lane.b32.xlu1 %v2614_v38, %s2381_s24  ;;  %v2253_v38 = vld [vmem:[%s2964_s5 + $0x10] sm:$0xff]   ;;  %s440_s24 = scalar_lea.vmem %s2972_s13, %s2223_s27 }
 0x6fa   : > { %v1220_v62 = vpop.xlane.xlu0 %1219 }
 0x6fc   : > { %v1223_v52 = vpop.xlane.xlu1 %1222 }
 0x6fd   : > { %2323 = vrcp.f32 %v1223_v52  ;;  %v2367_v52 = vld [vmem:[%s2469_s30 + $0x20] sm:$0x1] }
 0x6fe   : > { %2325 = vrcp.f32 %v1220_v62 }
 0x702   : > { %v1226_v57 = vpop.xlane.xlu0 %1225 }
 0x703   : > { %2327 = vrcp.f32 %v1226_v57  ;;  %v811_v57 = vadd.f32 %v2367_v52, %v2001_v35 }
 0x706   : > { %v1229_v63 = vpop.xlane.xlu1 %1228 }
 0x707   : > { %v2324_v0 = vpop.eup %2323  ;;  %2329 = vrcp.f32 %v1229_v63 }
 0x708   : > { %v2326_v1 = vpop.eup %2325  ;;  %v1239_v2 = vmul.f32 %v2324_v0, %v2316_v61  ;;  %v809_v61 = vadd.f32 %v2365_v48, %v2001_v35  ;;  %v2260_v35 = vld [vmem:[%s2968_s9 + $0x14] ss:$8 sps:$4 sm:$0xff]  }
 0x709   : > { %v1238_v6 = vmul.f32 %v2326_v1, %v2314_v44 }
 0x70a   : > { %v1232_v3 = vpop.xlane.xlu0 %1231  ;;  %v1248_v4 = vpop.permute.xlu1 %1247 }
 0x70b   : > { %v1259_v5 = vand.u32 %v1248_v4, %v2622_v46  ;;  %2331 = vrcp.f32 %v1232_v3  ;;  %v1243_v7 = vpack.c.bf16 %v1239_v2, %v1238_v6 }
 0x70d   : > { %2175 = vmatpush3.bf16.msra.mxu0 %v1259_v5  ;;  %v2328_v8 = vpop.eup %2327 }
 0x70e   : > { %2188 = vmatprep.subr.bf16.mxu0 %v2377_v18  ;;  %v1240_v46 = vmul.f32 %v2328_v8, %v2318_v53 }
 0x710   : > { %2177 = vmatmul.mubr.msk.bf16.vlgmr.msra.gmra.mrb[32].mxu0 %vm893_vm2, %v1243_v7 }
 0x711   : > { %v2330_v9 = vpop.eup %2329  ;;  %2180 = vmatprep.mubr.msk.bf16.mxu0 %vm2378_vm15, %v2377_v18  ;;  %2189 = vmatpush3.bf16.msra.mxu0 %v2253_v38 }
 0x712   : > { %v1241_v10 = vmul.f32 %v2330_v9, %v2320_v56  ;;  %2190 = vmatprep.subr.bf16.mxu0 %v2377_v18 }
 0x714   : > { %v1244_v11 = vpack.c.bf16 %v1241_v10, %v1240_v46 }
 0x715   : > { %v2332_v12 = vpop.eup %2331  ;;  %2191 = vmatpush3.bf16.msra.mxu0 %v2254_v16 }
 0x716   : > { %v1242_v13 = vmul.f32 %v2332_v12, %v2322_v59 }
 0x718   : > { %2181 = vmatmul.mubr.msk.bf16.gmra.mrb[36].mxu0 %vm893_vm2, %v1244_v11  ;;  %v1245_v14 = vpack.c.bf16 %v1242_v13, %v1242_v13 }
 0x719   : > { %2184 = vmatprep.mubr.msk.bf16.mxu0 %vm2378_vm15, %v2377_v18 }
 0x720   : > { %2185 = vmatmul.mubr.msk.bf16.gmra.mrb[40].mxu0 %vm893_vm2, %v1245_v14 }
 0x721   : > { %2192 = vmatprep.mubr.msk.bf16.mxu0 %vm2378_vm15, %v2377_v18 }
 0x7e3   : > { %v1295_v17 = vpop.f32.mrb[32].mxu0 }
 0x7e4   : > { %v2178_v15 = vpop.f32.mrb[33].mxu0 }
 0x7e5   : > { %v1298_v19 = vpop.f32.mrb[34].mxu0 }
 0x7e6   : > { %v1317_v20 = vpack.c.bf16 %v1298_v19, %v1295_v17  ;;  %v2179_v26 = vpop.f32.mrb[35].mxu0 }
 0x7e8   : > { %2193 = vmatmul.mubr.msk.bf16.vlgmr.msra.gmra.mrb[20].mxu0 %vm824_vm6, %v1317_v20 }
 0x7e9   : > { %2196 = vmatprep.mubr.msk.bf16.mxu0 %vm2378_vm15, %v2377_v18 }
 0x7eb   : > { %v1303_v39 = vpop.f32.mrb[36].mxu0 }
 0x7ec   : > { %v2182_v23 = vpop.f32.mrb[37].mxu0 }
 0x7ed   : > { %v1306_v24 = vpop.f32.mrb[38].mxu0 }
 0x7ee   : > { %v1318_v25 = vpack.c.bf16 %v1306_v24, %v1303_v39  ;;  %v2183_v27 = vpop.f32.mrb[39].mxu0 }
 0x7f0   : > { %2197 = vmatmul.mubr.msk.bf16.gmra.mrb[24].mxu0 %vm824_vm6, %v1318_v25 }
 0x7f1   : > { %2200 = vmatprep.mubr.msk.bf16.mxu0 %vm2378_vm15, %v2377_v18 }
 0x7f3   : > { %v1311_v29 = vpop.f32.mrb[40].mxu0 }
 0x7f4   : > { %v2186_v30 = vpop.f32.mrb[41].mxu0  ;;  %v1319_v32 = vpack.c.bf16 %v1311_v29, %v1311_v29 }
 0x7f5   : > { %v1314_v31 = vpop.f32.mrb[42].mxu0 }
 0x7f6   : > { %v2187_v34 = vpop.f32.mrb[43].mxu0 }
 0x7f7   : > { %v2255_v34 = vld [vmem:[%s2968_s9] ss:$8 sps:$4 sm:$0xff]  }
 0x7f8   : > { %2201 = vmatmul.mubr.msk.bf16.gmra.mrb[28].mxu0 %vm824_vm6, %v1319_v32  ;;  %v2257_v32 = vld [vmem:[%s2968_s9 + $0x4] ss:$8 sps:$4 sm:$0xff]  }
 0x7f9   : > { %1563 = vmatprep.subr.bf16.mxu1 %v2257_v32  ;;  %v2275_v32 = vld [vmem:[%s2970_s11 + $0x60] sm:$0xff]  }
 0x7fa   : > { %1564 = vmatpush1.bf16.msra.mxu1 %v2255_v34  ;;  %v2276_v34 = vld [vmem:[%s2970_s11 + $0x20] sm:$0xff]  }
 0x7fb   : > { %1565 = vmatprep.subr.bf16.mxu1 %v2260_v35  ;;  %v2277_v35 = vld [vmem:[%s2970_s11 + $0x68] sm:$0xff]  }
 0x7fe   : > { %1566 = vmatpush1.bf16.msra.mxu1 %v2258_v33  ;;  %v2278_v33 = vld [vmem:[%s2970_s11 + $0x28] sm:$0xff]  }
 0x8bb   : > { %v1375_v40 = vpop.f32.mrb[20].mxu0 }
 0x8bc   : > { %v2735_v41 = vadd.f32 %v1375_v40, %v807_v36  ;;  %v2194_v18 = vpop.f32.mrb[21].mxu0  ;;  %v2263_v36 = vld [vmem:[%s2968_s9 + $0x24] ss:$8 sps:$4 sm:$0xff]   ;;  %v2264_v40 = vld [vmem:[%s2968_s9 + $0x30] ss:$8 sps:$4 sm:$0xff]  }
 0x8bd   : > { %v1378_v42 = vpop.f32.mrb[22].mxu0  ;;  %1567 = vmatprep.subr.bf16.mxu1 %v2263_v36  ;;  %v2279_v36 = vld [vmem:[%s2970_s11 + $0x70] sm:$0xff]  }
 0x8be   : > { %v2737_v44 = vadd.f32 %v1378_v42, %v808_v37  ;;  %v2195_v45 = vpop.f32.mrb[23].mxu0  ;;  %v1404_v47 = vsel %vm449_vm0, %v2735_v41, 0.0  ;;  %1568 = vmatpush1.bf16.msra.mxu1 %v2261_v55  ;;  %v2266_v37 = vld [vmem:[%s2968_s9 + $0x34] ss:$8 sps:$4 sm:$0xff]  }
 0x8bf   : > { %1405 = vadd.xlane.f32.xlu0 %v1404_v47  ;;  %1569 = vmatprep.subr.bf16.mxu1 %v2266_v37  ;;  %v2280_v55 = vld [vmem:[%s2970_s11 + $0x30] sm:$0xff]   ;;  %v2281_v37 = vld [vmem:[%s2970_s11 + $0x78] sm:$0xff]  }
 0x8c0   : > { %v1407_v49 = vsel %vm449_vm0, %v2737_v44, 0.0 }
 0x8c2   : > { %1570 = vmatpush1.bf16.msra.mxu1 %v2264_v40  ;;  %v2282_v40 = vld [vmem:[%s2970_s11 + $0x38] sm:$0xff]  }
 0x8c3   : > { %1408 = vadd.xlane.f32.xlu0 %v1407_v49  ;;  %v1383_v53 = vpop.f32.mrb[24].mxu0 }
 0x8c4   : > { %v2745_v54 = vadd.f32 %v1383_v53, %v809_v61  ;;  %v2198_v56 = vpop.f32.mrb[25].mxu0 }
 0x8c5   : > { %v1386_v58 = vpop.f32.mrb[26].mxu0 }
 0x8c6   : > { %v2747_v59 = vadd.f32 %v1386_v58, %v810_v51  ;;  %v2199_v60 = vpop.f32.mrb[27].mxu0  ;;  %v1410_v62 = vsel %vm449_vm0, %v2745_v54, 0.0 }
 0x8c7   : > { %1411 = vadd.xlane.f32.xlu0 %v1410_v62 }
 0x8c8   : > { %v1413_v63 = vsel %vm449_vm0, %v2747_v59, 0.0 }
 0x8cb   : > { %1414 = vadd.xlane.f32.xlu0 %v1413_v63  ;;  %v1391_v0 = vpop.f32.mrb[28].mxu0 }
 0x8cc   : > { %v2754_v1 = vadd.f32 %v1391_v0, %v811_v57  ;;  %v2202_v2 = vpop.f32.mrb[29].mxu0  ;;  %v2024_v57 = vld [vmem:[%s2966_s7] ss:$0 sm:$0xff] }
 0x8cd   : > { %v1394_v3 = vpop.f32.mrb[30].mxu0 }
 0x8ce   : > { %v2203_v4 = vpop.f32.mrb[31].mxu0  ;;  %v1416_v5 = vsel %vm462_vm1, %v2754_v1, 0.0 }
 0x8cf   : > { %1417 = vadd.xlane.f32.xlu0 %v1416_v5  ;;  %v2025_v5 = vld [vmem:[%s2967_s8] ss:$0 sm:$0xff] }
 0x94c   : > { %v1406_v6 = vpop.xlane.xlu0 %1405 }
 0x94d   : > { %v1419_v38 = vmul.f32 0.015625, %v1406_v6 }
 0x94f   : > { %v1424_v7 = vsub.f32 %v2735_v41, %v1419_v38 }
 0x950   : > { %v1409_v8 = vpop.xlane.xlu0 %1408 }
 0x951   : > { %v1420_v9 = vmul.f32 0.015625, %v1409_v8  ;;  %v1429_v10 = vmul.f32 %v1424_v7, %v1424_v7 }
 0x953   : > { %v2760_v46 = vsub.f32 %v2737_v44, %v1420_v9  ;;  %v1434_v11 = vsel %vm449_vm0, %v1429_v10, 0.0 }
 0x954   : > { %1435 = vadd.xlane.f32.xlu1 %v1434_v11  ;;  %v1412_v12 = vpop.xlane.xlu0 %1411 }
 0x955   : > { %v1421_v13 = vmul.f32 0.015625, %v1412_v12  ;;  %v1430_v14 = vmul.f32 %v2760_v46, %v2760_v46 }
 0x957   : > { %v2766_v16 = vsub.f32 %v2745_v54, %v1421_v13  ;;  %v1437_v17 = vsel %vm449_vm0, %v1430_v14, 0.0 }
 0x958   : > { %v1415_v15 = vpop.xlane.xlu0 %1414  ;;  %1438 = vadd.xlane.f32.xlu0 %v1437_v17 }
 0x959   : > { %v1422_v19 = vmul.f32 0.015625, %v1415_v15  ;;  %v1431_v20 = vmul.f32 %v2766_v16, %v2766_v16 }
 0x95b   : > { %v1427_v26 = vsub.f32 %v2747_v59, %v1422_v19  ;;  %v1440_v39 = vsel %vm449_vm0, %v1431_v20, 0.0 }
 0x95c   : > { %1441 = vadd.xlane.f32.xlu0 %v1440_v39  ;;  %v1418_v23 = vpop.xlane.xlu0 %1417 }
 0x95d   : > { %v1423_v24 = vmul.f32 0.015625, %v1418_v23  ;;  %v1432_v25 = vmul.f32 %v1427_v26, %v1427_v26 }
 0x95f   : > { %v1428_v27 = vsub.f32 %v2754_v1, %v1423_v24  ;;  %v1443_v29 = vsel %vm449_vm0, %v1432_v25, 0.0  ;;  %v2268_v24 = vld [vmem:[%s2970_s11] sm:$0xff]   ;;  %v2269_v25 = vld [vmem:[%s2970_s11 + $0x48] sm:$0xff]  }
 0x960   : > { %1444 = vadd.xlane.f32.xlu0 %v1443_v29  ;;  %v2272_v29 = vld [vmem:[%s2970_s11 + $0x10] sm:$0xff]  }
 0x961   : > { %v1433_v30 = vmul.f32 %v1428_v27, %v1428_v27 }
 0x963   : > { %v1446_v31 = vsel %vm462_vm1, %v1433_v30, 0.0  ;;  %v2273_v30 = vld [vmem:[%s2970_s11 + $0x58] sm:$0xff]  }
 0x964   : > { %1447 = vadd.xlane.f32.xlu0 %v1446_v31  ;;  %v2274_v31 = vld [vmem:[%s2970_s11 + $0x18] sm:$0xff]  }
 0x9e1   : > { %v1436_v18 = vpop.xlane.xlu1 %1435 }
 0x9e2   : > { %v1449_v42 = vmul.f32 0.015625, %v1436_v18  ;;  %v1502_v18 = vld [vmem:[%s2969_s10] sm:$0x3] }
 0x9e4   : > { %v1454_v45 = vadd.f32 1e-06, %v1449_v42  ;;  %v1507_v42 = vrot.slane %v1502_v18, %v554_v22 }
 0x9e5   : > { %v1439_v47 = vpop.xlane.xlu0 %1438 }
 0x9e6   : > { %2333 = vrsqrt.f32 %v1454_v45  ;;  %v1450_v48 = vmul.f32 0.015625, %v1439_v47  ;;  %v1511_v45 = vrot.slane %v1502_v18, %v558_v28 }
 0x9e8   : > { %v1455_v61 = vadd.f32 1e-06, %v1450_v48 }
 0x9e9   : > { %v1442_v49 = vpop.xlane.xlu0 %1441 }
 0x9ea   : > { %2335 = vrsqrt.f32 %v1455_v61  ;;  %v1451_v50 = vmul.f32 0.015625, %v1442_v49 }
 0x9ec   : > { %v1456_v51 = vadd.f32 1e-06, %v1451_v50 }
 0x9ed   : > { %v1445_v53 = vpop.xlane.xlu0 %1444 }
 0x9ee   : > { %2337 = vrsqrt.f32 %v1456_v51  ;;  %v1452_v56 = vmul.f32 0.015625, %v1445_v53 }
 0x9f0   : > { %v2334_v58 = vpop.eup %2333  ;;  %v1457_v60 = vadd.f32 1e-06, %v1452_v56 }
 0x9f1   : > { %v1464_v62 = vmul.f32 %v2334_v58, %v1424_v7  ;;  %v1448_v52 = vpop.xlane.xlu0 %1447 }
 0x9f2   : > { %2339 = vrsqrt.f32 %v1457_v60  ;;  %v1453_v63 = vmul.f32 0.015625, %v1448_v52 }
 0x9f3   : > { %v1475_v3 = vmul.f32 %v2024_v57, %v1464_v62 }
 0x9f4   : > { %v2336_v0 = vpop.eup %2335  ;;  %v1458_v2 = vadd.f32 1e-06, %v1453_v63 }
 0x9f5   : > { %v1465_v4 = vmul.f32 %v2336_v0, %v2760_v46  ;;  %v1486_v7 = vadd.f32 %v2025_v5, %v1475_v3 }
 0x9f6   : > { %2341 = vrsqrt.f32 %v1458_v2 }
 0x9f7   : > { %v1476_v6 = vmul.f32 %v2024_v57, %v1465_v4 }
 0x9f8   : > { %v2338_v38 = vpop.eup %2337 }
 0x9f9   : > { %v1487_v8 = vadd.f32 %v2025_v5, %v1476_v6  ;;  %v1466_v9 = vmul.f32 %v2338_v38, %v2766_v16 }
 0x9fb   : > { %v1491_v10 = vpack.c.bf16 %v1487_v8, %v1486_v7  ;;  %v1477_v13 = vmul.f32 %v2024_v57, %v1466_v9 }
 0x9fc   : > { %v2340_v11 = vpop.eup %2339 }
 0x9fd   : > { %v1467_v12 = vmul.f32 %v2340_v11, %v1427_v26  ;;  %2034 = vmatmul.mubr.msk.bf16.vlgmr.msra.gmra.mrb[28].mxu1 %vm449_vm0, %v1491_v10  ;;  %v1488_v15 = vadd.f32 %v2025_v5, %v1477_v13  ;;  %v2267_v26 = vld [vmem:[%s2970_s11 + $0x40] sm:$0xff]  }
 0x9fe   : > { %1605 = vmatprep.mubr.bf16.mxu1 %v2376_v43  ;;  %2082 = vmatprep.subr.bf16.mxu1 %v2267_v26 }
 0x9ff   : > { %v1478_v46 = vmul.f32 %v2024_v57, %v1467_v12  ;;  %2083 = vmatpush3.bf16.msra.mxu1 %v2268_v24 }
 0xa00   : > { %v2342_v14 = vpop.eup %2341  ;;  %2084 = vmatprep.subr.bf16.mxu1 %v2269_v25 }
 0xa01   : > { %v1468_v17 = vmul.f32 %v2342_v14, %v1428_v27  ;;  %v1489_v19 = vadd.f32 %v2025_v5, %v1478_v46  ;;  %v2271_v27 = vld [vmem:[%s2970_s11 + $0x50] sm:$0xff]  }
 0xa03   : > { %v1492_v20 = vpack.c.bf16 %v1489_v19, %v1488_v15  ;;  %v1479_v39 = vmul.f32 %v2024_v57, %v1468_v17 }
 0xa05   : > { %2035 = vmatmul.mubr.msk.bf16.gmra.mrb[32].mxu1 %vm449_vm0, %v1492_v20  ;;  %v1490_v16 = vadd.f32 %v2025_v5, %v1479_v39 }
 0xa06   : > { %1615 = vmatprep.mubr.bf16.mxu1 %v2376_v43  ;;  %v2270_v43 = vld [vmem:[%s2970_s11 + $0x8] sm:$0xff]  }
 0xa07   : > { %v1493_v23 = vpack.c.bf16 %v1490_v16, %v1490_v16  ;;  %2085 = vmatpush3.bf16.msra.mxu1 %v2270_v43 }
 0xa08   : > { %2086 = vmatprep.subr.bf16.mxu1 %v2271_v27 }
 0xa0b   : > { %2087 = vmatpush3.bf16.msra.mxu1 %v2272_v29 }
 0xa0c   : > { %2088 = vmatprep.subr.bf16.mxu1 %v2273_v30 }
 0xa0d   : > { %2036 = vmatmul.mubr.msk.bf16.gmra.mrb[36].mxu1 %vm449_vm0, %v1493_v23 }
 0xa0f   : > { %2089 = vmatpush3.bf16.msra.mxu1 %v2274_v31 }
 0xa10   : > { %2090 = vmatprep.subr.bf16.mxu1 %v2275_v32 }
 0xa13   : > { %2091 = vmatpush3.bf16.msra.mxu1 %v2276_v34 }
 0xa14   : > { %2092 = vmatprep.subr.bf16.mxu1 %v2277_v35 }
 0xa17   : > { %2093 = vmatpush3.bf16.msra.mxu1 %v2278_v33 }
 0xa18   : > { %2094 = vmatprep.subr.bf16.mxu1 %v2279_v36 }
 0xa1b   : > { %2095 = vmatpush3.bf16.msra.mxu1 %v2280_v55 }
 0xa1c   : > { %2096 = vmatprep.subr.bf16.mxu1 %v2281_v37 }
 0xa1f   : > { %2097 = vmatpush3.bf16.msra.mxu1 %v2282_v40 }
 0xad0   : > { %v1597_v47 = vpop.f32.mrb[28].mxu1 }
 0xad1   : > { %v2868_v48 = vadd.f32 %v1597_v47, %v1507_v42  ;;  %v1599_v61 = vpop.f32.mrb[29].mxu1 }
 0xad2   : > { %v2870_v49 = vadd.f32 %v1599_v61, %v1511_v45  ;;  %v1601_v50 = vpop.f32.mrb[30].mxu1 }
 0xad3   : > { %v1634_v51 = vmul.f32 0.044715, %v2868_v48  ;;  %v2873_v53 = vadd.f32 %v1601_v50, %v1507_v42  ;;  %v1603_v56 = vpop.f32.mrb[31].mxu1 }
 0xad4   : > { %v1635_v58 = vmul.f32 0.044715, %v2870_v49  ;;  %v2876_v60 = vadd.f32 %v1603_v56, %v1511_v45 }
 0xad5   : > { %v1644_v22 = vmul.f32 %v1634_v51, %v2868_v48  ;;  %v1636_v21 = vmul.f32 0.044715, %v2873_v53 }
 0xad6   : > { %v1645_v28 = vmul.f32 %v1635_v58, %v2870_v49  ;;  %v1637_v62 = vmul.f32 0.044715, %v2876_v60 }
 0xad7   : > { %v1654_v52 = vmul.f32 %v1644_v22, %v2868_v48  ;;  %v1646_v57 = vmul.f32 %v1636_v21, %v2873_v53 }
 0xad8   : > { %v1655_v63 = vmul.f32 %v1645_v28, %v2870_v49  ;;  %v1647_v0 = vmul.f32 %v1637_v62, %v2876_v60  ;;  %v1607_v2 = vpop.f32.mrb[32].mxu1 }
 0xad9   : > { %v1664_v3 = vadd.f32 %v1654_v52, %v2868_v48  ;;  %v1656_v4 = vmul.f32 %v1646_v57, %v2873_v53  ;;  %v2888_v5 = vadd.f32 %v1607_v2, %v1507_v42  ;;  %v1609_v6 = vpop.f32.mrb[33].mxu1 }
 0xada   : > { %v1657_v38 = vmul.f32 %v1647_v0, %v2876_v60  ;;  %v2891_v7 = vadd.f32 %v1609_v6, %v1511_v45  ;;  %v1611_v8 = vpop.f32.mrb[34].mxu1  ;;  %v1665_v9 = vadd.f32 %v1655_v63, %v2870_v49  ;;  %v1626_v6 = vmul.f32 0.5, %v2873_v53 }
 0xadb   : > { %v1674_v10 = vmul.f32 0.7978846, %v1664_v3  ;;  %v1666_v11 = vadd.f32 %v1656_v4, %v2873_v53  ;;  %v1638_v12 = vmul.f32 0.044715, %v2888_v5  ;;  %v2896_v13 = vadd.f32 %v1611_v8, %v1507_v42  ;;  %v1613_v46 = vpop.f32.mrb[35].mxu1 }
 0xadc   : > { %v1639_v14 = vmul.f32 0.044715, %v2891_v7  ;;  %v2899_v17 = vadd.f32 %v1613_v46, %v1511_v45  ;;  %v1667_v15 = vadd.f32 %v1657_v38, %v2876_v60  ;;  %v1675_v19 = vmul.f32 0.7978846, %v1665_v9 }
 0xadd   : > { %2343 = vtanh.f32 %v1674_v10  ;;  %v1676_v20 = vmul.f32 0.7978846, %v1666_v11  ;;  %v1648_v39 = vmul.f32 %v1638_v12, %v2888_v5  ;;  %v1640_v16 = vmul.f32 0.044715, %v2896_v13 }
 0xade   : > { %v1649_v23 = vmul.f32 %v1639_v14, %v2891_v7  ;;  %v1641_v26 = vmul.f32 0.044715, %v2899_v17  ;;  %v1677_v24 = vmul.f32 0.7978846, %v1667_v15  ;;  %2345 = vtanh.f32 %v1675_v19 }
 0xadf   : > { %2347 = vtanh.f32 %v1676_v20  ;;  %v1658_v25 = vmul.f32 %v1648_v39, %v2888_v5  ;;  %v1650_v43 = vmul.f32 %v1640_v16, %v2896_v13  ;;  %v1624_v4 = vmul.f32 0.5, %v2868_v48 }
 0xae0   : > { %v1659_v27 = vmul.f32 %v1649_v23, %v2891_v7  ;;  %v1651_v29 = vmul.f32 %v1641_v26, %v2899_v17  ;;  %v1617_v30 = vpop.f32.mrb[36].mxu1  ;;  %2349 = vtanh.f32 %v1677_v24  ;;  %v1625_v9 = vmul.f32 0.5, %v2870_v49 }
 0xae1   : > { %v1660_v31 = vmul.f32 %v1650_v43, %v2896_v13  ;;  %v2911_v32 = vadd.f32 %v1617_v30, %v1507_v42  ;;  %v1619_v34 = vpop.f32.mrb[37].mxu1  ;;  %v1668_v37 = vadd.f32 %v1658_v25, %v2888_v5  ;;  %v1627_v10 = vmul.f32 0.5, %v2876_v60 }
 0xae2   : > { %v1661_v35 = vmul.f32 %v1651_v29, %v2899_v17  ;;  %v2914_v33 = vadd.f32 %v1619_v34, %v1511_v45  ;;  %v1621_v36 = vpop.f32.mrb[38].mxu1  ;;  %v1669_v55 = vadd.f32 %v1659_v27, %v2891_v7  ;;  %v1629_v60 = vmul.f32 0.5, %v2891_v7 }
 0xae3   : > { %v1642_v40 = vmul.f32 0.044715, %v2911_v32  ;;  %v1622_v18 = vpop.f32.mrb[39].mxu1  ;;  %v1670_v47 = vadd.f32 %v1660_v31, %v2896_v13  ;;  %v1678_v51 = vmul.f32 0.7978846, %v1668_v37  ;;  %v1631_v25 = vmul.f32 0.5, %v2899_v17 }
 0xae4   : > { %v1643_v61 = vmul.f32 0.044715, %v2914_v33  ;;  %v1671_v42 = vadd.f32 %v1661_v35, %v2899_v17  ;;  %v1679_v50 = vmul.f32 0.7978846, %v1669_v55  ;;  %v1628_v27 = vmul.f32 0.5, %v2888_v5 }
 0xae5   : > { %v1652_v56 = vmul.f32 %v1642_v40, %v2911_v32  ;;  %v1680_v45 = vmul.f32 0.7978846, %v1670_v47  ;;  %v1630_v29 = vmul.f32 0.5, %v2896_v13  ;;  %v1633_v7 = vmul.f32 0.5, %v2914_v33 }
 0xae6   : > { %v1653_v58 = vmul.f32 %v1643_v61, %v2914_v33  ;;  %v1681_v22 = vmul.f32 0.7978846, %v1671_v42  ;;  %2351 = vtanh.f32 %v1679_v50  ;;  %v1632_v5 = vmul.f32 0.5, %v2911_v32 }
 0xae7   : > { %v2344_v21 = vpop.eup %2343  ;;  %2353 = vtanh.f32 %v1678_v51  ;;  %v1662_v28 = vmul.f32 %v1652_v56, %v2911_v32 }
 0xae8   : > { %v2346_v62 = vpop.eup %2345  ;;  %v1694_v52 = vadd.f32 1.0, %v2344_v21  ;;  %2355 = vtanh.f32 %v1681_v22  ;;  %v1663_v57 = vmul.f32 %v1653_v58, %v2914_v33  ;;  %v2053_v22 = vld [vmem:[%s2971_s12] ss:$0 sm:$0xff] }
 0xae9   : > { %v2348_v63 = vpop.eup %2347  ;;  %v1695_v0 = vadd.f32 1.0, %v2346_v62  ;;  %2357 = vtanh.f32 %v1680_v45  ;;  %v1672_v2 = vadd.f32 %v1662_v28, %v2911_v32 }
 0xaea   : > { %v2350_v3 = vpop.eup %2349  ;;  %v1696_v38 = vadd.f32 1.0, %v2348_v63  ;;  %v1673_v8 = vadd.f32 %v1663_v57, %v2914_v33  ;;  %v1704_v46 = vmul.f32 %v1694_v52, %v1624_v4 }
 0xaeb   : > { %v1697_v11 = vadd.f32 1.0, %v2350_v3  ;;  %v1682_v12 = vmul.f32 0.7978846, %v1672_v2  ;;  %v1705_v19 = vmul.f32 %v1695_v0, %v1625_v9 }
 0xaec   : > { %v1706_v14 = vmul.f32 %v1696_v38, %v1626_v6  ;;  %v1683_v15 = vmul.f32 0.7978846, %v1673_v8 }
 0xaed   : > { %v1707_v20 = vmul.f32 %v1697_v11, %v1627_v10  ;;  %2359 = vtanh.f32 %v1682_v12 }
 0xaee   : > { %v1714_v39 = vpack.c.bf16 %v1706_v14, %v1704_v46  ;;  %2361 = vtanh.f32 %v1683_v15 }
 0xaef   : > { %v1715_v48 = vpack.c.bf16 %v1707_v20, %v1705_v19 }
 0xaf0   : > { %v2352_v16 = vpop.eup %2351 }
 0xaf1   : > { %v2354_v53 = vpop.eup %2353  ;;  %1880 = vmatprep.mubr.bf16.mxu1 %v1715_v48  ;;  %v1699_v23 = vadd.f32 1.0, %v2352_v16 }
 0xaf2   : > { %v2356_v26 = vpop.eup %2355  ;;  %1881 = vmatmul.mubr.bf16.vlgmr.msra.gmra.mrb[40].mxu1 %v1714_v39  ;;  %v1698_v49 = vadd.f32 1.0, %v2354_v53 }
 0xaf3   : > { %v2358_v24 = vpop.eup %2357  ;;  %v1701_v43 = vadd.f32 1.0, %v2356_v26  ;;  %v1709_v31 = vmul.f32 %v1699_v23, %v1629_v60 }
 0xaf4   : > { %v1700_v30 = vadd.f32 1.0, %v2358_v24  ;;  %v1708_v35 = vmul.f32 %v1698_v49, %v1628_v27 }
 0xaf5   : > { %v1711_v34 = vmul.f32 %v1701_v43, %v1631_v25 }
 0xaf6   : > { %v1710_v36 = vmul.f32 %v1700_v30, %v1630_v29 }
 0xaf7   : > { %v2360_v55 = vpop.eup %2359  ;;  %v1717_v37 = vpack.c.bf16 %v1711_v34, %v1709_v31 }
 0xaf8   : > { %v2362_v40 = vpop.eup %2361  ;;  %v1716_v18 = vpack.c.bf16 %v1710_v36, %v1708_v35  ;;  %v1702_v47 = vadd.f32 1.0, %v2360_v55 }
 0xaf9   : > { %1888 = vmatprep.mubr.bf16.mxu1 %v1717_v37  ;;  %v1703_v61 = vadd.f32 1.0, %v2362_v40 }
 0xafa   : > { %1889 = vmatmul.mubr.bf16.gmra.mrb[44].mxu1 %v1716_v18  ;;  %v1712_v13 = vmul.f32 %v1702_v47, %v1632_v5 }
 0xafb   : > { %v1713_v17 = vmul.f32 %v1703_v61, %v1633_v7 }
 0xafc   : > { %v1718_v50 = vpack.c.bf16 %v1712_v13, %v1712_v13 }
 0xafd   : > { %v1719_v42 = vpack.c.bf16 %v1713_v17, %v1713_v17 }
 0xaff   : > { %1896 = vmatprep.mubr.bf16.mxu1 %v1719_v42 }
 0xb02   : > { %1897 = vmatmul.mubr.bf16.gmra.mrb[48].mxu1 %v1718_v50 }
 0xbc5   : > { %v2098_v51 = vpop.f32.mrb[40].mxu1 }
 0xbc6   : > { %v2099_v56 = vpop.f32.mrb[41].mxu1 }
 0xbc7   : > { %v2100_v45 = vadd.f32 %v2099_v56, %v2098_v51  ;;  %v2101_v58 = vpop.f32.mrb[42].mxu1 }
 0xbc8   : > { %v2102_v33 = vpop.f32.mrb[43].mxu1 }
 0xbc9   : > { %v1904_v21 = vadd.f32 %v2735_v41, %v2100_v45  ;;  %v2103_v28 = vadd.f32 %v2102_v33, %v2101_v58 }
 0xbcb   : > { %v1916_v32 = vadd.f32 %v2053_v22, %v1904_v21  ;;  %v1905_v62 = vadd.f32 %v2737_v44, %v2103_v28 }
 0xbcd   : > { %1921 = vst.msk [vmem:[%s440_s24] sm:$0xff] %vm449_vm0, %v1916_v32  ;;  %v1917_v52 = vadd.f32 %v2053_v22, %v1905_v62  ;;  %v2104_v57 = vpop.f32.mrb[44].mxu1 }
 0xbce   : > { %v2105_v63 = vpop.f32.mrb[45].mxu1 }
 0xbcf   : > { %1922 = vst.msk [vmem:[%s440_s24 + $0x8] sm:$0xff] %vm449_vm0, %v1917_v52  ;;  %v2106_v0 = vadd.f32 %v2105_v63, %v2104_v57  ;;  %v2107_v2 = vpop.f32.mrb[46].mxu1 }
 0xbd0   : > { %v2108_v3 = vpop.f32.mrb[47].mxu1 }
 0xbd1   : > { %v1906_v41 = vadd.f32 %v2745_v54, %v2106_v0  ;;  %v2109_v4 = vadd.f32 %v2108_v3, %v2107_v2 }
 0xbd3   : > { %v1918_v6 = vadd.f32 %v2053_v22, %v1906_v41  ;;  %v1907_v38 = vadd.f32 %v2747_v59, %v2109_v4 }
 0xbd5   : > { %1923 = vst.msk [vmem:[%s440_s24 + $0x10] sm:$0xff] %vm449_vm0, %v1918_v6  ;;  %v1919_v8 = vadd.f32 %v2053_v22, %v1907_v38  ;;  %v2110_v44 = vpop.f32.mrb[48].mxu1 }
 0xbd6   : > { %v2111_v9 = vpop.f32.mrb[49].mxu1 }
 0xbd7   : > { %1924 = vst.msk [vmem:[%s440_s24 + $0x18] sm:$0xff] %vm449_vm0, %v1919_v8  ;;  %v2112_v10 = vadd.f32 %v2111_v9, %v2110_v44  ;;  %v2113_v11 = vpop.f32.mrb[50].mxu1 }
 0xbd8   : > { %v2114_v12 = vpop.f32.mrb[51].mxu1 }
 0xbd9   : > { %v1908_v46 = vadd.f32 %v2754_v1, %v2112_v10 }
 0xbdb   : > { %v1920_v14 = vadd.f32 %v2053_v22, %v1908_v46 }
 0xbdd   : > { %1925 = vst.msk [vmem:[%s440_s24 + $0x20] sm:$0x1] %vm462_vm1, %v1920_v14 }
 0xbde PF: > { %s23_s25 = sadd.s32 1, %s2374_s25  }
 0xbdf   : > { %p20_p4 = scmp.ge.s32.totalorder %s23_s25, 4  }
 0xbe1   :  { %22 = sbr.rel (!%p20_p4) target bundleno = 1 (0x1), region = 102 }

// kernel: mvit_forward.7
= control target key start
LH: loop header
LB: loop body
LE: loop exit
PB: predicated region body
PF: predicated region fallthrough
CT: control target
= control target key end

     0   :  { %vm24_vm0 = vcmask 517120   ;;  %s332_s0 = inlined_call_operand.vmem [shape: f32[2,64], index: 0, kind: input, shape index: {}]   ;;  %s333_s1 = inlined_call_operand.vmem [shape: f32[1,64], index: 1, kind: input, shape index: {}]   ;;  %s334_s2 = inlined_call_operand.vmem [shape: f32[1,64], index: 2, kind: input, shape index: {}]   ;;  %s335_s3 = inlined_call_operand.vmem [shape: f32[64,7], index: 3, kind: input, shape index: {}]   ;;  %s336_s4 = inlined_call_operand.vmem [shape: f32[1,7], index: 4, kind: input, shape index: {}]   ;;  %s337_s5 = inlined_call_operand.hbm [shape: f32[2,7], index: 5, kind: output, shape index: {}]  }
   0x1   :  { %v21_v0 = vld [vmem:[%s332_s0] sm:$0x3] }
   0x2   :  { %10 = vsyncpa [#allocation3], 0  ;;  %v25_v1 = vsel %vm24_vm0, %v21_v0, 0.0  ;;  %v53_v7 = vld [vmem:[%s335_s3] sm:$0xff]  ;;  %v54_v8 = vld [vmem:[%s335_s3 + $0x8] sm:$0xff]  ;;  %v247_v12 = vmov 0.0|0.0  }
   0x3   :  { %26 = vadd.xlane.f32.xlu0 %v25_v1  ;;  %v202_v9 = vpack.c.bf16 %v54_v8, %v53_v7  ;;  %v55_v10 = vld [vmem:[%s335_s3 + $0x10] sm:$0xff]  ;;  %v56_v11 = vld [vmem:[%s335_s3 + $0x18] sm:$0xff]  ;;  %201 = vmatprep.subr.bf16.mxu0 %v247_v12  ;;  %vm248_vm1 = vmmov 0   ;;  %v249_v13 = vmov 0.0   ;;  %v57_v15 = vld [vmem:[%s335_s3 + $0x20] sm:$0xff]  ;;  %vm68_vm2 = vcmask 523264  }
   0x4   :  { %198 = vmatprep.mubr.msk.f32.mxu0 %vm248_vm1, %v249_v13  ;;  %v205_v14 = vpack.c.bf16 %v56_v11, %v55_v10  ;;  %v58_v16 = vld [vmem:[%s335_s3 + $0x28] sm:$0xff]  ;;  %v59_v18 = vld [vmem:[%s335_s3 + $0x30] sm:$0xff]  ;;  %v60_v19 = vld [vmem:[%s335_s3 + $0x38] sm:$0xff]  ;;  %vm142_vm3 = vcmask 50176  }
   0x5   :  { %203 = vmatpush3.bf16.msra.mxu0 %v202_v9  ;;  %v208_v17 = vpack.c.bf16 %v58_v16, %v57_v15  ;;  %v211_v20 = vpack.c.bf16 %v60_v19, %v59_v18  ;;  %v169_v25 = vld [vmem:[%s333_s1] ss:$0 sm:$0xff]  ;;  %s250_s1 = smov [#allocation2]  }
   0x6   :  { %204 = vmatprep.subr.bf16.mxu0 %v247_v12  ;;  %v170_v27 = vld [vmem:[%s334_s2] ss:$0 sm:$0xff]  ;;  %s161_s2 = sshll.u32 %s250_s1, 4  ;;  %s162_s2 = int_to_ptr.vmem [resolvable:$true] %s161_s2 }
   0x7   :  { %v171_v30 = vld [vmem:[%s336_s4] ss:$0 sm:$0xff]  ;;  %s223_s4 = scalar_lea.vmem %s162_s2, 32  ;;  %p228_p1 = scmp.lt.s32.totalorder %s162_s2, %s162_s2 }
   0x8   :  { %p224_p0 = scmp.ne.s32.totalorder %s162_s2, %s223_s4  ;;  %p229_p2 = scmp.lt.s32.totalorder %s223_s4, %s223_s4 }
   0x9   :  { %206 = vmatpush3.bf16.msra.mxu0 %v205_v14 }
   0xa   :  { %207 = vmatprep.subr.bf16.mxu0 %v247_v12  ;;  %p230_p3 = por %p229_p2, %p228_p1 }
   0xc   :  { %p231_p4 = pnand %p230_p3, %p224_p0 }
   0xd   :  { %209 = vmatpush3.bf16.msra.mxu0 %v208_v17 }
   0xe   :  { %210 = vmatprep.subr.bf16.mxu0 %v247_v12 }
  0x11   :  { %212 = vmatpush3.bf16.msra.mxu0 %v211_v20 }
  0x90   :  { %v27_v2 = vpop.xlane.xlu0 %26 }
  0x91   :  { %v29_v3 = vmul.f32 0.015625, %v27_v2 }
  0x93   :  { %v30_v4 = vsub.f32 %v21_v0, %v29_v3 }
  0x95   :  { %v31_v5 = vmul.f32 %v30_v4, %v30_v4 }
  0x97   :  { %v32_v6 = vsel %vm24_vm0, %v31_v5, 0.0 }
  0x98   :  { %33 = vadd.xlane.f32.xlu0 %v32_v6 }
 0x125   :  { %v34_v21 = vpop.xlane.xlu0 %33 }
 0x126   :  { %v35_v22 = vmul.f32 0.015625, %v34_v21 }
 0x128   :  { %v36_v23 = vadd.f32 1e-06, %v35_v22 }
 0x12a   :  { %217 = vrsqrt.f32 %v36_v23 }
 0x134   :  { %v218_v24 = vpop.eup %217 }
 0x135   :  { %v38_v26 = vmul.f32 %v218_v24, %v30_v4 }
 0x137   :  { %v45_v28 = vmul.f32 %v169_v25, %v38_v26 }
 0x139   :  { %v52_v29 = vadd.f32 %v170_v27, %v45_v28 }
 0x13b   :  { %199 = vmatmul.mubr.msk.f32.vlgmr.msra.gmra.mrb[0].mxu0 %vm68_vm2, %v52_v29 }
 0x20e   :  { %v138_v31 = vpop.f32.mrb[0].mxu0 }
 0x20f   :  { %v139_v32 = vadd.f32 %v171_v30, %v138_v31  ;;  %v200_v33 = vpop.f32.mrb[1].mxu0 }
 0x211   :  { %v143_v34 = vsel %vm142_vm3, %v139_v32, -inf }
 0x212   :  { %144 = vmax.xlane.f32.xlu1 %v143_v34 }
 0x29f   :  { %v145_v35 = vpop.xlane.xlu1 %144 }
 0x2a0   :  { %v146_v36 = vsub.f32 %v139_v32, %v145_v35 }
 0x2a2   :  { %v147_v37 = vmul.f32 1.442695, %v146_v36 }
 0x2a4   :  { %219 = vpow2.f32 %v147_v37 }
 0x2ae   :  { %v220_v38 = vpop.eup %219 }
 0x2af   :  { %v149_v39 = vsel %vm142_vm3, %v220_v38, 0.0 }
 0x2b0   :  { %150 = vadd.xlane.f32.xlu1 %v149_v39 }
 0x33d   :  { %v151_v40 = vpop.xlane.xlu1 %150 }
 0x33e   :  { %221 = vrcp.f32 %v151_v40 }
 0x348   :  { %v222_v41 = vpop.eup %221 }
 0x349   :  { %v153_v42 = vmul.f32 %v222_v41, %v220_v38 }
 0x34b   :  { %154 = vst.msk [vmem:[#allocation2] sm:$0x3] %vm142_vm3, %v153_v42 }
 0x34c   :  { %234 = shalt.err (!%p231_p4)
}
 0x34d   :  { %s235_s17 = scalar_lea.hbm %s337_s5, 32 }
 0x34e   :  { %p236_p5 = scmp.ne.s32.totalorder %s337_s5, %s235_s17  ;;  %p239_p6 = scmp.lt.u32.totalorder %s235_s17, %s337_s5 }
 0x350   :  { %p241_p7 = pnand %p239_p6, %p236_p5 }
 0x352   :  { %244 = shalt.err (!%p241_p7)
}
 0x353   :  { %164 = dma.vmem_to_hbm [thread:$0]  %s162_s2, 32, %s337_s5, [#allocation3]  }
 0x354   :  { %245 = dma.done.wait [#allocation3], 32  }
 0x355   :  { %246 = vsyncadd [#allocation3], 4294967264 }
 0x356   :  { %168 = vsyncpa [#allocation3], 1 }

// kernel: mvit_forward.6
= control target key start
LH: loop header
LB: loop body
LE: loop exit
PB: predicated region body
PF: predicated region fallthrough
CT: control target
= control target key end

     0   :  { %s2341_s25 = smov 0   ;;  %s2944_s0 = inlined_call_operand.vmem [shape: f32[2,33,64], index: 0, kind: input, shape index: {}]   ;;  %s2945_s1 = inlined_call_operand.vmem [shape: f32[1,64], index: 1, kind: input, shape index: {}]   ;;  %s2946_s2 = inlined_call_operand.vmem [shape: f32[1,64], index: 2, kind: input, shape index: {}]   ;;  %s2947_s3 = inlined_call_operand.vmem [shape: bf16[64,192], index: 3, kind: input, shape index: {}]   ;;  %s2948_s4 = inlined_call_operand.vmem [shape: f32[1,192], index: 4, kind: input, shape index: {}]   ;;  %s2949_s5 = inlined_call_operand.vmem [shape: bf16[64,64], index: 5, kind: input, shape index: {}]   ;;  %s2950_s6 = inlined_call_operand.vmem [shape: f32[1,64], index: 6, kind: input, shape index: {}]   ;;  %s2951_s7 = inlined_call_operand.vmem [shape: f32[1,64], index: 7, kind: input, shape index: {}]   ;;  %s2952_s8 = inlined_call_operand.vmem [shape: f32[1,64], index: 8, kind: input, shape index: {}]   ;;  %s2953_s9 = inlined_call_operand.vmem [shape: bf16[64,256], index: 9, kind: input, shape index: {}]   ;;  %s2954_s10 = inlined_call_operand.vmem [shape: f32[1,256], index: 10, kind: input, shape index: {}]   ;;  %s2955_s11 = inlined_call_operand.vmem [shape: bf16[256,64], index: 11, kind: input, shape index: {}]   ;;  %s2956_s12 = inlined_call_operand.vmem [shape: f32[1,64], index: 12, kind: input, shape index: {}]   ;;  %s2957_s13 = inlined_call_operand.vmem [shape: f32[2,9,64], index: 13, kind: output, shape index: {}]  }
   0x1 LB: > { %s1988_s26 = sadd.s32 4294967295, %s2263_s25   ;;  %p1992_p0 = scmp.ge.s32.totalorder %s2263_s25, 1  ;;  %s2263_s25 = sphi %s2341_s25, %s23_s25  }
   0x2   : > { %p387_p1 = scmp.lt.s32.totalorder %s2263_s25, 3 }
   0x4   : > { %p388_p2 = pnand %p1992_p0, %p387_p1 }
   0x5   : > { %p431_p3 = scmp.lt.s32.totalorder (!%p388_p2), %s1988_s26, 1  ;;  %vm2958_vm0 = vcmask (!%p388_p2), 523264   ;;  %vm462_vm1 = vcmask (!%p388_p2), 516096   ;;  %v2170_v35 = vld [vmem:[%s2947_s3 + $0x4] ss:$8 sps:$4 sm:$0xff] (!%p388_p2)   ;;  %v2265_v43 = vmov (!%p388_p2), 0  }
   0x6   : > { %391 = sbr.rel (%p388_p2) target bundleno = 3305 (0xce9), region = 72  ;;  %v2172_v36 = vld [vmem:[%s2947_s3] ss:$8 sps:$4 sm:$0xff] (!%p388_p2)   ;;  %611 = vmatprep.subr.bf16.mxu0 (!%p388_p2), %v2170_v35  ;;  %v2173_v37 = vld [vmem:[%s2947_s3 + $0x14] ss:$8 sps:$4 sm:$0xff] (!%p388_p2)   ;;  %643 = vmatprep.mubr.bf16.mxu0 (!%p388_p2), %v2265_v43  ;;  %vm677_vm2 = vcmask (!%p388_p2), 1043456  }
   0x7   : > { %612 = vmatpush1.bf16.msra.mxu0 (!%p388_p2), %v2172_v36  ;;  %v2175_v38 = vld [vmem:[%s2947_s3 + $0x10] ss:$8 sps:$4 sm:$0xff] (!%p388_p2)   ;;  %v2176_v39 = vld [vmem:[%s2947_s3 + $0x24] ss:$8 sps:$4 sm:$0xff] (!%p388_p2)   ;;  %v2178_v40 = vld [vmem:[%s2947_s3 + $0x20] ss:$8 sps:$4 sm:$0xff] (!%p388_p2)  }
   0x8   : > { %613 = vmatprep.subr.bf16.mxu0 (!%p388_p2), %v2173_v37  ;;  %v2179_v41 = vld [vmem:[%s2947_s3 + $0x34] ss:$8 sps:$4 sm:$0xff] (!%p388_p2)   ;;  %v2181_v42 = vld [vmem:[%s2947_s3 + $0x30] ss:$8 sps:$4 sm:$0xff] (!%p388_p2)   ;;  %v1996_v61 = vld [vmem:[%s2945_s1] ss:$0 sm:$0xff] (!%p388_p2) }
   0x9   : > { %vm683_vm3 = vcmask (!%p388_p2), 518145   ;;  %vm2959_vm4 = vcmask (!%p388_p2), 520194   ;;  %vm704_vm5 = vcmask (!%p388_p2), 522245   ;;  %vm712_vm6 = vcmask (!%p388_p2), 523270   ;;  %s2267_s22 = smov (!%p388_p2), 64   ;;  %s2269_s23 = smov (!%p388_p2), 32  }
   0xa   : > { %vm735_vm7 = vcmask (!%p388_p2), 1042945   ;;  %vm812_vm8 = vcmask (!%p388_p2), 1048070   ;;  %vm823_vm9 = vcmask (!%p388_p2), 1048071   ;;  %vm814_vm10 = vcmask (!%p388_p2), 1040896   ;;  %s2270_s24 = smov (!%p388_p2), 96  }
   0xb   : > { %614 = vmatpush1.bf16.msra.mxu0 (!%p388_p2), %v2175_v38  ;;  %vm722_vm11 = vcmask (!%p388_p2), 1040384   ;;  %vm724_vm12 = vcmask (!%p388_p2), 1041408   ;;  %vm759_vm13 = vcmask (!%p388_p2), 1044995   ;;  %vm726_vm14 = vcmask (!%p388_p2), 1042432  }
   0xc   : > { %615 = vmatprep.subr.bf16.mxu0 (!%p388_p2), %v2176_v39  ;;  %vm984_vm15 = vcmask (!%p388_p2), 523271  }
   0xd   : > { %s2969_s26 = smov (!%p431_p3, %s1988_s26), 1 }
   0xe   : > { %s2155_s27 = smul.u32 40, %s2969_s26  ;;  %s2050_s15 = sshll.u32 %s2969_s26, 4 }
   0xf   : > { %616 = vmatpush1.bf16.msra.mxu0 %v2178_v40  ;;  %s440_s19 = scalar_lea.vmem %s2957_s13, %s2050_s15 }
  0x10   : > { %s2355_s30 = scalar_lea.vmem %s2944_s0, %s2155_s27  ;;  %617 = vmatprep.subr.bf16.mxu0 %v2179_v41 }
  0x11   : > { %v442_v0 = vld [vmem:[%s2355_s30] sm:$0xff]  ;;  %v444_v1 = vld [vmem:[%s2355_s30 + $0x10] sm:$0xff]  ;;  %v443_v2 = vld [vmem:[%s2355_s30 + $0x8] sm:$0xff] }
  0x12   : > { %v450_v3 = vsel %vm2958_vm0, %v442_v0, 0.0  ;;  %v456_v4 = vsel %vm2958_vm0, %v444_v1, 0.0  ;;  %v445_v5 = vld [vmem:[%s2355_s30 + $0x18] sm:$0xff]  ;;  %v446_v6 = vld [vmem:[%s2355_s30 + $0x20] sm:$0x1]  ;;  %v453_v7 = vsel %vm2958_vm0, %v443_v2, 0.0 }
  0x13   : > { %451 = vadd.xlane.f32.xlu0 %v450_v3  ;;  %457 = vadd.xlane.f32.xlu1 %v456_v4  ;;  %v459_v8 = vsel %vm2958_vm0, %v445_v5, 0.0  ;;  %v463_v9 = vsel %vm462_vm1, %v446_v6, 0.0 }
  0x14   : > { %618 = vmatpush1.bf16.msra.mxu0 %v2181_v42 }
  0x17   : > { %454 = vadd.xlane.f32.xlu0 %v453_v7  ;;  %460 = vadd.xlane.f32.xlu1 %v459_v8 }
  0x1b   : > { %464 = vadd.xlane.f32.xlu0 %v463_v9 }
  0xa0   : > { %v452_v10 = vpop.xlane.xlu0 %451  ;;  %v458_v11 = vpop.xlane.xlu1 %457 }
  0xa1   : > { %v467_v12 = vmul.f32 0.015625, %v452_v10  ;;  %v469_v13 = vmul.f32 0.015625, %v458_v11 }
  0xa3   : > { %v2367_v14 = vsub.f32 %v442_v0, %v467_v12  ;;  %v2369_v15 = vsub.f32 %v444_v1, %v469_v13 }
  0xa4   : > { %v455_v16 = vpop.xlane.xlu0 %454  ;;  %v461_v17 = vpop.xlane.xlu1 %460 }
  0xa5   : > { %v468_v18 = vmul.f32 0.015625, %v455_v16  ;;  %v470_v19 = vmul.f32 0.015625, %v461_v17  ;;  %v477_v20 = vmul.f32 %v2367_v14, %v2367_v14  ;;  %v479_v21 = vmul.f32 %v2369_v15, %v2369_v15 }
  0xa7   : > { %v473_v22 = vsub.f32 %v443_v2, %v468_v18  ;;  %v2375_v23 = vsub.f32 %v445_v5, %v470_v19  ;;  %v482_v24 = vsel %vm2958_vm0, %v477_v20, 0.0  ;;  %v488_v27 = vsel %vm2958_vm0, %v479_v21, 0.0  ;;  %v1997_v2 = vld [vmem:[%s2946_s2] ss:$0 sm:$0xff] }
  0xa8   : > { %483 = vadd.xlane.f32.xlu1 %v482_v24  ;;  %v465_v25 = vpop.xlane.xlu0 %464  ;;  %v2266_v20 = vmov 0.0   ;;  %v552_v21 = vlaneseq }
  0xa9   : > { %v471_v26 = vmul.f32 0.015625, %v465_v25  ;;  %v478_v28 = vmul.f32 %v473_v22, %v473_v22  ;;  %v480_v29 = vmul.f32 %v2375_v23, %v2375_v23  ;;  %2105 = vmatprep.subr.bf16.mxu1 %v2266_v20  ;;  %2095 = vmatprep.subr.bf16.mxu0 %v2266_v20 }
  0xab   : > { %v2381_v30 = vsub.f32 %v446_v6, %v471_v26  ;;  %v485_v31 = vsel %vm2958_vm0, %v478_v28, 0.0  ;;  %v491_v32 = vsel %vm2958_vm0, %v480_v29, 0.0  ;;  %v550_v26 = vld [vmem:[%s2948_s4] sm:$0x3] }
  0xac   : > { %489 = vadd.xlane.f32.xlu1 %v488_v27  ;;  %486 = vadd.xlane.f32.xlu0 %v485_v31 }
  0xad   : > { %v481_v33 = vmul.f32 %v2381_v30, %v2381_v30 }
  0xaf   : > { %v494_v34 = vsel %vm462_vm1, %v481_v33, 0.0 }
  0xb0   : > { %492 = vadd.xlane.f32.xlu0 %v491_v32  ;;  %495 = vadd.xlane.f32.xlu1 %v494_v34 }
 0x135   : > { %v484_v44 = vpop.xlane.xlu1 %483 }
 0x136   : > { %v497_v45 = vmul.f32 0.015625, %v484_v44 }
 0x138   : > { %v502_v46 = vadd.f32 1e-06, %v497_v45 }
 0x139   : > { %v490_v47 = vpop.xlane.xlu1 %489  ;;  %v487_v48 = vpop.xlane.xlu0 %486 }
 0x13a   : > { %2214 = vrsqrt.f32 %v502_v46  ;;  %v499_v49 = vmul.f32 0.015625, %v490_v47  ;;  %v498_v50 = vmul.f32 0.015625, %v487_v48 }
 0x13c   : > { %v503_v51 = vadd.f32 1e-06, %v498_v50  ;;  %v504_v52 = vadd.f32 1e-06, %v499_v49 }
 0x13d   : > { %v496_v53 = vpop.xlane.xlu1 %495  ;;  %v493_v54 = vpop.xlane.xlu0 %492 }
 0x13e   : > { %v500_v55 = vmul.f32 0.015625, %v493_v54  ;;  %2216 = vrsqrt.f32 %v503_v51  ;;  %v501_v56 = vmul.f32 0.015625, %v496_v53 }
 0x13f   : > { %2218 = vrsqrt.f32 %v504_v52 }
 0x140   : > { %v505_v57 = vadd.f32 1e-06, %v500_v55  ;;  %v506_v58 = vadd.f32 1e-06, %v501_v56 }
 0x142   : > { %2220 = vrsqrt.f32 %v505_v57 }
 0x143   : > { %2222 = vrsqrt.f32 %v506_v58 }
 0x144   : > { %v2215_v59 = vpop.eup %2214 }
 0x145   : > { %v512_v60 = vmul.f32 %v2215_v59, %v2367_v14 }
 0x147   : > { %v523_v0 = vmul.f32 %v1996_v61, %v512_v60 }
 0x148   : > { %v2217_v62 = vpop.eup %2216 }
 0x149   : > { %v513_v63 = vmul.f32 %v2217_v62, %v473_v22  ;;  %v2219_v1 = vpop.eup %2218  ;;  %v534_v7 = vadd.f32 %v1997_v2, %v523_v0  ;;  %v2430_v22 = vshrl.u32 %v552_v21, 7 }
 0x14a   : > { %v514_v5 = vmul.f32 %v2219_v1, %v2369_v15 }
 0x14b   : > { %v524_v3 = vmul.f32 %v1996_v61, %v513_v63  ;;  %v554_v24 = vsub.s32 0, %v2430_v22  ;;  %v558_v27 = vsub.s32 1, %v2430_v22 }
 0x14c   : > { %v2221_v4 = vpop.eup %2220  ;;  %v525_v12 = vmul.f32 %v1996_v61, %v514_v5 }
 0x14d   : > { %v515_v6 = vmul.f32 %v2221_v4, %v2375_v23  ;;  %v535_v8 = vadd.f32 %v1997_v2, %v524_v3  ;;  %v2223_v11 = vpop.eup %2222  ;;  %v559_v31 = vrot.slane %v550_v26, %v558_v27 }
 0x14e   : > { %v516_v14 = vmul.f32 %v2223_v11, %v2381_v30  ;;  %v536_v16 = vadd.f32 %v1997_v2, %v525_v12  ;;  %v555_v30 = vrot.slane %v550_v26, %v554_v24 }
 0x14f   : > { %v539_v9 = vpack.c.bf16 %v535_v8, %v534_v7  ;;  %v526_v10 = vmul.f32 %v1996_v61, %v515_v6 }
 0x150   : > { %v527_v18 = vmul.f32 %v1996_v61, %v516_v14 }
 0x151   : > { %2006 = vmatmul.mubr.msk.bf16.vlgmr.msra.gmra.mrb[0].mxu0 %vm2958_vm0, %v539_v9  ;;  %v537_v13 = vadd.f32 %v1997_v2, %v526_v10 }
 0x152   : > { %653 = vmatprep.mubr.bf16.mxu0 %v2265_v43  ;;  %v538_v15 = vadd.f32 %v1997_v2, %v527_v18 }
 0x153   : > { %v540_v17 = vpack.c.bf16 %v537_v13, %v536_v16 }
 0x154   : > { %v541_v19 = vpack.c.bf16 %v538_v15, %v538_v15 }
 0x159   : > { %2007 = vmatmul.mubr.msk.bf16.gmra.mrb[4].mxu0 %vm2958_vm0, %v540_v17 }
 0x15a   : > { %663 = vmatprep.mubr.bf16.mxu0 %v2265_v43 }
 0x161   : > { %2008 = vmatmul.mubr.msk.bf16.gmra.mrb[8].mxu0 %vm2958_vm0, %v541_v19  ;;  %vm918_vm0 = vcmask 520195  }
 0x224   : > { %v645_v23 = vpop.f32.mrb[0].mxu0 }
 0x225   : > { %v647_v25 = vpop.f32.mrb[1].mxu0  ;;  %v2441_v33 = vadd.f32 %v645_v23, %v555_v30 }
 0x226   : > { %v649_v28 = vpop.f32.mrb[2].mxu0  ;;  %v2443_v36 = vadd.f32 %v647_v25, %v559_v31 }
 0x227   : > { %v651_v29 = vpop.f32.mrb[3].mxu0  ;;  %v650_v39 = vadd.f32 %v649_v28, %v555_v30 }
 0x228   : > { %v652_v44 = vadd.f32 %v651_v29, %v559_v31 }
 0x22c   : > { %v655_v32 = vpop.f32.mrb[4].mxu0 }
 0x22d   : > { %v656_v34 = vadd.f32 %v655_v32, %v555_v30  ;;  %v657_v35 = vpop.f32.mrb[5].mxu0 }
 0x22e   : > { %v658_v37 = vadd.f32 %v657_v35, %v559_v31  ;;  %v659_v38 = vpop.f32.mrb[6].mxu0 }
 0x22f   : > { %v672_v40 = vmax.f32 %v2441_v33, %v656_v34  ;;  %v660_v41 = vadd.f32 %v659_v38, %v555_v30  ;;  %v661_v42 = vpop.f32.mrb[7].mxu0 }
 0x230   : > { %v2447_v45 = vmax.f32 %v2443_v36, %v658_v37  ;;  %v662_v46 = vadd.f32 %v661_v42, %v559_v31 }
 0x231   : > { %v2449_v47 = vmax.f32 %v650_v39, %v660_v41  ;;  %v678_v49 = vrot.slane %v672_v40, 4 }
 0x232   : > { %v2451_v48 = vmax.f32 %v652_v44, %v662_v46  ;;  %v891_v51 = vrot.slane %v2447_v45, 4 }
 0x233   : > { %v679_v50 = vrot.slane %v2449_v47, 4 }
 0x234   : > { %v665_v52 = vpop.f32.mrb[8].mxu0  ;;  %v2456_v53 = vrot.slane %v2451_v48, 4 }
 0x235   : > { %v666_v54 = vadd.f32 %v665_v52, %v555_v30  ;;  %v680_v55 = vsel %vm677_vm2, %v678_v49, %v679_v50  ;;  %v700_v56 = vmax.f32 %v672_v40, %v679_v50  ;;  %v667_v57 = vpop.f32.mrb[9].mxu0  ;;  %v701_v0 = vmax.f32 %v2449_v47, %v679_v50 }
 0x236   : > { %v2459_v58 = vmax.f32 %v672_v40, %v680_v55  ;;  %v668_v59 = vadd.f32 %v667_v57, %v559_v31  ;;  %v893_v60 = vsel %vm677_vm2, %v891_v51, %v2456_v53  ;;  %v956_v61 = vmax.f32 %v2447_v45, %v2456_v53  ;;  %v669_v62 = vpop.f32.mrb[10].mxu0 }
 0x237   : > { %v674_v63 = vmax.f32 %v656_v34, %v666_v54  ;;  %v2467_v1 = vmax.f32 %v700_v56, %v2449_v47  ;;  %v2470_v2 = vmax.f32 %v2447_v45, %v893_v60  ;;  %v670_v3 = vpop.f32.mrb[11].mxu0  ;;  %v957_v26 = vmax.f32 %v2451_v48, %v2456_v53 }
 0x238   : > { %v684_v4 = vsel %vm683_vm3, %v2459_v58, -inf  ;;  %v692_v5 = vsel %vm2959_vm4, %v2459_v58, -inf  ;;  %v736_v6 = vsel %vm735_vm7, %v2459_v58, -inf  ;;  %v2478_v7 = vmax.f32 %v658_v37, %v668_v59 }
 0x239   : > { %v685_v8 = vrot.slane %v684_v4, 4  ;;  %v693_v9 = vrot.slane %v692_v5, 4  ;;  %v703_v10 = vmax.f32 %v701_v0, %v674_v63  ;;  %v705_v11 = vsel %vm704_vm5, %v2467_v1, -inf }
 0x23a   : > { %v706_v12 = vrot.slane %v705_v11, 4  ;;  %v713_v13 = vsel %vm712_vm6, %v2467_v1, -inf  ;;  %v737_v14 = vrot.slane %v736_v6, 4  ;;  %v813_v16 = vsel %vm812_vm8, %v2467_v1, -inf }
 0x23b   : > { %v686_v17 = vmax.f32 %v684_v4, %v685_v8  ;;  %v694_v18 = vmax.f32 %v692_v5, %v693_v9  ;;  %v714_v15 = vsel %vm462_vm1, %v703_v10, -inf  ;;  %v815_v19 = vsel %vm814_vm10, %v703_v10, -inf }
 0x23c   : > { %v707_v21 = vmax.f32 %v705_v11, %v706_v12  ;;  %v715_v23 = vmax.f32 %v713_v13, %v714_v15  ;;  %v816_v25 = vmax.f32 %v813_v16, %v815_v19  ;;  %v2490_v30 = vmax.f32 %v736_v6, %v737_v14 }
 0x23d   : > { %v687_v28 = vrot.slane %v686_v17, 2  ;;  %v695_v29 = vrot.slane %v694_v18, 2  ;;  %v833_v31 = vrot.slane %v674_v63, 4  ;;  %v824_v37 = vsel %vm823_vm9, %v2467_v1, -inf }
 0x23e   : > { %v708_v32 = vrot.slane %v707_v21, 2  ;;  %v716_v34 = vrot.slane %v715_v23, 4  ;;  %v817_v35 = vrot.slane %v816_v25, 4  ;;  %v825_v40 = vmax.f32 %v824_v37, %v815_v19 }
 0x23f   : > { %v688_v38 = vmax.f32 %v686_v17, %v687_v28  ;;  %v696_v39 = vmax.f32 %v694_v18, %v695_v29  ;;  %v834_v41 = vsel %vm677_vm2, %v679_v50, %v833_v31  ;;  %v2499_v54 = vmax.f32 %v956_v61, %v2451_v48 }
 0x240   : > { %v709_v42 = vmax.f32 %v707_v21, %v708_v32  ;;  %v717_v44 = vmax.f32 %v715_v23, %v716_v34  ;;  %v818_v45 = vmax.f32 %v816_v25, %v817_v35  ;;  %v2496_v46 = vmax.f32 %v2449_v47, %v834_v41 }
 0x241   : > { %v689_v49 = vrot.slane %v688_v38, 1  ;;  %v697_v51 = vrot.slane %v696_v39, 1  ;;  %v826_v52 = vrot.slane %v825_v40, 4  ;;  %vm743_vm8 = vcmask 1043969  }
 0x242   : > { %v710_v55 = vrot.slane %v709_v42, 1  ;;  %v718_v56 = vrot.slane %v717_v44, 2  ;;  %vm729_vm9 = vcmask 1044480   ;;  %v739_v57 = vrot.slane %v2490_v30, 2 }
 0x243   : > { %v819_v59 = vrot.slane %v818_v45, 2  ;;  %v690_v50 = vmax.f32 %v688_v38, %v689_v49  ;;  %v2502_v60 = vmax.f32 %v696_v39, %v697_v51  ;;  %v827_v62 = vmax.f32 %v825_v40, %v826_v52 }
 0x244   : > { %v2506_v63 = vsel %vm735_vm7, %v2496_v46, -inf  ;;  %vm751_vm10 = vcmask 1044994   ;;  %v2508_v0 = vmax.f32 %v709_v42, %v710_v55  ;;  %v719_v61 = vmax.f32 %v717_v44, %v718_v56 }
 0x245   : > { %v820_v3 = vmax.f32 %v818_v45, %v819_v59  ;;  %v858_v4 = vsel %vm759_vm13, %v2496_v46, -inf  ;;  %v723_v5 = vsel %vm722_vm11, %v2441_v33, %v690_v50  ;;  %v828_v6 = vrot.slane %v827_v62, 2 }
 0x246   : > { %v859_v8 = vrot.slane %v858_v4, 4  ;;  %v959_v9 = vmax.f32 %v957_v26, %v2478_v7  ;;  %v720_v10 = vrot.slane %v719_v61, 1  ;;  %v725_v11 = vsel %vm724_vm12, %v723_v5, %v2502_v60 }
 0x247   : > { %v821_v12 = vrot.slane %v820_v3, 1  ;;  %v2519_v13 = vsel %vm704_vm5, %v2499_v54, -inf  ;;  %v727_v14 = vsel %vm726_vm14, %v725_v11, %v2508_v0  ;;  %v829_v16 = vmax.f32 %v827_v62, %v828_v6 }
 0x248   : > { %v838_v17 = vrot.slane %v2506_v63, 4  ;;  %v860_v18 = vmax.f32 %v858_v4, %v859_v8  ;;  %vm796_vm4 = vcmask 1047045   ;;  %v2524_v15 = vmax.f32 %v719_v61, %v720_v10 }
 0x249   : > { %v961_v19 = vrot.slane %v2519_v13, 4  ;;  %v975_v21 = vsel %vm712_vm6, %v2499_v54, -inf  ;;  %v976_v23 = vsel %vm462_vm1, %v959_v9, -inf  ;;  %v830_v25 = vrot.slane %v829_v16, 1 }
 0x24a   : > { %v861_v26 = vrot.slane %v860_v18, 2  ;;  %v977_v28 = vmax.f32 %v975_v21, %v976_v23  ;;  %v985_v29 = vsel %vm984_vm15, %v2499_v54, -inf  ;;  %v728_v31 = vsel %vm677_vm2, %v727_v14, %v2524_v15 }
 0x24b   : > { %v2534_v32 = vmax.f32 %v820_v3, %v821_v12  ;;  %v986_v34 = vmax.f32 %v985_v29, %v976_v23  ;;  %v994_v35 = vrot.slane %v2478_v7, 4  ;;  %v2538_v37 = vsel %vm729_vm9, %v728_v31, %v690_v50 }
 0x24c   : > { %v2540_v38 = vmax.f32 %v829_v16, %v830_v25  ;;  %v2542_v39 = vmax.f32 %v860_v18, %v861_v26  ;;  %v978_v40 = vrot.slane %v977_v28, 4  ;;  %v740_v44 = vmax.f32 %v2490_v30, %v739_v57 }
 0x24d   : > { %v987_v41 = vrot.slane %v986_v34, 4  ;;  %v995_v42 = vsel %vm677_vm2, %v2456_v53, %v994_v35  ;;  %v744_v45 = vsel %vm743_vm8, %v2459_v58, -inf  ;;  %v752_v59 = vsel %vm751_vm10, %v2459_v58, -inf }
 0x24e   : > { %v863_v49 = vrot.slane %v2542_v39, 1  ;;  %v979_v7 = vmax.f32 %v977_v28, %v978_v40  ;;  %v2551_v51 = vmax.f32 %v2451_v48, %v995_v42  ;;  %v745_v52 = vrot.slane %v744_v45, 4 }
 0x24f   : > { %v988_v55 = vmax.f32 %v986_v34, %v987_v41  ;;  %v741_v56 = vrot.slane %v740_v44, 1  ;;  %v760_v53 = vsel %vm759_vm13, %v2459_v58, -inf  ;;  %v753_v62 = vrot.slane %v752_v59, 4 }
 0x250   : > { %v980_v50 = vrot.slane %v979_v7, 2  ;;  %v1019_v30 = vsel %vm918_vm0, %v2551_v51, -inf  ;;  %v746_v57 = vmax.f32 %v744_v45, %v745_v52  ;;  %v761_v5 = vrot.slane %v760_v53, 4 }
 0x251   : > { %v989_v61 = vrot.slane %v988_v55, 2  ;;  %v1020_v3 = vrot.slane %v1019_v30, 4  ;;  %v2559_v4 = vmax.f32 %v740_v44, %v741_v56  ;;  %vm804_vm15 = vcmask 1048069  }
 0x252   : > { %v981_v6 = vmax.f32 %v979_v7, %v980_v50  ;;  %v747_v8 = vrot.slane %v746_v57, 2  ;;  %v754_v9 = vmax.f32 %v752_v59, %v753_v62  ;;  %v767_v10 = vmax.f32 %v2459_v58, %v2449_v47 }
 0x253   : > { %v990_v11 = vmax.f32 %v988_v55, %v989_v61  ;;  %v1021_v12 = vmax.f32 %v1019_v30, %v1020_v3  ;;  %v762_v14 = vmax.f32 %v760_v53, %v761_v5  ;;  %v797_v16 = vsel %vm796_vm4, %v2467_v1, -inf }
 0x254   : > { %v982_v18 = vrot.slane %v981_v6, 1  ;;  %v748_v21 = vmax.f32 %v746_v57, %v747_v8  ;;  %v755_v23 = vrot.slane %v754_v9, 2  ;;  %v768_v25 = vsel %vm735_vm7, %v767_v10, -inf }
 0x255   : > { %v991_v26 = vrot.slane %v990_v11, 1  ;;  %v1022_v28 = vrot.slane %v1021_v12, 2  ;;  %v763_v29 = vrot.slane %v762_v14, 2  ;;  %v769_v31 = vrot.slane %v768_v25, 4 }
 0x256   : > { %v2566_v34 = vmax.f32 %v981_v6, %v982_v18  ;;  %v749_v35 = vrot.slane %v748_v21, 1  ;;  %v756_v40 = vmax.f32 %v754_v9, %v755_v23  ;;  %v775_v47 = vsel %vm743_vm8, %v767_v10, -inf }
 0x257   : > { %v2569_v58 = vmax.f32 %v990_v11, %v991_v26  ;;  %v2571_v41 = vmax.f32 %v1021_v12, %v1022_v28  ;;  %v764_v42 = vmax.f32 %v762_v14, %v763_v29  ;;  %v770_v44 = vmax.f32 %v768_v25, %v769_v31 }
 0x258   : > { %v2573_v45 = vmax.f32 %v748_v21, %v749_v35  ;;  %v757_v7 = vrot.slane %v756_v40, 1  ;;  %v776_v52 = vrot.slane %v775_v47, 4  ;;  %v782_v55 = vsel %vm751_vm10, %v767_v10, -inf }
 0x259   : > { %v1024_v56 = vrot.slane %v2571_v41, 1  ;;  %v765_v59 = vrot.slane %v764_v42, 1  ;;  %v771_v53 = vrot.slane %v770_v44, 2  ;;  %v783_v50 = vrot.slane %v782_v55, 4 }
 0x25a   : > { %v2577_v30 = vmax.f32 %v756_v40, %v757_v7  ;;  %v777_v57 = vmax.f32 %v775_v47, %v776_v52  ;;  %v789_v62 = vsel %vm759_vm13, %v767_v10, -inf  ;;  %v798_v61 = vrot.slane %v797_v16, 4 }
 0x25b   : > { %v2580_v3 = vmax.f32 %v764_v42, %v765_v59  ;;  %v772_v5 = vmax.f32 %v770_v44, %v771_v53  ;;  %v784_v6 = vmax.f32 %v782_v55, %v783_v50  ;;  %v790_v8 = vrot.slane %v789_v62, 4 }
 0x25c   : > { %vm903_vm4 = vcmask 519169   ;;  %v778_v9 = vrot.slane %v777_v57, 2  ;;  %v799_v11 = vmax.f32 %v797_v16, %v798_v61  ;;  %v805_v12 = vsel %vm804_vm15, %v2467_v1, -inf }
 0x25d   : > { %v839_v14 = vmax.f32 %v2506_v63, %v838_v17  ;;  %v773_v18 = vrot.slane %v772_v5, 1  ;;  %v785_v21 = vrot.slane %v784_v6, 2  ;;  %v791_v23 = vmax.f32 %v789_v62, %v790_v8 }
 0x25e   : > { %v806_v10 = vrot.slane %v805_v12, 4  ;;  %vm731_vm7 = vcmask 1045504   ;;  %v779_v25 = vmax.f32 %v777_v57, %v778_v9  ;;  %v800_v26 = vrot.slane %v799_v11, 2 }
 0x25f   : > { %v840_v28 = vrot.slane %v839_v14, 2  ;;  %v844_v29 = vsel %vm743_vm8, %v2496_v46, -inf  ;;  %vm733_vm13 = vcmask 1046528   ;;  %v2589_v16 = vmax.f32 %v772_v5, %v773_v18 }
 0x260   : > { %v786_v31 = vmax.f32 %v784_v6, %v785_v21  ;;  %v792_v1 = vrot.slane %v791_v23, 2  ;;  %v807_v35 = vmax.f32 %v805_v12, %v806_v10  ;;  %v780_v40 = vrot.slane %v779_v25, 1 }
 0x261   : > { %v801_v47 = vmax.f32 %v799_v11, %v800_v26  ;;  %v841_v63 = vmax.f32 %v839_v14, %v840_v28  ;;  %v845_v17 = vrot.slane %v844_v29, 4  ;;  %v851_v52 = vsel %vm751_vm10, %v2496_v46, -inf }
 0x262   : > { %v787_v42 = vrot.slane %v786_v31, 1  ;;  %v793_v44 = vmax.f32 %v791_v23, %v792_v1  ;;  %v808_v7 = vrot.slane %v807_v35, 2  ;;  %v2593_v55 = vmax.f32 %v779_v25, %v780_v40 }
 0x263   : > { %v802_v59 = vrot.slane %v801_v47, 1  ;;  %v842_v53 = vrot.slane %v841_v63, 1  ;;  %v846_v50 = vmax.f32 %v844_v29, %v845_v17  ;;  %v852_v5 = vrot.slane %v851_v52, 4 }
 0x264   : > { %v2595_v57 = vmax.f32 %v786_v31, %v787_v42  ;;  %v794_v62 = vrot.slane %v793_v44, 1  ;;  %v809_v61 = vmax.f32 %v807_v35, %v808_v7  ;;  %v865_v11 = vsel %vm722_vm11, %v2441_v33, %v2559_v4 }
 0x265   : > { %v803_v6 = vmax.f32 %v801_v47, %v802_v59  ;;  %v843_v8 = vmax.f32 %v841_v63, %v842_v53  ;;  %v847_v9 = vrot.slane %v846_v50, 2  ;;  %v853_v46 = vmax.f32 %v851_v52, %v852_v5 }
 0x266   : > { %v795_v12 = vmax.f32 %v793_v44, %v794_v62  ;;  %v810_v14 = vrot.slane %v809_v61, 1  ;;  %v866_v18 = vsel %vm724_vm12, %v865_v11, %v2573_v45  ;;  %v896_v10 = vsel %vm683_vm3, %v2470_v2, -inf }
 0x267   : > { %v848_v21 = vmax.f32 %v846_v50, %v847_v9  ;;  %v867_v23 = vsel %vm726_vm14, %v866_v18, %v2577_v30  ;;  %v904_v25 = vsel %vm903_vm4, %v2470_v2, -inf  ;;  %v854_v28 = vrot.slane %v853_v46, 2 }
 0x268   : > { %v811_v26 = vmax.f32 %v809_v61, %v810_v14  ;;  %v868_v33 = vsel %vm677_vm2, %v867_v23, %v2580_v3  ;;  %v872_v29 = vsel %vm722_vm11, %v795_v12, %v803_v6  ;;  %v897_v35 = vrot.slane %v896_v10, 4 }
 0x269   : > { %v849_v31 = vrot.slane %v848_v21, 1  ;;  %v869_v1 = vsel %vm729_vm9, %v868_v33, %v2589_v16  ;;  %v905_v40 = vrot.slane %v904_v25, 4  ;;  %v855_v47 = vmax.f32 %v853_v46, %v854_v28 }
 0x26a   : > { %v870_v63 = vsel %vm731_vm7, %v869_v1, %v2593_v55  ;;  %v873_v17 = vsel %vm724_vm12, %v872_v29, %v811_v26  ;;  %vm2960_vm8 = vcmask 520194   ;;  %v898_v59 = vmax.f32 %v896_v10, %v897_v35 }
 0x26b   : > { %v911_v42 = vsel %vm2960_vm8, %v2470_v2, -inf  ;;  %v850_v44 = vmax.f32 %v848_v21, %v849_v31  ;;  %v871_v7 = vsel %vm733_vm13, %v870_v63, %v2595_v57  ;;  %v874_v52 = vsel %vm726_vm14, %v873_v17, %v2534_v32  ;;  %vm2961_vm15 = vmmov %vm2960_vm8 }
 0x26c   : > { %vm967_vm10 = vcmask 523269   ;;  %v856_v53 = vrot.slane %v855_v47, 1  ;;  %v875_v50 = vsel %vm677_vm2, %v874_v52, %v2540_v38  ;;  %v906_v62 = vmax.f32 %v904_v25, %v905_v40 }
 0x26d   : > { %v912_v61 = vrot.slane %v911_v42, 4  ;;  %v876_v5 = vsel %vm729_vm9, %v875_v50, %v843_v8  ;;  %v899_v6 = vrot.slane %v898_v59, 2  ;;  %v919_v9 = vsel %vm918_vm0, %v2470_v2, -inf }
 0x26e   : > { %v926_v11 = vmax.f32 %v2470_v2, %v2451_v48  ;;  %v857_v12 = vmax.f32 %v855_v47, %v856_v53  ;;  %v877_v32 = vsel %vm731_vm7, %v876_v5, %v850_v44  ;;  %v907_v14 = vrot.slane %v906_v62, 2 }
 0x26f   : > { %v913_v46 = vmax.f32 %v911_v42, %v912_v61  ;;  %v900_v18 = vmax.f32 %v898_v59, %v899_v6  ;;  %v920_v21 = vrot.slane %v919_v9, 4  ;;  %v962_v6 = vmax.f32 %v2519_v13, %v961_v19 }
 0x270   : > { %v927_v38 = vsel %vm683_vm3, %v926_v11, -inf  ;;  %v934_v23 = vsel %vm903_vm4, %v926_v11, -inf  ;;  %v2633_v8 = vsel %vm733_vm13, %v877_v32, %v857_v12  ;;  %v908_v10 = vmax.f32 %v906_v62, %v907_v14 }
 0x271   : > { %v914_v25 = vrot.slane %v913_v46, 2  ;;  %v928_v26 = vrot.slane %v927_v38, 4  ;;  %v2636_v28 = vpack.c.bf16 %v2633_v8, %v871_v7  ;;  %v901_v48 = vrot.slane %v900_v18, 1 }
 0x272   : > { %v921_v2 = vmax.f32 %v919_v9, %v920_v21  ;;  %v935_v33 = vrot.slane %v934_v23, 4  ;;  %v909_v29 = vrot.slane %v908_v10, 1  ;;  %v941_v35 = vsel %vm2961_vm15, %v926_v11, -inf }
 0x273   : > { %v915_v31 = vmax.f32 %v913_v46, %v914_v25  ;;  %v929_v1 = vmax.f32 %v927_v38, %v928_v26  ;;  %1164 = vrot.lane.b32.xlu0 %v2636_v28, %s2267_s22  ;;  %v902_v40 = vmax.f32 %v900_v18, %v901_v48  ;;  %v942_v17 = vrot.slane %v941_v35, 4 }
 0x274   : > { %v922_v47 = vrot.slane %v921_v2, 2  ;;  %v936_v63 = vmax.f32 %v934_v23, %v935_v33  ;;  %v910_v42 = vmax.f32 %v908_v10, %v909_v29  ;;  %v948_v52 = vsel %vm918_vm0, %v926_v11, -inf  ;;  %vm2962_vm0 = vmmov %vm2960_vm8 }
 0x275   : > { %v916_v44 = vrot.slane %v915_v31, 1  ;;  %v930_v7 = vrot.slane %v929_v1, 2  ;;  %v943_v50 = vmax.f32 %v941_v35, %v942_v17  ;;  %v949_v62 = vrot.slane %v948_v52, 4 }
 0x276   : > { %v923_v59 = vmax.f32 %v921_v2, %v922_v47  ;;  %v937_v53 = vrot.slane %v936_v63, 2  ;;  %v968_v9 = vsel %vm967_vm10, %v2499_v54, -inf  ;;  %v963_v21 = vrot.slane %v962_v6, 2 }
 0x277   : > { %v917_v61 = vmax.f32 %v915_v31, %v916_v44  ;;  %v931_v5 = vmax.f32 %v929_v1, %v930_v7  ;;  %v944_v14 = vrot.slane %v943_v50, 2  ;;  %v950_v46 = vmax.f32 %v948_v52, %v949_v62 }
 0x278   : > { %v924_v12 = vrot.slane %v923_v59, 1  ;;  %v938_v32 = vmax.f32 %v936_v63, %v937_v53  ;;  %v969_v11 = vrot.slane %v968_v9, 4  ;;  %v998_v38 = vsel %vm683_vm3, %v2551_v51, -inf }
 0x279   : > { %v932_v18 = vrot.slane %v931_v5, 1  ;;  %v945_v25 = vmax.f32 %v943_v50, %v944_v14  ;;  %v951_v26 = vrot.slane %v950_v46, 2  ;;  %v964_v2 = vmax.f32 %v962_v6, %v963_v21 }
 0x27a   : > { %v925_v23 = vmax.f32 %v923_v59, %v924_v12  ;;  %v939_v10 = vrot.slane %v938_v32, 1  ;;  %v970_v13 = vmax.f32 %v968_v9, %v969_v11  ;;  %v999_v19 = vrot.slane %v998_v38, 4 }
 0x27b   : > { %v933_v48 = vmax.f32 %v931_v5, %v932_v18  ;;  %v946_v54 = vrot.slane %v945_v25, 1  ;;  %v952_v29 = vmax.f32 %v950_v46, %v951_v26  ;;  %v1005_v31 = vsel %vm903_vm4, %v2551_v51, -inf }
 0x27c   : > { %v940_v33 = vmax.f32 %v938_v32, %v939_v10  ;;  %v965_v1 = vrot.slane %v964_v2, 1  ;;  %v971_v35 = vrot.slane %v970_v13, 2  ;;  %v1000_v47 = vmax.f32 %v998_v38, %v999_v19 }
 0x27d   : > { %v1006_v63 = vrot.slane %v1005_v31, 4  ;;  %v947_v17 = vmax.f32 %v945_v25, %v946_v54  ;;  %v953_v44 = vrot.slane %v952_v29, 1  ;;  %v1012_v7 = vsel %vm2962_vm0, %v2551_v51, -inf }
 0x27e   : > { %v2656_v52 = vmax.f32 %v2571_v41, %v1024_v56  ;;  %v966_v59 = vmax.f32 %v964_v2, %v965_v1  ;;  %v972_v53 = vmax.f32 %v970_v13, %v971_v35  ;;  %v1001_v50 = vrot.slane %v1000_v47, 2 }
 0x27f   : > { %v1007_v62 = vmax.f32 %v1005_v31, %v1006_v63  ;;  %v954_v5 = vmax.f32 %v952_v29, %v953_v44  ;;  %v1013_v6 = vrot.slane %v1012_v7, 4  ;;  %v1026_v9 = vsel %vm722_vm11, %v2443_v36, %v902_v40 }
 0x280   : > { %v1040_v12 = vsel %vm722_vm11, %v2656_v52, %v902_v40  ;;  %v973_v32 = vrot.slane %v972_v53, 1  ;;  %v1002_v14 = vmax.f32 %v1000_v47, %v1001_v50  ;;  %v1027_v46 = vsel %vm724_vm12, %v1026_v9, %v910_v42 }
 0x281   : > { %v1008_v51 = vrot.slane %v1007_v62, 2  ;;  %v1014_v18 = vmax.f32 %v1012_v7, %v1013_v6  ;;  %v1028_v41 = vsel %vm726_vm14, %v1027_v46, %v917_v61  ;;  %v1033_v56 = vsel %vm722_vm11, %v954_v5, %v966_v59 }
 0x282   : > { %v1041_v21 = vsel %vm724_vm12, %v1040_v12, %v910_v42  ;;  %v974_v11 = vmax.f32 %v972_v53, %v973_v32  ;;  %v1003_v38 = vrot.slane %v1002_v14, 1  ;;  %v1029_v36 = vsel %vm677_vm2, %v1028_v41, %v925_v23 }
 0x283   : > { %v1009_v10 = vmax.f32 %v1007_v62, %v1008_v51  ;;  %v1015_v25 = vrot.slane %v1014_v18, 2  ;;  %v1030_v40 = vsel %vm729_vm9, %v1029_v36, %v933_v48  ;;  %v1042_v26 = vsel %vm726_vm14, %v1041_v21, %v917_v61 }
 0x284   : > { %v864_v2 = vmax.f32 %v2542_v39, %v863_v49  ;;  %v1004_v13 = vmax.f32 %v1002_v14, %v1003_v38  ;;  %v1031_v54 = vsel %vm731_vm7, %v1030_v40, %v940_v33  ;;  %v1034_v42 = vsel %vm724_vm12, %v1033_v56, %v974_v11 }
 0x285   : > { %v1010_v19 = vrot.slane %v1009_v10, 1  ;;  %v1016_v29 = vmax.f32 %v1014_v18, %v1015_v25  ;;  %v1032_v31 = vsel %vm733_vm13, %v1031_v54, %v947_v17  ;;  %v1035_v1 = vsel %vm726_vm14, %v1034_v42, %v2566_v34 }
 0x286   : > { %v1043_v35 = vsel %vm677_vm2, %v1042_v26, %v925_v23  ;;  %v1036_v61 = vsel %vm677_vm2, %v1035_v1, %v2569_v58  ;;  %v879_v49 = vsel %vm722_vm11, %v864_v2, %v2559_v4  ;;  %v732_v4 = vsel %vm731_vm7, %v2538_v37, %v2502_v60  ;;  %v2182_v1 = vld [vmem:[%s2949_s5] sm:$0xff]  }
 0x287   : > { %v1011_v47 = vmax.f32 %v1009_v10, %v1010_v19  ;;  %v1044_v39 = vsel %vm729_vm9, %v1043_v35, %v933_v48  ;;  %v1017_v63 = vrot.slane %v1016_v29, 1  ;;  %v1037_v44 = vsel %vm729_vm9, %v1036_v61, %v1004_v13 }
 0x288   : > { %v1045_v7 = vsel %vm731_vm7, %v1044_v39, %v940_v33  ;;  %v880_v59 = vsel %vm724_vm12, %v879_v49, %v2573_v45  ;;  %v734_v45 = vsel %vm733_vm13, %v732_v4, %v2508_v0  ;;  %v1156_v50 = vmul.f32 0.17677669, %v2524_v15 }
 0x289   : > { %v1038_v34 = vsel %vm731_vm7, %v1037_v44, %v1011_v47  ;;  %v1046_v23 = vsel %vm733_vm13, %v1045_v7, %v947_v17  ;;  %v881_v58 = vsel %vm726_vm14, %v880_v59, %v2577_v30  ;;  %v1018_v53 = vmax.f32 %v1016_v29, %v1017_v63  ;;  %v2183_v47 = vld [vmem:[%s2949_s5 + $0x8] sm:$0xff]  }
 0x28a   : > { %v882_v48 = vsel %vm677_vm2, %v881_v58, %v2580_v3  ;;  %vm2268_vm4 = vmmov 0   ;;  %v1155_v37 = vmul.f32 0.17677669, %v734_v45  ;;  %vm1170_vm8 = vcmask 261120  }
 0x28b   : > { %v883_v33 = vsel %vm729_vm9, %v882_v48, %v2589_v16  ;;  %v1039_v17 = vsel %vm733_vm13, %v1038_v34, %v1018_v53  ;;  %2101 = vmatprep.mubr.msk.bf16.mxu0 %vm2268_vm4, %v2266_v20  ;;  %2111 = vmatprep.mubr.msk.bf16.mxu1 %vm2268_vm4, %v2266_v20  ;;  %v2720_v16 = vpack.c.bf16 %v2656_v52, %v2656_v52  ;;  %vm1224_vm10 = vcmask 269312  }
 0x28c   : > { %v884_v30 = vsel %vm731_vm7, %v883_v33, %v2593_v55  ;;  %v2704_v62 = vpack.c.bf16 %v1039_v17, %v1032_v31  ;;  %v2706_v3 = vpack.c.bf16 %v1039_v17, %v1046_v23  ;;  %v1157_v15 = vpack.c.bf16 %v1156_v50, %v1155_v37 }
 0x28d   : > { %v885_v60 = vsel %vm733_vm13, %v884_v30, %v2595_v57  ;;  %v1160_v55 = vpack.c.bf16 %v864_v2, %v864_v2  ;;  %v2724_v57 = vsel %vm722_vm11, 65535, %v2265_v43  ;;  %vm1228_vm15 = vcmask 262144  }
 0x28e   : > { %v1159_v0 = vpack.c.bf16 %v2633_v8, %v885_v60  ;;  %2106 = vmatpush3.bf16.msra.mxu1 %v2704_v62  ;;  %v1258_v8 = vand.u32 %v2724_v57, %v2720_v16 }
 0x28f   : > { %2107 = vmatprep.subr.bf16.mxu1 %v2266_v20 }
 0x290   : > { %1166 = vrot.lane.b32.xlu1 %v1159_v0, %s2267_s22 }
 0x292   : > { %2108 = vmatpush3.bf16.msra.mxu1 %v2706_v3 }
 0x293   : > { %2109 = vmatprep.subr.bf16.mxu1 %v2266_v20 }
 0x294   : > { %1168 = vrot.lane.b32.xlu1 %v1160_v55, %s2267_s22 }
 0x296   : > { %2110 = vmatpush3.bf16.msra.mxu1 %v1258_v8 }
 0x297   : > { %2115 = vmatprep.subr.bf16.mxu1 %v2266_v20 }
 0x2e5   : > { %v1165_v52 = vpop.permute.xlu0 %1164 }
 0x2e6   : > { %v1175_v5 = vsel %vm1170_vm8, %v1165_v52, 0 }
 0x2e7   : > { %2096 = vmatpush3.bf16.xpose.msra.mxu0 %v1175_v5 }
 0x2e8   : > { %2097 = vmatprep.subr.bf16.mxu0 %v2266_v20 }
 0x302   : > { %v1167_v6 = vpop.permute.xlu1 %1166 }
 0x303   : > { %v1178_v9 = vsel %vm1170_vm8, %v1167_v6, 0 }
 0x304   : > { %2098 = vmatpush3.bf16.xpose.msra.mxu0 %v1178_v9 }
 0x305   : > { %2099 = vmatprep.subr.bf16.mxu0 %v2266_v20 }
 0x306   : > { %v1169_v12 = vpop.permute.xlu1 %1168 }
 0x307   : > { %v1181_v32 = vsel %vm1170_vm8, %v1169_v12, 0 }
 0x30c   : > { %2100 = vmatpush3.bf16.xpose.msra.mxu0 %v1181_v32 }
 0x30d   : > { %2133 = vmatprep.subr.bf16.mxu0 %v2266_v20 }
 0x313   : > { %2102 = vmatmul.mubr.msk.bf16.vlgmr.msra.gmra.mrb[12].mxu0 %vm1170_vm8, %v1157_v15 }
 0x314   : > { %2139 = vmatprep.mubr.msk.bf16.mxu0 %vm2268_vm4, %v2266_v20 }
 0x3e6   : > { %v1217_v14 = vpop.f32.mrb[12].mxu0 }
 0x3e7   : > { %v2103_v51 = vpop.f32.mrb[13].mxu0  ;;  %v1225_v46 = vsel %vm1224_vm10, %v1217_v14, -inf }
 0x3e8   : > { %1226 = vmax.xlane.f32.xlu1 %v1225_v46  ;;  %v1220_v18 = vpop.f32.mrb[14].mxu0 }
 0x3e9   : > { %v2104_v41 = vpop.f32.mrb[15].mxu0  ;;  %v1229_v56 = vsel %vm1228_vm15, %v1220_v18, -inf }
 0x3ea   : > { %1230 = vmax.xlane.f32.xlu0 %v1229_v56 }
 0x3f9   : > { %1363 = vrot.lane.b32.xlu1 %v2636_v28, %s2269_s23 }
 0x3fd   : > { %1367 = vrot.lane.b32.xlu1 %v1160_v55, %s2269_s23 }
 0x401   : > { %1361 = vrot.lane.b32.xlu1 %v1157_v15, %s2270_s24 }
 0x475   : > { %v1227_v21 = vpop.xlane.xlu1 %1226 }
 0x476   : > { %v1232_v11 = vsub.f32 %v1217_v14, %v1227_v21 }
 0x477   : > { %v1231_v38 = vpop.xlane.xlu0 %1230 }
 0x478   : > { %v1234_v10 = vmul.f32 1.442695, %v1232_v11  ;;  %v1233_v36 = vsub.f32 %v1220_v18, %v1231_v38 }
 0x479   : > { %v1364_v49 = vpop.permute.xlu1 %1363 }
 0x47a   : > { %2224 = vpow2.f32 %v1234_v10  ;;  %v1236_v25 = vmul.f32 1.442695, %v1233_v36  ;;  %v1373_v59 = vsel %vm1170_vm8, %v1364_v49, 0 }
 0x47c   : > { %2226 = vpow2.f32 %v1236_v25 }
 0x47d   : > { %v1368_v58 = vpop.permute.xlu1 %1367 }
 0x47e   : > { %v1379_v53 = vsel %vm1170_vm8, %v1368_v58, 0 }
 0x481   : > { %v1362_v48 = vpop.permute.xlu1 %1361 }
 0x484   : > { %v2225_v40 = vpop.eup %2224 }
 0x485   : > { %v1238_v26 = vsel %vm1224_vm10, %v2225_v40, 0.0 }
 0x486   : > { %v2227_v2 = vpop.eup %2226  ;;  %1239 = vadd.xlane.f32.xlu0 %v1238_v26 }
 0x487   : > { %v1241_v13 = vsel %vm1228_vm15, %v2227_v2, 0.0 }
 0x48a   : > { %1242 = vadd.xlane.f32.xlu0 %v1241_v13 }
 0x4a0   : > { %1365 = vrot.lane.b32.xlu0 %v1159_v0, %s2269_s23 }
 0x513   : > { %v1240_v28 = vpop.xlane.xlu0 %1239 }
 0x514   : > { %2228 = vrcp.f32 %v1240_v28  ;;  %v2798_v28 = vld [vmem:[%s2355_s30] sm:$0xff] }
 0x517   : > { %v1243_v19 = vpop.xlane.xlu0 %1242 }
 0x518   : > { %2230 = vrcp.f32 %v1243_v19  ;;  %v2253_v19 = vld [vmem:[%s2355_s30 + $0x8] sm:$0xff] }
 0x51b   : > { %v1366_v34 = vpop.permute.xlu0 %1365 }
 0x51c   : > { %v1376_v23 = vsel %vm1170_vm8, %v1366_v34, 0 }
 0x51e   : > { %v2229_v54 = vpop.eup %2228 }
 0x51f   : > { %v1246_v29 = vmul.f32 %v2229_v54, %v2225_v40  ;;  %v1050_v54 = vrot.slane %v2253_v19, 4 }
 0x522   : > { %v2231_v42 = vpop.eup %2230 }
 0x523   : > { %v1247_v31 = vmul.f32 %v2231_v42, %v2227_v2 }
 0x525   : > { %v1248_v35 = vpack.c.bf16 %v1247_v31, %v1246_v29  ;;  %v1069_v31 = vmax.f32 %v2798_v28, %v1050_v54 }
 0x527   : > { %2112 = vmatmul.mubr.msk.bf16.vlgmr.msra.gmra.mrb[0].mxu1 %vm1224_vm10, %v1248_v35 }
 0x528   : > { %2116 = vmatpush3.bf16.msra.mxu1 %v2182_v1  ;;  %2119 = vmatprep.mubr.msk.bf16.mxu1 %vm2268_vm4, %v2266_v20  ;;  %v1070_v1 = vmax.f32 %v2253_v19, %v1050_v54 }
 0x529   : > { %2117 = vmatprep.subr.bf16.mxu1 %v2266_v20 }
 0x52c   : > { %2118 = vmatpush3.bf16.msra.mxu1 %v2183_v47  ;;  %v2254_v47 = vld [vmem:[%s2355_s30 + $0x10] sm:$0xff] }
 0x52d   : > { %2123 = vmatprep.subr.bf16.mxu1 %v2266_v20  ;;  %v1072_v49 = vmax.f32 %v1070_v1, %v2254_v47 }
 0x5fa   : > { %v1294_v61 = vpop.f32.mrb[0].mxu1 }
 0x5fb   : > { %v2113_v39 = vpop.f32.mrb[1].mxu1 }
 0x5fc   : > { %v1297_v63 = vpop.f32.mrb[2].mxu1  ;;  %v1071_v39 = vmax.f32 %v1069_v31, %v2253_v19 }
 0x5fd   : > { %v1301_v44 = vpack.c.bf16 %v1297_v63, %v1294_v61  ;;  %v2114_v7 = vpop.f32.mrb[3].mxu1  ;;  %v1091_v61 = vrot.slane %v2254_v47, 4 }
 0x5fe   : > { %v1080_v34 = vsel %vm712_vm6, %v1071_v39, -inf }
 0x5ff   : > { %2120 = vmatmul.mubr.msk.bf16.vlgmr.msra.gmra.mrb[4].mxu1 %vm1170_vm8, %v1301_v44 }
 0x600   : > { %2124 = vmatpush3.bf16.xpose.msra.mxu1 %v1373_v59  ;;  %2129 = vmatprep.mubr.msk.bf16.mxu1 %vm2268_vm4, %v2266_v20  ;;  %v1081_v59 = vsel %vm462_vm1, %v1072_v49, -inf }
 0x601   : > { %2125 = vmatprep.subr.bf16.mxu1 %v2266_v20 }
 0x608   : > { %2126 = vmatpush3.bf16.xpose.msra.mxu1 %v1376_v23 }
 0x609   : > { %2127 = vmatprep.subr.bf16.mxu1 %v2266_v20 }
 0x610   : > { %2128 = vmatpush3.bf16.xpose.msra.mxu1 %v1379_v53  ;;  %v1073_v53 = vsel %vm704_vm5, %v1071_v39, -inf }
 0x617   : > { %2130 = vmatmul.mubr.msk.bf16.vlgmr.msra.gmra.mrb[8].mxu1 %vm1170_vm8, %v1362_v48 }
 0x6d2   : > { %v2767_v4 = vpop.f32.mrb[4].mxu1 }
 0x6d3   : > { %v2121_v33 = vpop.f32.mrb[5].mxu1 }
 0x6d4   : > { %v2769_v45 = vpop.f32.mrb[6].mxu1  ;;  %v1082_v33 = vmax.f32 %v1080_v34, %v1081_v59 }
 0x6d5   : > { %v2122_v50 = vpop.f32.mrb[7].mxu1 }
 0x6ea   : > { %v1415_v17 = vpop.f32.mrb[8].mxu1 }
 0x6eb   : > { %v2131_v30 = vpop.f32.mrb[9].mxu1  ;;  %v1422_v60 = vsel %vm1224_vm10, %v1415_v17, -inf }
 0x6ec   : > { %1423 = vmax.xlane.f32.xlu1 %v1422_v60  ;;  %v1418_v37 = vpop.f32.mrb[10].mxu1 }
 0x6ed   : > { %v2132_v0 = vpop.f32.mrb[11].mxu1  ;;  %v1425_v15 = vsel %vm1228_vm15, %v1418_v37, -inf }
 0x6ee   : > { %1426 = vmax.xlane.f32.xlu0 %v1425_v15  ;;  %v1083_v15 = vrot.slane %v1082_v33, 4 }
 0x6fd   : > { %1448 = vrot.lane.b32.xlu1 %v2704_v62, %s2270_s24 }
 0x701   : > { %1452 = vrot.lane.b32.xlu1 %v2720_v16, %s2270_s24 }
 0x779   : > { %v1424_v55 = vpop.xlane.xlu1 %1423 }
 0x77a   : > { %v1428_v8 = vsub.f32 %v1415_v17, %v1424_v55  ;;  %v1074_v17 = vrot.slane %v1073_v53, 4 }
 0x77b   : > { %v1427_v52 = vpop.xlane.xlu0 %1426 }
 0x77c   : > { %v1430_v5 = vmul.f32 1.442695, %v1428_v8  ;;  %v1429_v6 = vsub.f32 %v1418_v37, %v1427_v52  ;;  %v1075_v8 = vmax.f32 %v1073_v53, %v1074_v17 }
 0x77d   : > { %v1449_v9 = vpop.permute.xlu1 %1448 }
 0x77e   : > { %2232 = vpow2.f32 %v1430_v5  ;;  %v1432_v12 = vmul.f32 1.442695, %v1429_v6  ;;  %2134 = vmatpush3.bf16.msra.mxu0 %v1449_v9  ;;  %v2256_v6 = vld [vmem:[%s2355_s30 + $0x20] sm:$0x1] }
 0x77f   : > { %2135 = vmatprep.subr.bf16.mxu0 %v2266_v20 }
 0x780   : > { %2234 = vpow2.f32 %v1432_v12 }
 0x781   : > { %v1453_v18 = vpop.permute.xlu1 %1452 }
 0x782   : > { %v1460_v56 = vand.u32 %v1453_v18, %v2724_v57  ;;  %v2185_v57 = vld [vmem:[%s2949_s5 + $0x18] sm:$0xff]  }
 0x788   : > { %v2233_v32 = vpop.eup %2232 }
 0x789   : > { %v1434_v14 = vsel %vm1224_vm10, %v2233_v32, 0.0 }
 0x78a   : > { %v2235_v51 = vpop.eup %2234  ;;  %1435 = vadd.xlane.f32.xlu0 %v1434_v14 }
 0x78b   : > { %v1437_v62 = vsel %vm1228_vm15, %v2235_v51, 0.0 }
 0x78e   : > { %1438 = vadd.xlane.f32.xlu0 %v1437_v62  ;;  %v1076_v62 = vrot.slane %v1075_v8, 2 }
 0x7a4   : > { %1450 = vrot.lane.b32.xlu0 %v2706_v3, %s2270_s24  ;;  %v2184_v3 = vld [vmem:[%s2949_s5 + $0x10] sm:$0xff]  }
 0x817   : > { %v1436_v16 = vpop.xlane.xlu0 %1435 }
 0x818   : > { %2236 = vrcp.f32 %v1436_v16 }
 0x81b   : > { %v1439_v46 = vpop.xlane.xlu0 %1438 }
 0x81c   : > { %2238 = vrcp.f32 %v1439_v46 }
 0x81f   : > { %v1451_v41 = vpop.permute.xlu0 %1450 }
 0x820   : > { %2136 = vmatpush3.bf16.msra.mxu0 %v1451_v41 }
 0x821   : > { %2137 = vmatprep.subr.bf16.mxu0 %v2266_v20 }
 0x822   : > { %v2237_v21 = vpop.eup %2236 }
 0x823   : > { %v1442_v38 = vmul.f32 %v2237_v21, %v2233_v32 }
 0x824   : > { %2138 = vmatpush3.bf16.msra.mxu0 %v1460_v56 }
 0x825   : > { %2143 = vmatprep.subr.bf16.mxu0 %v2266_v20 }
 0x826   : > { %v2239_v11 = vpop.eup %2238 }
 0x827   : > { %v1443_v10 = vmul.f32 %v2239_v11, %v2235_v51  ;;  %v1084_v51 = vmax.f32 %v1082_v33, %v1083_v15 }
 0x829   : > { %v1444_v36 = vpack.c.bf16 %v1443_v10, %v1442_v38  ;;  %v1085_v38 = vrot.slane %v1084_v51, 2  ;;  %v1077_v10 = vmax.f32 %v1075_v8, %v1076_v62 }
 0x82b   : > { %2140 = vmatmul.mubr.msk.bf16.vlgmr.msra.gmra.mrb[16].mxu0 %vm1224_vm10, %v1444_v36 }
 0x82c   : > { %2144 = vmatpush3.bf16.msra.mxu0 %v2184_v3  ;;  %2147 = vmatprep.mubr.msk.bf16.mxu0 %vm2268_vm4, %v2266_v20  ;;  %vm2963_vm4 = vmmov %vm2962_vm0 }
 0x82d   : > { %2145 = vmatprep.subr.bf16.mxu0 %v2266_v20  ;;  %v1049_v20 = vrot.slane %v2798_v28, 4 }
 0x82f   : > { %v1051_v42 = vsel %vm677_vm2, %v1049_v20, %v1050_v54 }
 0x830   : > { %2146 = vmatpush3.bf16.msra.mxu0 %v2185_v57  ;;  %v1053_v29 = vmax.f32 %v2798_v28, %v1051_v42 }
 0x832   : > { %v1054_v35 = vsel %vm683_vm3, %v1053_v29, -inf  ;;  %v1061_v7 = vsel %vm2962_vm0, %v1053_v29, -inf }
 0x833   : > { %v1055_v44 = vrot.slane %v1054_v35, 4  ;;  %v1062_v58 = vrot.slane %v1061_v7, 4 }
 0x835   : > { %v1056_v48 = vmax.f32 %v1054_v35, %v1055_v44  ;;  %v1063_v30 = vmax.f32 %v1061_v7, %v1062_v58 }
 0x837   : > { %v1057_v37 = vrot.slane %v1056_v48, 2  ;;  %v1064_v5 = vrot.slane %v1063_v30, 2 }
 0x839   : > { %v1058_v12 = vmax.f32 %v1056_v48, %v1057_v37  ;;  %v1065_v16 = vmax.f32 %v1063_v30, %v1064_v5  ;;  %v2009_v37 = vld [vmem:[%s2950_s6] ss:$0 sm:$0xff] }
 0x83b   : > { %v1059_v21 = vrot.slane %v1058_v12, 1  ;;  %v1066_v57 = vrot.slane %v1065_v16, 1 }
 0x83d   : > { %v1067_v54 = vmax.f32 %v1065_v16, %v1066_v57  ;;  %v2191_v57 = vld [vmem:[%s2953_s9 + $0x14] ss:$8 sps:$4 sm:$0xff]  }
 0x8fe   : > { %v1496_v25 = vpop.f32.mrb[16].mxu0 }
 0x8ff   : > { %v2141_v40 = vpop.f32.mrb[17].mxu0 }
 0x900   : > { %v1499_v26 = vpop.f32.mrb[18].mxu0  ;;  %v1060_v40 = vmax.f32 %v1058_v12, %v1059_v21 }
 0x901   : > { %v1503_v2 = vpack.c.bf16 %v1499_v26, %v1496_v25  ;;  %v2142_v13 = vpop.f32.mrb[19].mxu0 }
 0x902   : > { %v1078_v13 = vrot.slane %v1077_v10, 1  ;;  %v1131_v31 = vsel %vm722_vm11, %v2798_v28, %v1060_v40  ;;  %v2192_v40 = vld [vmem:[%s2953_s9 + $0x20] ss:$8 sps:$4 sm:$0xff]  }
 0x903   : > { %2148 = vmatmul.mubr.msk.bf16.vlgmr.msra.gmra.mrb[20].mxu0 %vm1170_vm8, %v1503_v2  ;;  %v1086_v2 = vmax.f32 %v1084_v51, %v1085_v38  ;;  %v1132_v39 = vsel %vm724_vm12, %v1131_v31, %v1067_v54 }
 0x904   : > { %1702 = vmatprep.mubr.bf16.mxu0 %v2265_v43  ;;  %v2255_v43 = vld [vmem:[%s2355_s30 + $0x18] sm:$0xff]  ;;  %v1079_v35 = vmax.f32 %v1077_v10, %v1078_v13  ;;  %v2188_v10 = vld [vmem:[%s2953_s9 + $0x4] ss:$8 sps:$4 sm:$0xff]  }
 0x905   : > { %v1092_v63 = vrot.slane %v2255_v43, 4  ;;  %v1087_v1 = vrot.slane %v1086_v2, 1  ;;  %1670 = vmatprep.subr.bf16.mxu0 %v2188_v10 }
 0x906   : > { %v1133_v7 = vsel %vm726_vm14, %v1132_v39, %v1079_v35 }
 0x907   : > { %v1093_v23 = vsel %vm677_vm2, %v1091_v61, %v1092_v63  ;;  %v1111_v60 = vmax.f32 %v2254_v47, %v1092_v63  ;;  %v1112_v0 = vmax.f32 %v2255_v43, %v1092_v63  ;;  %v1088_v63 = vmax.f32 %v1086_v2, %v1087_v1  ;;  %v2195_v2 = vld [vmem:[%s2953_s9 + $0x30] ss:$8 sps:$4 sm:$0xff]   ;;  %v2020_v1 = vld [vmem:[%s2951_s7] ss:$0 sm:$0xff] }
 0x908   : > { %v1095_v50 = vmax.f32 %v2254_v47, %v1093_v23 }
 0x909   : > { %v1113_v52 = vmax.f32 %v1111_v60, %v2255_v43  ;;  %v1114_v9 = vmax.f32 %v1112_v0, %v2256_v6  ;;  %v1134_v58 = vsel %vm677_vm2, %v1133_v7, %v1088_v63  ;;  %vm2964_vm2 = vcmask 523264  }
 0x90a   : > { %v1096_v55 = vsel %vm683_vm3, %v1095_v50, -inf  ;;  %v1103_v14 = vsel %vm2963_vm4, %v1095_v50, -inf  ;;  %vm2965_vm3 = vmmov %vm2964_vm2 }
 0x90b   : > { %v1097_v32 = vrot.slane %v1096_v55, 4  ;;  %v1104_v46 = vrot.slane %v1103_v14, 4  ;;  %v1115_v18 = vsel %vm704_vm5, %v1113_v52, -inf  ;;  %v1122_v41 = vsel %vm712_vm6, %v1113_v52, -inf  ;;  %vm2966_vm5 = vmmov %vm2964_vm2 }
 0x90c   : > { %v1123_v56 = vsel %vm462_vm1, %v1114_v9, -inf  ;;  %v1116_v3 = vrot.slane %v1115_v18, 4  ;;  %vm2967_vm6 = vmmov %vm2964_vm2 }
 0x90d   : > { %v1098_v11 = vmax.f32 %v1096_v55, %v1097_v32  ;;  %v1124_v36 = vmax.f32 %v1122_v41, %v1123_v56  ;;  %v1105_v25 = vmax.f32 %v1103_v14, %v1104_v46 }
 0x90e   : > { %v1117_v20 = vmax.f32 %v1115_v18, %v1116_v3  ;;  %v2186_v3 = vld [vmem:[%s2953_s9] ss:$8 sps:$4 sm:$0xff]  }
 0x90f   : > { %v1099_v26 = vrot.slane %v1098_v11, 2  ;;  %v1125_v19 = vrot.slane %v1124_v36, 4  ;;  %v1106_v42 = vrot.slane %v1105_v25, 2  ;;  %1671 = vmatpush1.bf16.msra.mxu0 %v2186_v3 }
 0x910   : > { %v1118_v47 = vrot.slane %v1117_v20, 2  ;;  %1672 = vmatprep.subr.bf16.mxu0 %v2191_v57 }
 0x911   : > { %v1100_v29 = vmax.f32 %v1098_v11, %v1099_v26  ;;  %v1107_v61 = vmax.f32 %v1105_v25, %v1106_v42  ;;  %v1126_v49 = vmax.f32 %v1124_v36, %v1125_v19  ;;  %v2189_v36 = vld [vmem:[%s2953_s9 + $0x10] ss:$8 sps:$4 sm:$0xff]   ;;  %v2194_v25 = vld [vmem:[%s2953_s9 + $0x24] ss:$8 sps:$4 sm:$0xff]   ;;  %v2197_v26 = vld [vmem:[%s2953_s9 + $0x34] ss:$8 sps:$4 sm:$0xff]  }
 0x912   : > { %v1119_v44 = vmax.f32 %v1117_v20, %v1118_v47 }
 0x913   : > { %v1101_v43 = vrot.slane %v1100_v29, 1  ;;  %v1108_v59 = vrot.slane %v1107_v61, 1  ;;  %v1127_v34 = vrot.slane %v1126_v49, 2  ;;  %1673 = vmatpush1.bf16.msra.mxu0 %v2189_v36 }
 0x914   : > { %v1120_v53 = vrot.slane %v1119_v44, 1  ;;  %1674 = vmatprep.subr.bf16.mxu0 %v2194_v25 }
 0x915   : > { %v1102_v23 = vmax.f32 %v1100_v29, %v1101_v43  ;;  %v1109_v48 = vmax.f32 %v1107_v61, %v1108_v59  ;;  %v1128_v28 = vmax.f32 %v1126_v49, %v1127_v34  ;;  %v2021_v49 = vld [vmem:[%s2952_s8] ss:$0 sm:$0xff] }
 0x916   : > { %v1121_v50 = vmax.f32 %v1119_v44, %v1120_v53  ;;  %v2198_v59 = vld [vmem:[%s2955_s11 + $0x40] sm:$0xff]   ;;  %v2202_v53 = vld [vmem:[%s2955_s11 + $0x50] sm:$0xff]  }
 0x917   : > { %v1135_v33 = vsel %vm729_vm9, %v1134_v58, %v1102_v23  ;;  %v1129_v30 = vrot.slane %v1128_v28, 1  ;;  %1675 = vmatpush1.bf16.msra.mxu0 %v2192_v40  ;;  %v2199_v34 = vld [vmem:[%s2955_s11] sm:$0xff]   ;;  %2073 = vmatprep.subr.bf16.mxu1 %v2198_v59  ;;  %v2200_v23 = vld [vmem:[%s2955_s11 + $0x48] sm:$0xff]  }
 0x918   : > { %v1136_v17 = vsel %vm731_vm7, %v1135_v33, %v1109_v48  ;;  %1676 = vmatprep.subr.bf16.mxu0 %v2197_v26  ;;  %2074 = vmatpush3.bf16.msra.mxu1 %v2199_v34  ;;  %v2201_v58 = vld [vmem:[%s2955_s11 + $0x8] sm:$0xff]   ;;  %v2203_v48 = vld [vmem:[%s2955_s11 + $0x10] sm:$0xff]   ;;  %v2205_v33 = vld [vmem:[%s2955_s11 + $0x18] sm:$0xff]  }
 0x919   : > { %v1137_v60 = vsel %vm733_vm13, %v1136_v17, %v1121_v50  ;;  %v1130_v0 = vmax.f32 %v1128_v28, %v1129_v30  ;;  %2075 = vmatprep.subr.bf16.mxu1 %v2200_v23  ;;  %v2204_v28 = vld [vmem:[%s2955_s11 + $0x58] sm:$0xff]   ;;  %v2206_v50 = vld [vmem:[%s2955_s11 + $0x60] sm:$0xff]   ;;  %v2208_v30 = vld [vmem:[%s2955_s11 + $0x68] sm:$0xff]  }
 0x91a   : > { %v1153_v15 = vadd.f32 %v2009_v37, %v1137_v60  ;;  %v2207_v17 = vld [vmem:[%s2955_s11 + $0x20] sm:$0xff]   ;;  %v2209_v60 = vld [vmem:[%s2955_s11 + $0x28] sm:$0xff]  }
 0x91b   : > { %v1154_v55 = vadd.f32 %v2009_v37, %v1130_v0  ;;  %1677 = vmatpush1.bf16.msra.mxu0 %v2195_v2  ;;  %v2210_v37 = vld [vmem:[%s2955_s11 + $0x70] sm:$0xff]  }
 0x91c   : > { %v1358_v8 = vadd.f32 %v2767_v4, %v1153_v15  ;;  %2076 = vmatpush3.bf16.msra.mxu1 %v2201_v58  ;;  %v2211_v0 = vld [vmem:[%s2955_s11 + $0x30] sm:$0xff]   ;;  %v2212_v15 = vld [vmem:[%s2955_s11 + $0x78] sm:$0xff]  }
 0x91d   : > { %v1359_v5 = vadd.f32 %v2769_v45, %v1154_v55  ;;  %2077 = vmatprep.subr.bf16.mxu1 %v2202_v53  ;;  %v2213_v55 = vld [vmem:[%s2955_s11 + $0x38] sm:$0xff]  }
 0x920   : > { %2078 = vmatpush3.bf16.msra.mxu1 %v2203_v48 }
 0x921   : > { %2079 = vmatprep.subr.bf16.mxu1 %v2204_v28 }
 0x924   : > { %2080 = vmatpush3.bf16.msra.mxu1 %v2205_v33  ;;  %v2047_v33 = vld [vmem:[%s2956_s12] ss:$0 sm:$0xff] }
 0x925   : > { %2081 = vmatprep.subr.bf16.mxu1 %v2206_v50 }
 0x928   : > { %2082 = vmatpush3.bf16.msra.mxu1 %v2207_v17 }
 0x929   : > { %2083 = vmatprep.subr.bf16.mxu1 %v2208_v30 }
 0x92c   : > { %2084 = vmatpush3.bf16.msra.mxu1 %v2209_v60 }
 0x92d   : > { %2085 = vmatprep.subr.bf16.mxu1 %v2210_v37 }
 0x930   : > { %2086 = vmatpush3.bf16.msra.mxu1 %v2211_v0 }
 0x931   : > { %2087 = vmatprep.subr.bf16.mxu1 %v2212_v15 }
 0x934   : > { %2088 = vmatpush3.bf16.msra.mxu1 %v2213_v55 }
 0x9d6   : > { %v1553_v52 = vpop.f32.mrb[20].mxu0 }
 0x9d7   : > { %v2832_v6 = vadd.f32 %v1553_v52, %v1358_v8  ;;  %v2149_v9 = vpop.f32.mrb[21].mxu0  ;;  %v1615_v8 = vld [vmem:[%s2954_s10] sm:$0x3] }
 0x9d8   : > { %v1556_v12 = vpop.f32.mrb[22].mxu0  ;;  %v1620_v52 = vrot.slane %v1615_v8, %v554_v24 }
 0x9d9   : > { %v2834_v32 = vadd.f32 %v1556_v12, %v1359_v5  ;;  %v2150_v14 = vpop.f32.mrb[23].mxu0  ;;  %v1564_v51 = vsel %vm2964_vm2, %v2832_v6, 0.0  ;;  %v1624_v5 = vrot.slane %v1615_v8, %v558_v27 }
 0x9da   : > { %1565 = vadd.xlane.f32.xlu1 %v1564_v51 }
 0x9db   : > { %v1567_v62 = vsel %vm462_vm1, %v2834_v32, 0.0 }
 0x9dc   : > { %1568 = vadd.xlane.f32.xlu0 %v1567_v62 }
 0xa67   : > { %v1566_v16 = vpop.xlane.xlu1 %1565 }
 0xa68   : > { %v1570_v4 = vmul.f32 0.015625, %v1566_v16 }
 0xa69   : > { %v1569_v46 = vpop.xlane.xlu0 %1568 }
 0xa6a   : > { %v1572_v45 = vsub.f32 %v2832_v6, %v1570_v4  ;;  %v1571_v18 = vmul.f32 0.015625, %v1569_v46 }
 0xa6c   : > { %v1573_v41 = vsub.f32 %v2834_v32, %v1571_v18  ;;  %v1574_v56 = vmul.f32 %v1572_v45, %v1572_v45 }
 0xa6e   : > { %v1576_v21 = vsel %vm2965_vm3, %v1574_v56, 0.0  ;;  %v1575_v11 = vmul.f32 %v1573_v41, %v1573_v41 }
 0xa6f   : > { %1577 = vadd.xlane.f32.xlu0 %v1576_v21 }
 0xa70   : > { %v1579_v38 = vsel %vm462_vm1, %v1575_v11, 0.0 }
 0xa71   : > { %1580 = vadd.xlane.f32.xlu1 %v1579_v38 }
 0xafc   : > { %v1578_v13 = vpop.xlane.xlu0 %1577 }
 0xafd   : > { %v1582_v20 = vmul.f32 0.015625, %v1578_v13 }
 0xafe   : > { %v1581_v19 = vpop.xlane.xlu1 %1580 }
 0xaff   : > { %v1584_v54 = vadd.f32 1e-06, %v1582_v20  ;;  %v1583_v42 = vmul.f32 0.015625, %v1581_v19 }
 0xb01   : > { %2240 = vrsqrt.f32 %v1584_v54  ;;  %v1585_v29 = vadd.f32 1e-06, %v1583_v42 }
 0xb03   : > { %2242 = vrsqrt.f32 %v1585_v29 }
 0xb0b   : > { %v2241_v31 = vpop.eup %2240 }
 0xb0c   : > { %v1588_v35 = vmul.f32 %v2241_v31, %v1572_v45 }
 0xb0d   : > { %v2243_v47 = vpop.eup %2242 }
 0xb0e   : > { %v1596_v61 = vmul.f32 %v2020_v1, %v1588_v35  ;;  %v1589_v39 = vmul.f32 %v2243_v47, %v1573_v41 }
 0xb10   : > { %v1597_v43 = vmul.f32 %v2020_v1, %v1589_v39  ;;  %v1604_v63 = vadd.f32 %v2021_v49, %v1596_v61 }
 0xb12   : > { %v1605_v44 = vadd.f32 %v2021_v49, %v1597_v43 }
 0xb14   : > { %v1606_v7 = vpack.c.bf16 %v1605_v44, %v1604_v63 }
 0xb16   : > { %2030 = vmatmul.mubr.msk.bf16.vlgmr.msra.gmra.mrb[24].mxu0 %vm2966_vm5, %v1606_v7 }
 0xbe9   : > { %v1704_v9 = vpop.f32.mrb[24].mxu0 }
 0xbea   : > { %v1705_v12 = vadd.f32 %v1704_v9, %v1620_v52  ;;  %v1706_v14 = vpop.f32.mrb[25].mxu0 }
 0xbeb   : > { %v1707_v51 = vadd.f32 %v1706_v14, %v1624_v5  ;;  %v1708_v62 = vpop.f32.mrb[26].mxu0 }
 0xbec   : > { %v1717_v16 = vmul.f32 0.044715, %v1705_v12  ;;  %v1709_v4 = vadd.f32 %v1708_v62, %v1620_v52  ;;  %v1710_v46 = vpop.f32.mrb[27].mxu0  ;;  %v1713_v35 = vmul.f32 0.5, %v1705_v12 }
 0xbed   : > { %v1718_v45 = vmul.f32 0.044715, %v1707_v51  ;;  %v1711_v18 = vadd.f32 %v1710_v46, %v1624_v5  ;;  %v1714_v39 = vmul.f32 0.5, %v1707_v51 }
 0xbee   : > { %v1721_v41 = vmul.f32 %v1717_v16, %v1705_v12  ;;  %v1719_v56 = vmul.f32 0.044715, %v1709_v4  ;;  %v1715_v47 = vmul.f32 0.5, %v1709_v4 }
 0xbef   : > { %v1722_v21 = vmul.f32 %v1718_v45, %v1707_v51  ;;  %v1720_v11 = vmul.f32 0.044715, %v1711_v18  ;;  %v1716_v49 = vmul.f32 0.5, %v1711_v18 }
 0xbf0   : > { %v1725_v38 = vmul.f32 %v1721_v41, %v1705_v12  ;;  %v1723_v10 = vmul.f32 %v1719_v56, %v1709_v4 }
 0xbf1   : > { %v1726_v24 = vmul.f32 %v1722_v21, %v1707_v51  ;;  %v1724_v3 = vmul.f32 %v1720_v11, %v1711_v18 }
 0xbf2   : > { %v1729_v22 = vadd.f32 %v1725_v38, %v1705_v12  ;;  %v1727_v27 = vmul.f32 %v1723_v10, %v1709_v4 }
 0xbf3   : > { %v1728_v36 = vmul.f32 %v1724_v3, %v1711_v18  ;;  %v1730_v57 = vadd.f32 %v1726_v24, %v1707_v51 }
 0xbf4   : > { %v1733_v25 = vmul.f32 0.7978846, %v1729_v22  ;;  %v1731_v40 = vadd.f32 %v1727_v27, %v1709_v4 }
 0xbf5   : > { %v1732_v26 = vadd.f32 %v1728_v36, %v1711_v18  ;;  %v1734_v2 = vmul.f32 0.7978846, %v1730_v57 }
 0xbf6   : > { %2244 = vtanh.f32 %v1733_v25  ;;  %v1735_v13 = vmul.f32 0.7978846, %v1731_v40 }
 0xbf7   : > { %v1736_v20 = vmul.f32 0.7978846, %v1732_v26  ;;  %2246 = vtanh.f32 %v1734_v2 }
 0xbf8   : > { %2248 = vtanh.f32 %v1735_v13 }
 0xbf9   : > { %2250 = vtanh.f32 %v1736_v20 }
 0xc00   : > { %v2245_v19 = vpop.eup %2244 }
 0xc01   : > { %v2247_v54 = vpop.eup %2246  ;;  %v1741_v42 = vadd.f32 1.0, %v2245_v19 }
 0xc02   : > { %v2249_v29 = vpop.eup %2248  ;;  %v1742_v31 = vadd.f32 1.0, %v2247_v54 }
 0xc03   : > { %v2251_v1 = vpop.eup %2250  ;;  %v1743_v61 = vadd.f32 1.0, %v2249_v29  ;;  %v1745_v63 = vmul.f32 %v1741_v42, %v1713_v35 }
 0xc04   : > { %v1744_v43 = vadd.f32 1.0, %v2251_v1  ;;  %v1746_v7 = vmul.f32 %v1742_v31, %v1714_v39 }
 0xc05   : > { %v1747_v44 = vmul.f32 %v1743_v61, %v1715_v47 }
 0xc06   : > { %v1748_v59 = vmul.f32 %v1744_v43, %v1716_v49 }
 0xc07   : > { %v1749_v34 = vpack.c.bf16 %v1747_v44, %v1745_v63 }
 0xc08   : > { %v1750_v23 = vpack.c.bf16 %v1748_v59, %v1746_v7 }
 0xc0a   : > { %1911 = vmatprep.mubr.bf16.mxu1 %v1750_v23 }
 0xc0b   : > { %1912 = vmatmul.mubr.bf16.vlgmr.msra.gmra.mrb[12].mxu1 %v1749_v34 }
 0xcde   : > { %v2089_v58 = vpop.f32.mrb[12].mxu1 }
 0xcdf   : > { %v2090_v53 = vpop.f32.mrb[13].mxu1 }
 0xce0   : > { %v2091_v48 = vadd.f32 %v2090_v53, %v2089_v58  ;;  %v2092_v28 = vpop.f32.mrb[14].mxu1 }
 0xce1   : > { %v2093_v50 = vpop.f32.mrb[15].mxu1 }
 0xce2   : > { %v1920_v17 = vadd.f32 %v2091_v48, %v2832_v6  ;;  %v2094_v30 = vadd.f32 %v2093_v50, %v2092_v28 }
 0xce4   : > { %v1929_v60 = vadd.f32 %v2047_v33, %v1920_v17  ;;  %v1921_v37 = vadd.f32 %v2094_v30, %v2834_v32 }
 0xce6   : > { %1931 = vst.msk [vmem:[%s440_s19] sm:$0xff] %vm2967_vm6, %v1929_v60  ;;  %v1930_v0 = vadd.f32 %v2047_v33, %v1921_v37 }
 0xce8   : > { %1932 = vst.msk [vmem:[%s440_s19 + $0x8] sm:$0x1] %vm462_vm1, %v1930_v0 }
 0xce9 PF: > { %s23_s25 = sadd.s32 1, %s2263_s25  }
 0xcea   : > { %p20_p4 = scmp.ge.s32.totalorder %s23_s25, 4  }
 0xcec   :  { %22 = sbr.rel (!%p20_p4) target bundleno = 1 (0x1), region = 102 }

</bundles_post_ra>
